<compile_context>
chip_gen: v7x
topology: tpu7x:2x2x1
jax: 0.10.0
libtpu: 0.0.40
codegen_flags: <defaults>
</compile_context>

<pallas_src>
import jax
import jax.numpy as jnp
from jax.experimental import pallas as pl
from jax.experimental.pallas import tpu as pltpu

EPS = 1e-5


def _down_kernel(p_ref,                         # (B, Hp, Wp, Cin)  pooled NHWC input
                 w1_ref, g1_ref, be1_ref,       # (9*Cin, Cm_p), (1, Cm_p), (1, Cm_p)
                 w2_ref, g2_ref, be2_ref,       # (9*Cm_p, Co_p), (1, Co_p), (1, Co_p)
                 o_ref,                         # (B*Hp*Wp, Co_p)  lane-dense 2D output
                 pad1_ref, col1_ref, pad2_ref, col2_ref):
    B, Hp, Wp, Cin = p_ref.shape
    M = B * Hp * Wp
    Cm_p = w1_ref.shape[1]
    Co_p = w2_ref.shape[1]

    def zero_halo(pad_ref, c):
        # zero only the 1-pixel border strips (not the whole buffer).
        zrow = jnp.zeros((B, 1, Wp + 2, c), jnp.float32)
        zcol = jnp.zeros((B, Hp + 2, 1, c), jnp.float32)
        pad_ref[:, 0:1, :, :] = zrow
        pad_ref[:, Hp + 1:Hp + 2, :, :] = zrow
        pad_ref[:, :, 0:1, :] = zcol
        pad_ref[:, :, Wp + 1:Wp + 2, :] = zcol

    def im2col(pad_ref, col_ref, c):
        # explicit im2col buffer: 9 shifted slice copies, then one flatten for the matmul.
        for ky in range(3):
            for kx in range(3):
                t = ky * 3 + kx
                col_ref[:, :, :, t * c:(t + 1) * c] = pad_ref[:, ky:ky + Hp, kx:kx + Wp, :]
        return col_ref[...].reshape(M, 9 * c)

    def bn_relu(acc, g_ref, be_ref):
        # train-mode BatchNorm: single-pass batch stats (sum, sum of squares) in f32.
        inv_m = 1.0 / M
        mean = jnp.sum(acc, axis=0, keepdims=True) * inv_m
        ex2 = jnp.sum(acc * acc, axis=0, keepdims=True) * inv_m
        var = jnp.maximum(ex2 - mean * mean, 0.0)
        scale = jax.lax.rsqrt(var + EPS) * g_ref[...]
        return jnp.maximum((acc - mean) * scale + be_ref[...], 0.0)

    # ---- conv1: 3x3 / padding=1 as ONE im2col matmul (K = 9*Cin) ----------------------
    zero_halo(pad1_ref, Cin)
    pad1_ref[:, 1:Hp + 1, 1:Wp + 1, :] = p_ref[...]
    col1 = im2col(pad1_ref, col1_ref, Cin)
    acc1 = jnp.dot(col1, w1_ref[...], preferred_element_type=jnp.float32)   # (M, Cm_p)
    y1 = bn_relu(acc1, g1_ref, be1_ref)                                     # (M, Cm_p)

    # ---- conv1 epilogue fused directly into conv2's padded input ----------------------
    zero_halo(pad2_ref, Cm_p)
    pad2_ref[:, 1:Hp + 1, 1:Wp + 1, :] = y1.reshape(B, Hp, Wp, Cm_p)

    # ---- conv2: ONE im2col matmul (K = 9*Cm_p, lane-dense) -----------------------------
    col2 = im2col(pad2_ref, col2_ref, Cm_p)
    acc2 = jnp.dot(col2, w2_ref[...], preferred_element_type=jnp.float32)   # (M, Co_p)
    o_ref[...] = bn_relu(acc2, g2_ref, be2_ref).astype(o_ref.dtype)


def _round_up(n, m):
    return ((n + m - 1) // m) * m


@jax.jit
def down_pallas(x_nchw, w1, b1, g1, be1, w2, b2, g2, be2):
    """x_nchw: (B, Cin, H, W) -> (B, Cout, H/2, W/2), matching PyTorch Down (train-mode BN)."""
    del b1, b2   # conv bias is a mathematical no-op under train-mode BatchNorm
    B, Cin, H, W = x_nchw.shape
    Hp, Wp = H // 2, W // 2
    M = B * Hp * Wp
    Cm, Co = w1.shape[-1], w2.shape[-1]
    Cm_p, Co_p = _round_up(Cm, 128), _round_up(Co, 128)

    # glue: NCHW -> NHWC + 2x2 max-pool (XLA fuses transpose+reduce); the kernel's input
    # is already the pooled tensor -> 4x less HBM/VMEM input traffic than window-expansion.
    x_nhwc = jnp.transpose(x_nchw, (0, 2, 3, 1))
    pooled = jnp.max(x_nhwc.reshape(B, Hp, 2, Wp, 2, Cin), axis=(2, 4))     # (B,Hp,Wp,Cin)

    # weights HWIO (3,3,Ci,Co) -> im2col form (9*Ci, Co); channel dims zero-padded to 128 lanes.
    w1m = jnp.pad(w1, ((0, 0), (0, 0), (0, 0), (0, Cm_p - Cm))).reshape(9 * Cin, Cm_p)
    w2m = jnp.pad(w2, ((0, 0), (0, 0), (0, Cm_p - Cm), (0, Co_p - Co))).reshape(9 * Cm_p, Co_p)
    g1p = jnp.pad(g1.reshape(1, -1), ((0, 0), (0, Cm_p - Cm)))
    be1p = jnp.pad(be1.reshape(1, -1), ((0, 0), (0, Cm_p - Cm)))
    g2p = jnp.pad(g2.reshape(1, -1), ((0, 0), (0, Co_p - Co)))
    be2p = jnp.pad(be2.reshape(1, -1), ((0, 0), (0, Co_p - Co)))

    flops = 2 * M * 9 * Cin * Cm_p + 2 * M * 9 * Cm_p * Co_p
    bytes_accessed = 4 * (pooled.size + w1m.size + w2m.size + M * Co_p)

    vmem = pl.BlockSpec(memory_space=pltpu.MemorySpace.VMEM)
    out2d = pl.pallas_call(
        _down_kernel,
        out_shape=jax.ShapeDtypeStruct((M, Co_p), jnp.float32),
        in_specs=[vmem] * 7,
        out_specs=vmem,
        scratch_shapes=[
            pltpu.VMEM((B, Hp + 2, Wp + 2, Cin), jnp.float32),    # pad1 (conv1 padded input)
            pltpu.VMEM((B, Hp, Wp, 9 * Cin), jnp.float32),        # col1 (conv1 im2col)
            pltpu.VMEM((B, Hp + 2, Wp + 2, Cm_p), jnp.float32),   # pad2 (conv2 padded input)
            pltpu.VMEM((B, Hp, Wp, 9 * Cm_p), jnp.float32),       # col2 (conv2 im2col)
        ],
        compiler_params=pltpu.CompilerParams(vmem_limit_bytes=32 * 1024 * 1024),
        cost_estimate=pl.CostEstimate(flops=flops,
                                      transcendentals=Cm_p + Co_p,
                                      bytes_accessed=bytes_accessed),
    )(pooled, w1m, g1p, be1p, w2m, g2p, be2p)

    out = out2d.reshape(B, Hp, Wp, Co_p)[..., :Co]    # drop the lane-padding channels
    return jnp.transpose(out, (0, 3, 1, 2))           # back to NCHW


def down_reference(x_nchw, w1, b1, g1, be1, w2, b2, g2, be2):
    """Pure-JAX reference (same semantics as PyTorch Down in training mode)."""
    x = jnp.transpose(x_nchw, (0, 2, 3, 1))
    B, H, W, C = x.shape
    h = x.reshape(B, H // 2, 2, W // 2, 2, C).max(axis=(2, 4))

    def block(h, w, b, g, be):
        y = jax.lax.conv_general_dilated(
            h, w, window_strides=(1, 1), padding="SAME",
            dimension_numbers=("NHWC", "HWIO", "NHWC"),
            precision=jax.lax.Precision.HIGHEST) + b.reshape(-1)
        m = y.mean(axis=(0, 1, 2))
        v = ((y - m) ** 2).mean(axis=(0, 1, 2))
        y = (y - m) * jax.lax.rsqrt(v + EPS) * g.reshape(-1) + be.reshape(-1)
        return jnp.maximum(y, 0.0)

    h = block(h, w1, b1, g1, be1)
    h = block(h, w2, b2, g2, be2)
    return jnp.transpose(h, (0, 3, 1, 2))


if __name__ == "__main__":
    B, Cin, H, W = 2, 4, 16, 16
    Cout = 8            # DoubleConv(in=4, out=8): mid == out == 8
    Cm = Cout

    key = jax.random.PRNGKey(0)
    k = jax.random.split(key, 5)
    x = jax.random.normal(k[0], (B, Cin, H, W), jnp.float32)

    # Conv weights in HWIO; PyTorch-default BatchNorm: gamma=1, beta=0.
    w1 = 0.2 * jax.random.normal(k[1], (3, 3, Cin, Cm), jnp.float32)
    b1 = 0.1 * jax.random.normal(k[2], (Cm,), jnp.float32)
    g1 = jnp.ones((Cm,), jnp.float32)
    be1 = jnp.zeros((Cm,), jnp.float32)

    w2 = 0.2 * jax.random.normal(k[3], (3, 3, Cm, Cout), jnp.float32)
    b2 = 0.1 * jax.random.normal(k[4], (Cout,), jnp.float32)
    g2 = jnp.ones((Cout,), jnp.float32)
    be2 = jnp.zeros((Cout,), jnp.float32)

    out = down_pallas(x, w1, b1, g1, be1, w2, b2, g2, be2)
    out = jax.block_until_ready(out)

    ref = down_reference(x, w1, b1, g1, be1, w2, b2, g2, be2)
    max_err = float(jnp.max(jnp.abs(out - ref)))
    assert out.shape == (B, Cout, H // 2, W // 2), out.shape
    assert max_err < 1e-2, f"max abs error {max_err}"

    print("KERNEL_OK")
</pallas_src>

<mosaic_0001>
module attributes {stable_mosaic.version = 11 : i64} {
  func.func @_down_kernel(%arg0: memref<2x8x8x4xf32, #tpu.memory_space<vmem>>, %arg1: memref<36x128xf32, #tpu.memory_space<vmem>>, %arg2: memref<1x128xf32, #tpu.memory_space<vmem>>, %arg3: memref<1x128xf32, #tpu.memory_space<vmem>>, %arg4: memref<1152x128xf32, #tpu.memory_space<vmem>>, %arg5: memref<1x128xf32, #tpu.memory_space<vmem>>, %arg6: memref<1x128xf32, #tpu.memory_space<vmem>>, %arg7: memref<128x128xf32, #tpu.memory_space<vmem>>, %arg8: memref<2x10x10x4xf32, #tpu.memory_space<vmem>>, %arg9: memref<2x8x8x36xf32, #tpu.memory_space<vmem>>, %arg10: memref<2x10x10x128xf32, #tpu.memory_space<vmem>>, %arg11: memref<2x8x8x1152xf32, #tpu.memory_space<vmem>>) attributes {dimension_semantics = [], scalar_prefetch = 0 : i64, scratch_operands = 4 : i64, tpu.core_type = #tpu.core_type<tc>} {
    %cst = arith.constant 0.000000e+00 : f32
    %0 = vector.broadcast %cst : f32 to vector<2x1x10x4xf32>
    %cst_0 = arith.constant 0.000000e+00 : f32
    %1 = vector.broadcast %cst_0 : f32 to vector<2x10x1x4xf32>
    %c0 = arith.constant 0 : index
    %c0_1 = arith.constant 0 : index
    %c0_2 = arith.constant 0 : index
    %c0_3 = arith.constant 0 : index
    %2 = vector.load %arg8[%c0, %c0_1, %c0_2, %c0_3] : memref<2x10x10x4xf32, #tpu.memory_space<vmem>>, vector<2x1x10x4xf32>
    tpu.vector_store %arg8[%c0, %c0_1, %c0_2, %c0_3], %0 {strides = array<i32>} : memref<2x10x10x4xf32, #tpu.memory_space<vmem>>, vector<2x1x10x4xf32>,
    %c0_4 = arith.constant 0 : index
    %c9 = arith.constant 9 : index
    %c0_5 = arith.constant 0 : index
    %c0_6 = arith.constant 0 : index
    %3 = vector.load %arg8[%c0_4, %c9, %c0_5, %c0_6] : memref<2x10x10x4xf32, #tpu.memory_space<vmem>>, vector<2x1x10x4xf32>
    tpu.vector_store %arg8[%c0_4, %c9, %c0_5, %c0_6], %0 {strides = array<i32>} : memref<2x10x10x4xf32, #tpu.memory_space<vmem>>, vector<2x1x10x4xf32>,
    %c0_7 = arith.constant 0 : index
    %c0_8 = arith.constant 0 : index
    %c0_9 = arith.constant 0 : index
    %c0_10 = arith.constant 0 : index
    %4 = vector.load %arg8[%c0_7, %c0_8, %c0_9, %c0_10] : memref<2x10x10x4xf32, #tpu.memory_space<vmem>>, vector<2x10x1x4xf32>
    tpu.vector_store %arg8[%c0_7, %c0_8, %c0_9, %c0_10], %1 {strides = array<i32>} : memref<2x10x10x4xf32, #tpu.memory_space<vmem>>, vector<2x10x1x4xf32>,
    %c0_11 = arith.constant 0 : index
    %c0_12 = arith.constant 0 : index
    %c9_13 = arith.constant 9 : index
    %c0_14 = arith.constant 0 : index
    %5 = vector.load %arg8[%c0_11, %c0_12, %c9_13, %c0_14] : memref<2x10x10x4xf32, #tpu.memory_space<vmem>>, vector<2x10x1x4xf32>
    tpu.vector_store %arg8[%c0_11, %c0_12, %c9_13, %c0_14], %1 {strides = array<i32>} : memref<2x10x10x4xf32, #tpu.memory_space<vmem>>, vector<2x10x1x4xf32>,
    %c0_15 = arith.constant 0 : index
    %c0_16 = arith.constant 0 : index
    %c0_17 = arith.constant 0 : index
    %c0_18 = arith.constant 0 : index
    %6 = vector.load %arg0[%c0_15, %c0_16, %c0_17, %c0_18] : memref<2x8x8x4xf32, #tpu.memory_space<vmem>>, vector<2x8x8x4xf32>
    %c0_19 = arith.constant 0 : index
    %c1 = arith.constant 1 : index
    %c1_20 = arith.constant 1 : index
    %c0_21 = arith.constant 0 : index
    %7 = vector.load %arg8[%c0_19, %c1, %c1_20, %c0_21] : memref<2x10x10x4xf32, #tpu.memory_space<vmem>>, vector<2x8x8x4xf32>
    tpu.vector_store %arg8[%c0_19, %c1, %c1_20, %c0_21], %6 {strides = array<i32>} : memref<2x10x10x4xf32, #tpu.memory_space<vmem>>, vector<2x8x8x4xf32>,
    %c0_22 = arith.constant 0 : index
    %c0_23 = arith.constant 0 : index
    %c0_24 = arith.constant 0 : index
    %c0_25 = arith.constant 0 : index
    %8 = vector.load %arg8[%c0_22, %c0_23, %c0_24, %c0_25] : memref<2x10x10x4xf32, #tpu.memory_space<vmem>>, vector<2x8x8x4xf32>
    %c0_26 = arith.constant 0 : index
    %c0_27 = arith.constant 0 : index
    %c0_28 = arith.constant 0 : index
    %c0_29 = arith.constant 0 : index
    %9 = vector.load %arg9[%c0_26, %c0_27, %c0_28, %c0_29] : memref<2x8x8x36xf32, #tpu.memory_space<vmem>>, vector<2x8x8x4xf32>
    tpu.vector_store %arg9[%c0_26, %c0_27, %c0_28, %c0_29], %8 {strides = array<i32>} : memref<2x8x8x36xf32, #tpu.memory_space<vmem>>, vector<2x8x8x4xf32>,
    %c0_30 = arith.constant 0 : index
    %c0_31 = arith.constant 0 : index
    %c1_32 = arith.constant 1 : index
    %c0_33 = arith.constant 0 : index
    %10 = vector.load %arg8[%c0_30, %c0_31, %c1_32, %c0_33] : memref<2x10x10x4xf32, #tpu.memory_space<vmem>>, vector<2x8x8x4xf32>
    %c0_34 = arith.constant 0 : index
    %c0_35 = arith.constant 0 : index
    %c0_36 = arith.constant 0 : index
    %c4 = arith.constant 4 : index
    %11 = vector.load %arg9[%c0_34, %c0_35, %c0_36, %c4] : memref<2x8x8x36xf32, #tpu.memory_space<vmem>>, vector<2x8x8x4xf32>
    tpu.vector_store %arg9[%c0_34, %c0_35, %c0_36, %c4], %10 {strides = array<i32>} : memref<2x8x8x36xf32, #tpu.memory_space<vmem>>, vector<2x8x8x4xf32>,
    %c0_37 = arith.constant 0 : index
    %c0_38 = arith.constant 0 : index
    %c2 = arith.constant 2 : index
    %c0_39 = arith.constant 0 : index
    %12 = vector.load %arg8[%c0_37, %c0_38, %c2, %c0_39] : memref<2x10x10x4xf32, #tpu.memory_space<vmem>>, vector<2x8x8x4xf32>
    %c0_40 = arith.constant 0 : index
    %c0_41 = arith.constant 0 : index
    %c0_42 = arith.constant 0 : index
    %c8 = arith.constant 8 : index
    %13 = vector.load %arg9[%c0_40, %c0_41, %c0_42, %c8] : memref<2x8x8x36xf32, #tpu.memory_space<vmem>>, vector<2x8x8x4xf32>
    tpu.vector_store %arg9[%c0_40, %c0_41, %c0_42, %c8], %12 {strides = array<i32>} : memref<2x8x8x36xf32, #tpu.memory_space<vmem>>, vector<2x8x8x4xf32>,
    %c0_43 = arith.constant 0 : index
    %c1_44 = arith.constant 1 : index
    %c0_45 = arith.constant 0 : index
    %c0_46 = arith.constant 0 : index
    %14 = vector.load %arg8[%c0_43, %c1_44, %c0_45, %c0_46] : memref<2x10x10x4xf32, #tpu.memory_space<vmem>>, vector<2x8x8x4xf32>
    %c0_47 = arith.constant 0 : index
    %c0_48 = arith.constant 0 : index
    %c0_49 = arith.constant 0 : index
    %c12 = arith.constant 12 : index
    %15 = vector.load %arg9[%c0_47, %c0_48, %c0_49, %c12] : memref<2x8x8x36xf32, #tpu.memory_space<vmem>>, vector<2x8x8x4xf32>
    tpu.vector_store %arg9[%c0_47, %c0_48, %c0_49, %c12], %14 {strides = array<i32>} : memref<2x8x8x36xf32, #tpu.memory_space<vmem>>, vector<2x8x8x4xf32>,
    %c0_50 = arith.constant 0 : index
    %c1_51 = arith.constant 1 : index
    %c1_52 = arith.constant 1 : index
    %c0_53 = arith.constant 0 : index
    %16 = vector.load %arg8[%c0_50, %c1_51, %c1_52, %c0_53] : memref<2x10x10x4xf32, #tpu.memory_space<vmem>>, vector<2x8x8x4xf32>
    %c0_54 = arith.constant 0 : index
    %c0_55 = arith.constant 0 : index
    %c0_56 = arith.constant 0 : index
    %c16 = arith.constant 16 : index
    %17 = vector.load %arg9[%c0_54, %c0_55, %c0_56, %c16] : memref<2x8x8x36xf32, #tpu.memory_space<vmem>>, vector<2x8x8x4xf32>
    tpu.vector_store %arg9[%c0_54, %c0_55, %c0_56, %c16], %16 {strides = array<i32>} : memref<2x8x8x36xf32, #tpu.memory_space<vmem>>, vector<2x8x8x4xf32>,
    %c0_57 = arith.constant 0 : index
    %c1_58 = arith.constant 1 : index
    %c2_59 = arith.constant 2 : index
    %c0_60 = arith.constant 0 : index
    %18 = vector.load %arg8[%c0_57, %c1_58, %c2_59, %c0_60] : memref<2x10x10x4xf32, #tpu.memory_space<vmem>>, vector<2x8x8x4xf32>
    %c0_61 = arith.constant 0 : index
    %c0_62 = arith.constant 0 : index
    %c0_63 = arith.constant 0 : index
    %c20 = arith.constant 20 : index
    %19 = vector.load %arg9[%c0_61, %c0_62, %c0_63, %c20] : memref<2x8x8x36xf32, #tpu.memory_space<vmem>>, vector<2x8x8x4xf32>
    tpu.vector_store %arg9[%c0_61, %c0_62, %c0_63, %c20], %18 {strides = array<i32>} : memref<2x8x8x36xf32, #tpu.memory_space<vmem>>, vector<2x8x8x4xf32>,
    %c0_64 = arith.constant 0 : index
    %c2_65 = arith.constant 2 : index
    %c0_66 = arith.constant 0 : index
    %c0_67 = arith.constant 0 : index
    %20 = vector.load %arg8[%c0_64, %c2_65, %c0_66, %c0_67] : memref<2x10x10x4xf32, #tpu.memory_space<vmem>>, vector<2x8x8x4xf32>
    %c0_68 = arith.constant 0 : index
    %c0_69 = arith.constant 0 : index
    %c0_70 = arith.constant 0 : index
    %c24 = arith.constant 24 : index
    %21 = vector.load %arg9[%c0_68, %c0_69, %c0_70, %c24] : memref<2x8x8x36xf32, #tpu.memory_space<vmem>>, vector<2x8x8x4xf32>
    tpu.vector_store %arg9[%c0_68, %c0_69, %c0_70, %c24], %20 {strides = array<i32>} : memref<2x8x8x36xf32, #tpu.memory_space<vmem>>, vector<2x8x8x4xf32>,
    %c0_71 = arith.constant 0 : index
    %c2_72 = arith.constant 2 : index
    %c1_73 = arith.constant 1 : index
    %c0_74 = arith.constant 0 : index
    %22 = vector.load %arg8[%c0_71, %c2_72, %c1_73, %c0_74] : memref<2x10x10x4xf32, #tpu.memory_space<vmem>>, vector<2x8x8x4xf32>
    %c0_75 = arith.constant 0 : index
    %c0_76 = arith.constant 0 : index
    %c0_77 = arith.constant 0 : index
    %c28 = arith.constant 28 : index
    %23 = vector.load %arg9[%c0_75, %c0_76, %c0_77, %c28] : memref<2x8x8x36xf32, #tpu.memory_space<vmem>>, vector<2x8x8x4xf32>
    tpu.vector_store %arg9[%c0_75, %c0_76, %c0_77, %c28], %22 {strides = array<i32>} : memref<2x8x8x36xf32, #tpu.memory_space<vmem>>, vector<2x8x8x4xf32>,
    %c0_78 = arith.constant 0 : index
    %c2_79 = arith.constant 2 : index
    %c2_80 = arith.constant 2 : index
    %c0_81 = arith.constant 0 : index
    %24 = vector.load %arg8[%c0_78, %c2_79, %c2_80, %c0_81] : memref<2x10x10x4xf32, #tpu.memory_space<vmem>>, vector<2x8x8x4xf32>
    %c0_82 = arith.constant 0 : index
    %c0_83 = arith.constant 0 : index
    %c0_84 = arith.constant 0 : index
    %c32 = arith.constant 32 : index
    %25 = vector.load %arg9[%c0_82, %c0_83, %c0_84, %c32] : memref<2x8x8x36xf32, #tpu.memory_space<vmem>>, vector<2x8x8x4xf32>
    tpu.vector_store %arg9[%c0_82, %c0_83, %c0_84, %c32], %24 {strides = array<i32>} : memref<2x8x8x36xf32, #tpu.memory_space<vmem>>, vector<2x8x8x4xf32>,
    %c0_85 = arith.constant 0 : index
    %c0_86 = arith.constant 0 : index
    %c0_87 = arith.constant 0 : index
    %c0_88 = arith.constant 0 : index
    %26 = vector.load %arg9[%c0_85, %c0_86, %c0_87, %c0_88] : memref<2x8x8x36xf32, #tpu.memory_space<vmem>>, vector<2x8x8x36xf32>
    %27 = vector.shape_cast %26 : vector<2x8x8x36xf32> to vector<128x36xf32>
    %c0_89 = arith.constant 0 : index
    %c0_90 = arith.constant 0 : index
    %28 = vector.load %arg1[%c0_89, %c0_90] : memref<36x128xf32, #tpu.memory_space<vmem>>, vector<36x128xf32>
    %cst_91 = arith.constant dense<0.000000e+00> : vector<128x128xf32>
    %29 = tpu.matmul %27, %28, %cst_91 {dimension_numbers = #tpu.dot_dimension_numbers<[1], [0], [0], [1], [0, 0, 1, 1], [], []>} : vector<128x36xf32>, vector<36x128xf32>, vector<128x128xf32> -> vector<128x128xf32>
    %cst_92 = arith.constant dense<0.000000e+00> : vector<128xf32>
    %30 = vector.multi_reduction <add>, %29, %cst_92 [0] : vector<128x128xf32> to vector<128xf32>
    %31 = vector.shape_cast %30 : vector<128xf32> to vector<1x128xf32>
    %cst_93 = arith.constant 7.812500e-03 : f32
    %32 = vector.broadcast %cst_93 : f32 to vector<1x128xf32>
    %33 = arith.mulf %31, %32 : vector<1x128xf32>
    %34 = arith.mulf %29, %29 : vector<128x128xf32>
    %cst_94 = arith.constant dense<0.000000e+00> : vector<128xf32>
    %35 = vector.multi_reduction <add>, %34, %cst_94 [0] : vector<128x128xf32> to vector<128xf32>
    %36 = vector.shape_cast %35 : vector<128xf32> to vector<1x128xf32>
    %cst_95 = arith.constant 7.812500e-03 : f32
    %37 = vector.broadcast %cst_95 : f32 to vector<1x128xf32>
    %38 = arith.mulf %36, %37 : vector<1x128xf32>
    %39 = arith.mulf %33, %33 : vector<1x128xf32>
    %40 = arith.subf %38, %39 : vector<1x128xf32>
    %cst_96 = arith.constant 0.000000e+00 : f32
    %41 = vector.broadcast %cst_96 : f32 to vector<1x128xf32>
    %42 = arith.maximumf %40, %41 : vector<1x128xf32>
    %cst_97 = arith.constant 9.99999974E-6 : f32
    %43 = vector.broadcast %cst_97 : f32 to vector<1x128xf32>
    %44 = arith.addf %42, %43 : vector<1x128xf32>
    %45 = math.rsqrt %44 : vector<1x128xf32>
    %c0_98 = arith.constant 0 : index
    %c0_99 = arith.constant 0 : index
    %46 = vector.load %arg2[%c0_98, %c0_99] : memref<1x128xf32, #tpu.memory_space<vmem>>, vector<1x128xf32>
    %47 = arith.mulf %45, %46 : vector<1x128xf32>
    %48 = vector.broadcast %33 : vector<1x128xf32> to vector<128x128xf32>
    %49 = arith.subf %29, %48 : vector<128x128xf32>
    %50 = vector.broadcast %47 : vector<1x128xf32> to vector<128x128xf32>
    %51 = arith.mulf %49, %50 : vector<128x128xf32>
    %c0_100 = arith.constant 0 : index
    %c0_101 = arith.constant 0 : index
    %52 = vector.load %arg3[%c0_100, %c0_101] : memref<1x128xf32, #tpu.memory_space<vmem>>, vector<1x128xf32>
    %53 = vector.broadcast %52 : vector<1x128xf32> to vector<128x128xf32>
    %54 = arith.addf %51, %53 : vector<128x128xf32>
    %cst_102 = arith.constant 0.000000e+00 : f32
    %55 = vector.broadcast %cst_102 : f32 to vector<128x128xf32>
    %56 = arith.maximumf %54, %55 : vector<128x128xf32>
    %cst_103 = arith.constant 0.000000e+00 : f32
    %57 = vector.broadcast %cst_103 : f32 to vector<2x1x10x128xf32>
    %cst_104 = arith.constant 0.000000e+00 : f32
    %58 = vector.broadcast %cst_104 : f32 to vector<2x10x1x128xf32>
    %c0_105 = arith.constant 0 : index
    %c0_106 = arith.constant 0 : index
    %c0_107 = arith.constant 0 : index
    %c0_108 = arith.constant 0 : index
    %59 = vector.load %arg10[%c0_105, %c0_106, %c0_107, %c0_108] : memref<2x10x10x128xf32, #tpu.memory_space<vmem>>, vector<2x1x10x128xf32>
    tpu.vector_store %arg10[%c0_105, %c0_106, %c0_107, %c0_108], %57 {strides = array<i32>} : memref<2x10x10x128xf32, #tpu.memory_space<vmem>>, vector<2x1x10x128xf32>,
    %c0_109 = arith.constant 0 : index
    %c9_110 = arith.constant 9 : index
    %c0_111 = arith.constant 0 : index
    %c0_112 = arith.constant 0 : index
    %60 = vector.load %arg10[%c0_109, %c9_110, %c0_111, %c0_112] : memref<2x10x10x128xf32, #tpu.memory_space<vmem>>, vector<2x1x10x128xf32>
    tpu.vector_store %arg10[%c0_109, %c9_110, %c0_111, %c0_112], %57 {strides = array<i32>} : memref<2x10x10x128xf32, #tpu.memory_space<vmem>>, vector<2x1x10x128xf32>,
    %c0_113 = arith.constant 0 : index
    %c0_114 = arith.constant 0 : index
    %c0_115 = arith.constant 0 : index
    %c0_116 = arith.constant 0 : index
    %61 = vector.load %arg10[%c0_113, %c0_114, %c0_115, %c0_116] : memref<2x10x10x128xf32, #tpu.memory_space<vmem>>, vector<2x10x1x128xf32>
    tpu.vector_store %arg10[%c0_113, %c0_114, %c0_115, %c0_116], %58 {strides = array<i32>} : memref<2x10x10x128xf32, #tpu.memory_space<vmem>>, vector<2x10x1x128xf32>,
    %c0_117 = arith.constant 0 : index
    %c0_118 = arith.constant 0 : index
    %c9_119 = arith.constant 9 : index
    %c0_120 = arith.constant 0 : index
    %62 = vector.load %arg10[%c0_117, %c0_118, %c9_119, %c0_120] : memref<2x10x10x128xf32, #tpu.memory_space<vmem>>, vector<2x10x1x128xf32>
    tpu.vector_store %arg10[%c0_117, %c0_118, %c9_119, %c0_120], %58 {strides = array<i32>} : memref<2x10x10x128xf32, #tpu.memory_space<vmem>>, vector<2x10x1x128xf32>,
    %63 = vector.shape_cast %56 : vector<128x128xf32> to vector<2x8x8x128xf32>
    %c0_121 = arith.constant 0 : index
    %c1_122 = arith.constant 1 : index
    %c1_123 = arith.constant 1 : index
    %c0_124 = arith.constant 0 : index
    %64 = vector.load %arg10[%c0_121, %c1_122, %c1_123, %c0_124] : memref<2x10x10x128xf32, #tpu.memory_space<vmem>>, vector<2x8x8x128xf32>
    tpu.vector_store %arg10[%c0_121, %c1_122, %c1_123, %c0_124], %63 {strides = array<i32>} : memref<2x10x10x128xf32, #tpu.memory_space<vmem>>, vector<2x8x8x128xf32>,
    %c0_125 = arith.constant 0 : index
    %c0_126 = arith.constant 0 : index
    %c0_127 = arith.constant 0 : index
    %c0_128 = arith.constant 0 : index
    %65 = vector.load %arg10[%c0_125, %c0_126, %c0_127, %c0_128] : memref<2x10x10x128xf32, #tpu.memory_space<vmem>>, vector<2x8x8x128xf32>
    %c0_129 = arith.constant 0 : index
    %c0_130 = arith.constant 0 : index
    %c0_131 = arith.constant 0 : index
    %c0_132 = arith.constant 0 : index
    %66 = vector.load %arg11[%c0_129, %c0_130, %c0_131, %c0_132] : memref<2x8x8x1152xf32, #tpu.memory_space<vmem>>, vector<2x8x8x128xf32>
    tpu.vector_store %arg11[%c0_129, %c0_130, %c0_131, %c0_132], %65 {strides = array<i32>} : memref<2x8x8x1152xf32, #tpu.memory_space<vmem>>, vector<2x8x8x128xf32>,
    %c0_133 = arith.constant 0 : index
    %c0_134 = arith.constant 0 : index
    %c1_135 = arith.constant 1 : index
    %c0_136 = arith.constant 0 : index
    %67 = vector.load %arg10[%c0_133, %c0_134, %c1_135, %c0_136] : memref<2x10x10x128xf32, #tpu.memory_space<vmem>>, vector<2x8x8x128xf32>
    %c0_137 = arith.constant 0 : index
    %c0_138 = arith.constant 0 : index
    %c0_139 = arith.constant 0 : index
    %c128 = arith.constant 128 : index
    %68 = vector.load %arg11[%c0_137, %c0_138, %c0_139, %c128] : memref<2x8x8x1152xf32, #tpu.memory_space<vmem>>, vector<2x8x8x128xf32>
    tpu.vector_store %arg11[%c0_137, %c0_138, %c0_139, %c128], %67 {strides = array<i32>} : memref<2x8x8x1152xf32, #tpu.memory_space<vmem>>, vector<2x8x8x128xf32>,
    %c0_140 = arith.constant 0 : index
    %c0_141 = arith.constant 0 : index
    %c2_142 = arith.constant 2 : index
    %c0_143 = arith.constant 0 : index
    %69 = vector.load %arg10[%c0_140, %c0_141, %c2_142, %c0_143] : memref<2x10x10x128xf32, #tpu.memory_space<vmem>>, vector<2x8x8x128xf32>
    %c0_144 = arith.constant 0 : index
    %c0_145 = arith.constant 0 : index
    %c0_146 = arith.constant 0 : index
    %c256 = arith.constant 256 : index
    %70 = vector.load %arg11[%c0_144, %c0_145, %c0_146, %c256] : memref<2x8x8x1152xf32, #tpu.memory_space<vmem>>, vector<2x8x8x128xf32>
    tpu.vector_store %arg11[%c0_144, %c0_145, %c0_146, %c256], %69 {strides = array<i32>} : memref<2x8x8x1152xf32, #tpu.memory_space<vmem>>, vector<2x8x8x128xf32>,
    %c0_147 = arith.constant 0 : index
    %c1_148 = arith.constant 1 : index
    %c0_149 = arith.constant 0 : index
    %c0_150 = arith.constant 0 : index
    %71 = vector.load %arg10[%c0_147, %c1_148, %c0_149, %c0_150] : memref<2x10x10x128xf32, #tpu.memory_space<vmem>>, vector<2x8x8x128xf32>
    %c0_151 = arith.constant 0 : index
    %c0_152 = arith.constant 0 : index
    %c0_153 = arith.constant 0 : index
    %c384 = arith.constant 384 : index
    %72 = vector.load %arg11[%c0_151, %c0_152, %c0_153, %c384] : memref<2x8x8x1152xf32, #tpu.memory_space<vmem>>, vector<2x8x8x128xf32>
    tpu.vector_store %arg11[%c0_151, %c0_152, %c0_153, %c384], %71 {strides = array<i32>} : memref<2x8x8x1152xf32, #tpu.memory_space<vmem>>, vector<2x8x8x128xf32>,
    %c0_154 = arith.constant 0 : index
    %c1_155 = arith.constant 1 : index
    %c1_156 = arith.constant 1 : index
    %c0_157 = arith.constant 0 : index
    %73 = vector.load %arg10[%c0_154, %c1_155, %c1_156, %c0_157] : memref<2x10x10x128xf32, #tpu.memory_space<vmem>>, vector<2x8x8x128xf32>
    %c0_158 = arith.constant 0 : index
    %c0_159 = arith.constant 0 : index
    %c0_160 = arith.constant 0 : index
    %c512 = arith.constant 512 : index
    %74 = vector.load %arg11[%c0_158, %c0_159, %c0_160, %c512] : memref<2x8x8x1152xf32, #tpu.memory_space<vmem>>, vector<2x8x8x128xf32>
    tpu.vector_store %arg11[%c0_158, %c0_159, %c0_160, %c512], %73 {strides = array<i32>} : memref<2x8x8x1152xf32, #tpu.memory_space<vmem>>, vector<2x8x8x128xf32>,
    %c0_161 = arith.constant 0 : index
    %c1_162 = arith.constant 1 : index
    %c2_163 = arith.constant 2 : index
    %c0_164 = arith.constant 0 : index
    %75 = vector.load %arg10[%c0_161, %c1_162, %c2_163, %c0_164] : memref<2x10x10x128xf32, #tpu.memory_space<vmem>>, vector<2x8x8x128xf32>
    %c0_165 = arith.constant 0 : index
    %c0_166 = arith.constant 0 : index
    %c0_167 = arith.constant 0 : index
    %c640 = arith.constant 640 : index
    %76 = vector.load %arg11[%c0_165, %c0_166, %c0_167, %c640] : memref<2x8x8x1152xf32, #tpu.memory_space<vmem>>, vector<2x8x8x128xf32>
    tpu.vector_store %arg11[%c0_165, %c0_166, %c0_167, %c640], %75 {strides = array<i32>} : memref<2x8x8x1152xf32, #tpu.memory_space<vmem>>, vector<2x8x8x128xf32>,
    %c0_168 = arith.constant 0 : index
    %c2_169 = arith.constant 2 : index
    %c0_170 = arith.constant 0 : index
    %c0_171 = arith.constant 0 : index
    %77 = vector.load %arg10[%c0_168, %c2_169, %c0_170, %c0_171] : memref<2x10x10x128xf32, #tpu.memory_space<vmem>>, vector<2x8x8x128xf32>
    %c0_172 = arith.constant 0 : index
    %c0_173 = arith.constant 0 : index
    %c0_174 = arith.constant 0 : index
    %c768 = arith.constant 768 : index
    %78 = vector.load %arg11[%c0_172, %c0_173, %c0_174, %c768] : memref<2x8x8x1152xf32, #tpu.memory_space<vmem>>, vector<2x8x8x128xf32>
    tpu.vector_store %arg11[%c0_172, %c0_173, %c0_174, %c768], %77 {strides = array<i32>} : memref<2x8x8x1152xf32, #tpu.memory_space<vmem>>, vector<2x8x8x128xf32>,
    %c0_175 = arith.constant 0 : index
    %c2_176 = arith.constant 2 : index
    %c1_177 = arith.constant 1 : index
    %c0_178 = arith.constant 0 : index
    %79 = vector.load %arg10[%c0_175, %c2_176, %c1_177, %c0_178] : memref<2x10x10x128xf32, #tpu.memory_space<vmem>>, vector<2x8x8x128xf32>
    %c0_179 = arith.constant 0 : index
    %c0_180 = arith.constant 0 : index
    %c0_181 = arith.constant 0 : index
    %c896 = arith.constant 896 : index
    %80 = vector.load %arg11[%c0_179, %c0_180, %c0_181, %c896] : memref<2x8x8x1152xf32, #tpu.memory_space<vmem>>, vector<2x8x8x128xf32>
    tpu.vector_store %arg11[%c0_179, %c0_180, %c0_181, %c896], %79 {strides = array<i32>} : memref<2x8x8x1152xf32, #tpu.memory_space<vmem>>, vector<2x8x8x128xf32>,
    %c0_182 = arith.constant 0 : index
    %c2_183 = arith.constant 2 : index
    %c2_184 = arith.constant 2 : index
    %c0_185 = arith.constant 0 : index
    %81 = vector.load %arg10[%c0_182, %c2_183, %c2_184, %c0_185] : memref<2x10x10x128xf32, #tpu.memory_space<vmem>>, vector<2x8x8x128xf32>
    %c0_186 = arith.constant 0 : index
    %c0_187 = arith.constant 0 : index
    %c0_188 = arith.constant 0 : index
    %c1024 = arith.constant 1024 : index
    %82 = vector.load %arg11[%c0_186, %c0_187, %c0_188, %c1024] : memref<2x8x8x1152xf32, #tpu.memory_space<vmem>>, vector<2x8x8x128xf32>
    tpu.vector_store %arg11[%c0_186, %c0_187, %c0_188, %c1024], %81 {strides = array<i32>} : memref<2x8x8x1152xf32, #tpu.memory_space<vmem>>, vector<2x8x8x128xf32>,
    %c0_189 = arith.constant 0 : index
    %c0_190 = arith.constant 0 : index
    %c0_191 = arith.constant 0 : index
    %c0_192 = arith.constant 0 : index
    %83 = vector.load %arg11[%c0_189, %c0_190, %c0_191, %c0_192] : memref<2x8x8x1152xf32, #tpu.memory_space<vmem>>, vector<2x8x8x1152xf32>
    %84 = vector.shape_cast %83 : vector<2x8x8x1152xf32> to vector<128x1152xf32>
    %c0_193 = arith.constant 0 : index
    %c0_194 = arith.constant 0 : index
    %85 = vector.load %arg4[%c0_193, %c0_194] : memref<1152x128xf32, #tpu.memory_space<vmem>>, vector<1152x128xf32>
    %cst_195 = arith.constant dense<0.000000e+00> : vector<128x128xf32>
    %86 = tpu.matmul %84, %85, %cst_195 {dimension_numbers = #tpu.dot_dimension_numbers<[1], [0], [0], [1], [0, 0, 1, 1], [], []>} : vector<128x1152xf32>, vector<1152x128xf32>, vector<128x128xf32> -> vector<128x128xf32>
    %cst_196 = arith.constant dense<0.000000e+00> : vector<128xf32>
    %87 = vector.multi_reduction <add>, %86, %cst_196 [0] : vector<128x128xf32> to vector<128xf32>
    %88 = vector.shape_cast %87 : vector<128xf32> to vector<1x128xf32>
    %cst_197 = arith.constant 7.812500e-03 : f32
    %89 = vector.broadcast %cst_197 : f32 to vector<1x128xf32>
    %90 = arith.mulf %88, %89 : vector<1x128xf32>
    %91 = arith.mulf %86, %86 : vector<128x128xf32>
    %cst_198 = arith.constant dense<0.000000e+00> : vector<128xf32>
    %92 = vector.multi_reduction <add>, %91, %cst_198 [0] : vector<128x128xf32> to vector<128xf32>
    %93 = vector.shape_cast %92 : vector<128xf32> to vector<1x128xf32>
    %cst_199 = arith.constant 7.812500e-03 : f32
    %94 = vector.broadcast %cst_199 : f32 to vector<1x128xf32>
    %95 = arith.mulf %93, %94 : vector<1x128xf32>
    %96 = arith.mulf %90, %90 : vector<1x128xf32>
    %97 = arith.subf %95, %96 : vector<1x128xf32>
    %cst_200 = arith.constant 0.000000e+00 : f32
    %98 = vector.broadcast %cst_200 : f32 to vector<1x128xf32>
    %99 = arith.maximumf %97, %98 : vector<1x128xf32>
    %cst_201 = arith.constant 9.99999974E-6 : f32
    %100 = vector.broadcast %cst_201 : f32 to vector<1x128xf32>
    %101 = arith.addf %99, %100 : vector<1x128xf32>
    %102 = math.rsqrt %101 : vector<1x128xf32>
    %c0_202 = arith.constant 0 : index
    %c0_203 = arith.constant 0 : index
    %103 = vector.load %arg5[%c0_202, %c0_203] : memref<1x128xf32, #tpu.memory_space<vmem>>, vector<1x128xf32>
    %104 = arith.mulf %102, %103 : vector<1x128xf32>
    %105 = vector.broadcast %90 : vector<1x128xf32> to vector<128x128xf32>
    %106 = arith.subf %86, %105 : vector<128x128xf32>
    %107 = vector.broadcast %104 : vector<1x128xf32> to vector<128x128xf32>
    %108 = arith.mulf %106, %107 : vector<128x128xf32>
    %c0_204 = arith.constant 0 : index
    %c0_205 = arith.constant 0 : index
    %109 = vector.load %arg6[%c0_204, %c0_205] : memref<1x128xf32, #tpu.memory_space<vmem>>, vector<1x128xf32>
    %110 = vector.broadcast %109 : vector<1x128xf32> to vector<128x128xf32>
    %111 = arith.addf %108, %110 : vector<128x128xf32>
    %cst_206 = arith.constant 0.000000e+00 : f32
    %112 = vector.broadcast %cst_206 : f32 to vector<128x128xf32>
    %113 = arith.maximumf %111, %112 : vector<128x128xf32>
    %c0_207 = arith.constant 0 : index
    %c0_208 = arith.constant 0 : index
    %114 = vector.load %arg7[%c0_207, %c0_208] : memref<128x128xf32, #tpu.memory_space<vmem>>, vector<128x128xf32>
    tpu.vector_store %arg7[%c0_207, %c0_208], %113 {strides = array<i32>} : memref<128x128xf32, #tpu.memory_space<vmem>>, vector<128x128xf32>,
    return
  }
}

</mosaic_0001>

<bundles_post_ra>
// kernel: down_pallas.1
= control target key start
LH: loop header
LB: loop body
LE: loop exit
PB: predicated region body
PF: predicated region fallthrough
CT: control target
= control target key end

     0   :  { %vm26_vm0 = vcmask 31744   ;;  %vm28_vm1 = vcmask 25600   ;;  %vm37_vm2 = vcmask 24576   ;;  %v3490_v0 = vmov 0.0   ;;  %s3491_s21 = smov 4   ;;  %s3492_s22 = smov 8   ;;  %s5127_s0 = inlined_call_operand.vmem [shape: f32[2,8,8,4], index: 0, kind: input, shape index: {}]   ;;  %s5128_s1 = inlined_call_operand.vmem [shape: f32[36,128], index: 1, kind: input, shape index: {}]   ;;  %s5129_s4 = inlined_call_operand.vmem [shape: f32[1152,128], index: 4, kind: input, shape index: {}]   ;;  %s5130_s2 = inlined_call_operand.vmem [shape: f32[1,128], index: 2, kind: input, shape index: {}]   ;;  %s5131_s3 = inlined_call_operand.vmem [shape: f32[1,128], index: 3, kind: input, shape index: {}]   ;;  %s5132_s5 = inlined_call_operand.vmem [shape: f32[1,128], index: 5, kind: input, shape index: {}]   ;;  %s5133_s6 = inlined_call_operand.vmem [shape: f32[1,128], index: 6, kind: input, shape index: {}]   ;;  %s5134_s7 = inlined_call_operand.vmem [shape: f32[128,128], index: 7, kind: output, shape index: {}]  }
   0x1   :  { %27 = vst.msk [vmem:[#allocation2] sm:$0xff] %vm26_vm0, %v3490_v0  ;;  %30 = vst.msk [vmem:[#allocation2 + $0xa0] sm:$0xff] %vm26_vm0, %v3490_v0  ;;  %v78_v1 = vld [vmem:[%s5127_s0] sm:$0xff]  ;;  %v79_v2 = vld [vmem:[%s5127_s0 + $0x8] sm:$0xff]  ;;  %s3493_s23 = smov 12   ;;  %s3494_s26 = smov 16  }
   0x2   :  { %29 = vst.msk [vmem:[#allocation2 + $0x8] sm:$0x3] %vm28_vm1, %v3490_v0  ;;  %31 = vst.msk [vmem:[#allocation2 + $0xa8] sm:$0x3] %vm28_vm1, %v3490_v0  ;;  %v80_v3 = vld [vmem:[%s5127_s0 + $0x10] sm:$0xff]  ;;  %v81_v4 = vld [vmem:[%s5127_s0 + $0x18] sm:$0xff] }
   0x3   :  { %33 = vst.msk [vmem:[#allocation2 + $0x90] sm:$0xff] %vm26_vm0, %v3490_v0  ;;  %35 = vst.msk [vmem:[#allocation2 + $0x130] sm:$0xff] %vm26_vm0, %v3490_v0  ;;  %v82_v5 = vld [vmem:[%s5127_s0 + $0x20] sm:$0xff]  ;;  %v83_v6 = vld [vmem:[%s5127_s0 + $0x28] sm:$0xff]  ;;  %s3495_s27 = smov 20   ;;  %s3496_s28 = smov 24  }
   0x4   :  { %34 = vst.msk [vmem:[#allocation2 + $0x98] sm:$0x3] %vm28_vm1, %v3490_v0  ;;  %36 = vst.msk [vmem:[#allocation2 + $0x138] sm:$0x3] %vm28_vm1, %v3490_v0  ;;  %v84_v7 = vld [vmem:[%s5127_s0 + $0x30] sm:$0xff]  ;;  %v85_v8 = vld [vmem:[%s5127_s0 + $0x38] sm:$0xff] }
   0x5   :  { %39 = vst.msk [vmem:[#allocation2 + $0x10] sm:$0x1] %vm37_vm2, %v3490_v0  ;;  %40 = vst.msk [vmem:[#allocation2 + $0x20] sm:$0x1] %vm37_vm2, %v3490_v0  ;;  %v86_v9 = vld [vmem:[%s5127_s0 + $0x40] sm:$0xff]  ;;  %v87_v10 = vld [vmem:[%s5127_s0 + $0x48] sm:$0xff] }
   0x6   :  { %41 = vst.msk [vmem:[#allocation2 + $0x30] sm:$0x1] %vm37_vm2, %v3490_v0  ;;  %42 = vst.msk [vmem:[#allocation2 + $0x40] sm:$0x1] %vm37_vm2, %v3490_v0  ;;  %v88_v26 = vld [vmem:[%s5127_s0 + $0x50] sm:$0xff]  ;;  %v89_v30 = vld [vmem:[%s5127_s0 + $0x58] sm:$0xff] }
   0x7   :  { %43 = vst.msk [vmem:[#allocation2 + $0x50] sm:$0x1] %vm37_vm2, %v3490_v0  ;;  %44 = vst.msk [vmem:[#allocation2 + $0x60] sm:$0x1] %vm37_vm2, %v3490_v0  ;;  %v936_v32 = vld [vmem:[%s5128_s1] sm:$0xff]  ;;  %v937_v33 = vld [vmem:[%s5128_s1 + $0x8] sm:$0xff] }
   0x8   :  { %45 = vst.msk [vmem:[#allocation2 + $0x70] sm:$0x1] %vm37_vm2, %v3490_v0  ;;  %46 = vst.msk [vmem:[#allocation2 + $0x80] sm:$0x1] %vm37_vm2, %v3490_v0  ;;  %v3293_v34 = vpack.c.bf16 %v937_v33, %v936_v32  ;;  %s3497_s12 = smov 28   ;;  %v938_v36 = vld [vmem:[%s5128_s1 + $0x10] sm:$0xff] }
   0x9   :  { %49 = vst.msk [vmem:[#allocation2 + $0xb0] sm:$0x1] %vm37_vm2, %v3490_v0  ;;  %50 = vst.msk [vmem:[#allocation2 + $0xc0] sm:$0x1] %vm37_vm2, %v3490_v0  ;;  %v143_v11 = vld [vmem:[#allocation2 + $0x1] sm:$0xff]  ;;  %v939_v37 = vld [vmem:[%s5128_s1 + $0x18] sm:$0xff] }
   0xa   :  { %51 = vst.msk [vmem:[#allocation2 + $0xd0] sm:$0x1] %vm37_vm2, %v3490_v0  ;;  %52 = vst.msk [vmem:[#allocation2 + $0xe0] sm:$0x1] %vm37_vm2, %v3490_v0  ;;  %175 = vrot.lane.b32.xlu0 %v143_v11, %s3491_s21  ;;  %3294 = vmatprep.subr.bf16.mxu0 %v3293_v34  ;;  %v3297_v38 = vpack.c.bf16 %v939_v37, %v938_v36  ;;  %s3498_s17 = smov 32   ;;  %vm990_vm3 = vcmask 1043456  }
   0xb   :  { %53 = vst.msk [vmem:[#allocation2 + $0xf0] sm:$0x1] %vm37_vm2, %v3490_v0  ;;  %54 = vst.msk [vmem:[#allocation2 + $0x100] sm:$0x1] %vm37_vm2, %v3490_v0  ;;  %3296 = vmatpush3.bf16.msra.mxu0 %v3293_v34  ;;  %v940_v40 = vld [vmem:[%s5128_s1 + $0x20] sm:$0xf] }
   0xc   :  { %55 = vst.msk [vmem:[#allocation2 + $0x110] sm:$0x1] %vm37_vm2, %v3490_v0  ;;  %56 = vst.msk [vmem:[#allocation2 + $0x120] sm:$0x1] %vm37_vm2, %v3490_v0  ;;  %3298 = vmatprep.subr.bf16.mxu0 %v3297_v38  ;;  %v90_v41 = vld [vmem:[%s5127_s0 + $0x60] sm:$0xff]  ;;  %v91_v45 = vld [vmem:[%s5127_s0 + $0x68] sm:$0xff] }
   0xd   :  { %59 = vst.msk [vmem:[#allocation2 + $0x19] sm:$0x1] %vm37_vm2, %v3490_v0  ;;  %60 = vst.msk [vmem:[#allocation2 + $0x29] sm:$0x1] %vm37_vm2, %v3490_v0  ;;  %v92_v49 = vld [vmem:[%s5127_s0 + $0x70] sm:$0xff]  ;;  %v93_v53 = vld [vmem:[%s5127_s0 + $0x78] sm:$0xff] }
   0xe   :  { %61 = vst.msk [vmem:[#allocation2 + $0x39] sm:$0x1] %vm37_vm2, %v3490_v0  ;;  %62 = vst.msk [vmem:[#allocation2 + $0x49] sm:$0x1] %vm37_vm2, %v3490_v0  ;;  %v151_v57 = vld [vmem:[#allocation2 + $0xa1] sm:$0xff]  ;;  %vm223_vm4 = vcmask 64544  }
   0xf   :  { %63 = vst.msk [vmem:[#allocation2 + $0x59] sm:$0x1] %vm37_vm2, %v3490_v0  ;;  %64 = vst.msk [vmem:[#allocation2 + $0x69] sm:$0x1] %vm37_vm2, %v3490_v0  ;;  %3300 = vmatpush3.bf16.msra.mxu0 %v3297_v38  ;;  %vm320_vm5 = vcmask 97344   ;;  %vm417_vm6 = vcmask 130144  }
  0x10   :  { %65 = vst.msk [vmem:[#allocation2 + $0x79] sm:$0x1] %vm37_vm2, %v3490_v0  ;;  %66 = vst.msk [vmem:[#allocation2 + $0x89] sm:$0x1] %vm37_vm2, %v3490_v0  ;;  %3211 = vmatprep.subr.msk.mxu0 %vm990_vm3, %v940_v40  ;;  %vm514_vm7 = vcmask 162944   ;;  %vm611_vm8 = vcmask 195744  }
  0x11   :  { %69 = vst.msk [vmem:[#allocation2 + $0xb9] sm:$0x1] %vm37_vm2, %v3490_v0  ;;  %70 = vst.msk [vmem:[#allocation2 + $0xc9] sm:$0x1] %vm37_vm2, %v3490_v0  ;;  %vm709_vm9 = vcmask 228544   ;;  %vm806_vm10 = vcmask 261344  }
  0x12   :  { %71 = vst.msk [vmem:[#allocation2 + $0xd9] sm:$0x1] %vm37_vm2, %v3490_v0  ;;  %72 = vst.msk [vmem:[#allocation2 + $0xe9] sm:$0x1] %vm37_vm2, %v3490_v0  ;;  %vm903_vm11 = vcmask 294144   ;;  %vm941_vm12 = vcmask 293888  }
  0x13   :  { %73 = vst.msk [vmem:[#allocation2 + $0xf9] sm:$0x1] %vm37_vm2, %v3490_v0  ;;  %74 = vst.msk [vmem:[#allocation2 + $0x109] sm:$0x1] %vm37_vm2, %v3490_v0  ;;  %3212 = vmatpush3.msk.msra.mxu0 %vm990_vm3, %v940_v40 }
  0x14   :  { %75 = vst.msk [vmem:[#allocation2 + $0x119] sm:$0x1] %vm37_vm2, %v3490_v0  ;;  %76 = vst.msk [vmem:[#allocation2 + $0x129] sm:$0x1] %vm37_vm2, %v3490_v0 }
  0x15   :  { %1281 = vst [vmem:[#allocation4] sm:$0xff] %v3490_v0  ;;  %1282 = vst [vmem:[#allocation4 + $0x8] sm:$0x3] %v3490_v0 }
  0x16   :  { %1283 = vst [vmem:[#allocation4 + $0xa0] sm:$0xff] %v3490_v0  ;;  %1284 = vst [vmem:[#allocation4 + $0xa8] sm:$0x3] %v3490_v0 }
  0x17   :  { %1286 = vst [vmem:[#allocation4 + $0x90] sm:$0xff] %v3490_v0  ;;  %1287 = vst [vmem:[#allocation4 + $0x98] sm:$0x3] %v3490_v0 }
  0x18   :  { %1288 = vst [vmem:[#allocation4 + $0x130] sm:$0xff] %v3490_v0  ;;  %1289 = vst [vmem:[#allocation4 + $0x138] sm:$0x3] %v3490_v0 }
  0x19   :  { %1291 = vst [vmem:[#allocation4 + $0x10] sm:$0x1] %v3490_v0  ;;  %1292 = vst [vmem:[#allocation4 + $0x20] sm:$0x1] %v3490_v0 }
  0x1a   :  { %1293 = vst [vmem:[#allocation4 + $0x30] sm:$0x1] %v3490_v0  ;;  %1294 = vst [vmem:[#allocation4 + $0x40] sm:$0x1] %v3490_v0 }
  0x1b   :  { %1295 = vst [vmem:[#allocation4 + $0x50] sm:$0x1] %v3490_v0  ;;  %1296 = vst [vmem:[#allocation4 + $0x60] sm:$0x1] %v3490_v0 }
  0x1c   :  { %1297 = vst [vmem:[#allocation4 + $0x70] sm:$0x1] %v3490_v0  ;;  %1298 = vst [vmem:[#allocation4 + $0x80] sm:$0x1] %v3490_v0 }
  0x1d   :  { %1301 = vst [vmem:[#allocation4 + $0xb0] sm:$0x1] %v3490_v0  ;;  %1302 = vst [vmem:[#allocation4 + $0xc0] sm:$0x1] %v3490_v0 }
  0x1e   :  { %1303 = vst [vmem:[#allocation4 + $0xd0] sm:$0x1] %v3490_v0  ;;  %1304 = vst [vmem:[#allocation4 + $0xe0] sm:$0x1] %v3490_v0 }
  0x1f   :  { %1305 = vst [vmem:[#allocation4 + $0xf0] sm:$0x1] %v3490_v0  ;;  %1306 = vst [vmem:[#allocation4 + $0x100] sm:$0x1] %v3490_v0 }
  0x20   :  { %1307 = vst [vmem:[#allocation4 + $0x110] sm:$0x1] %v3490_v0  ;;  %1308 = vst [vmem:[#allocation4 + $0x120] sm:$0x1] %v3490_v0 }
  0x21   :  { %1311 = vst [vmem:[#allocation4 + $0x19] sm:$0x1] %v3490_v0  ;;  %1312 = vst [vmem:[#allocation4 + $0x29] sm:$0x1] %v3490_v0 }
  0x22   :  { %1313 = vst [vmem:[#allocation4 + $0x39] sm:$0x1] %v3490_v0  ;;  %1314 = vst [vmem:[#allocation4 + $0x49] sm:$0x1] %v3490_v0 }
  0x23   :  { %1315 = vst [vmem:[#allocation4 + $0x59] sm:$0x1] %v3490_v0  ;;  %1316 = vst [vmem:[#allocation4 + $0x69] sm:$0x1] %v3490_v0 }
  0x24   :  { %1317 = vst [vmem:[#allocation4 + $0x79] sm:$0x1] %v3490_v0  ;;  %1318 = vst [vmem:[#allocation4 + $0x89] sm:$0x1] %v3490_v0 }
  0x25   :  { %1321 = vst [vmem:[#allocation4 + $0xb9] sm:$0x1] %v3490_v0  ;;  %1322 = vst [vmem:[#allocation4 + $0xc9] sm:$0x1] %v3490_v0 }
  0x26   :  { %1323 = vst [vmem:[#allocation4 + $0xd9] sm:$0x1] %v3490_v0  ;;  %1324 = vst [vmem:[#allocation4 + $0xe9] sm:$0x1] %v3490_v0 }
  0x27   :  { %1325 = vst [vmem:[#allocation4 + $0xf9] sm:$0x1] %v3490_v0  ;;  %1326 = vst [vmem:[#allocation4 + $0x109] sm:$0x1] %v3490_v0 }
  0x28   :  { %1327 = vst [vmem:[#allocation4 + $0x119] sm:$0x1] %v3490_v0  ;;  %1328 = vst [vmem:[#allocation4 + $0x129] sm:$0x1] %v3490_v0 }
  0x29   :  { %38 = vst.msk [vmem:[#allocation2] sm:$0x1] %vm37_vm2, %v3490_v0  ;;  %58 = vst.msk [vmem:[#allocation2 + $0x9] sm:$0x1] %vm37_vm2, %v3490_v0 }
  0x2a   :  { %47 = vst.msk [vmem:[#allocation2 + $0x90] sm:$0x1] %vm37_vm2, %v3490_v0  ;;  %48 = vst.msk [vmem:[#allocation2 + $0xa0] sm:$0x1] %vm37_vm2, %v3490_v0 }
  0x2b   :  { %57 = vst.msk [vmem:[#allocation2 + $0x130] sm:$0x1] %vm37_vm2, %v3490_v0  ;;  %67 = vst.msk [vmem:[#allocation2 + $0x99] sm:$0x1] %vm37_vm2, %v3490_v0 }
  0x2c   :  { %68 = vst.msk [vmem:[#allocation2 + $0xa9] sm:$0x1] %vm37_vm2, %v3490_v0  ;;  %77 = vst.msk [vmem:[#allocation2 + $0x139] sm:$0x1] %vm37_vm2, %v3490_v0 }
  0x2d   :  { %1290 = vst [vmem:[#allocation4] sm:$0x1] %v3490_v0  ;;  %1299 = vst [vmem:[#allocation4 + $0x90] sm:$0x1] %v3490_v0 }
  0x2e   :  { %1300 = vst [vmem:[#allocation4 + $0xa0] sm:$0x1] %v3490_v0  ;;  %1309 = vst [vmem:[#allocation4 + $0x130] sm:$0x1] %v3490_v0 }
  0x2f   :  { %1310 = vst [vmem:[#allocation4 + $0x9] sm:$0x1] %v3490_v0  ;;  %1319 = vst [vmem:[#allocation4 + $0x99] sm:$0x1] %v3490_v0 }
  0x30   :  { %1320 = vst [vmem:[#allocation4 + $0xa9] sm:$0x1] %v3490_v0  ;;  %1329 = vst [vmem:[#allocation4 + $0x139] sm:$0x1] %v3490_v0  ;;  %v240_v12 = vld [vmem:[#allocation2 + $0x2] sm:$0xff] }
  0x31   :  { %95 = vst.msk [vmem:[#allocation2 + $0x11] sm:$0xff] %vm26_vm0, %v78_v1  ;;  %96 = vst.msk [vmem:[#allocation2 + $0x21] sm:$0xff] %vm26_vm0, %v79_v2  ;;  %272 = vrot.lane.b32.xlu1 %v240_v12, %s3492_s22  ;;  %v111_v22 = vld [vmem:[#allocation2] sm:$0xff] }
  0x32   :  { %97 = vst.msk [vmem:[#allocation2 + $0x31] sm:$0xff] %vm26_vm0, %v80_v3  ;;  %98 = vst.msk [vmem:[#allocation2 + $0x41] sm:$0xff] %vm26_vm0, %v81_v4  ;;  %v119_v55 = vld [vmem:[#allocation2 + $0xa0] sm:$0xff] }
  0x33   :  { %99 = vst.msk [vmem:[#allocation2 + $0x51] sm:$0xff] %vm26_vm0, %v82_v5  ;;  %100 = vst.msk [vmem:[#allocation2 + $0x61] sm:$0xff] %vm26_vm0, %v83_v6  ;;  %v248_v61 = vld [vmem:[#allocation2 + $0xa2] sm:$0xff]  ;;  %v636_v5 = vld [vmem:[#allocation2 + $0x90] sm:$0xff] }
  0x34   :  { %101 = vst.msk [vmem:[#allocation2 + $0x71] sm:$0xff] %vm26_vm0, %v84_v7  ;;  %102 = vst.msk [vmem:[#allocation2 + $0x81] sm:$0xff] %vm26_vm0, %v85_v8 }
  0x35   :  { %103 = vst.msk [vmem:[#allocation2 + $0xb1] sm:$0xff] %vm26_vm0, %v86_v9  ;;  %104 = vst.msk [vmem:[#allocation2 + $0xc1] sm:$0xff] %vm26_vm0, %v87_v10  ;;  %v733_v10 = vld [vmem:[#allocation2 + $0x91] sm:$0xff] }
  0x36   :  { %127 = vst.msk [vmem:[#allocation3] sm:$0xff] %vm26_vm0, %v111_v22  ;;  %105 = vst.msk [vmem:[#allocation2 + $0xd1] sm:$0xff] %vm26_vm0, %v88_v26 }
  0x37   :  { %106 = vst.msk [vmem:[#allocation2 + $0xe1] sm:$0xff] %vm26_vm0, %v89_v30  ;;  %107 = vst.msk [vmem:[#allocation2 + $0xf1] sm:$0xff] %vm26_vm0, %v90_v41 }
  0x38   :  { %v144_v13 = vld [vmem:[#allocation2 + $0x11] sm:$0xff]  ;;  %v338_v15 = vld [vmem:[#allocation2 + $0x20] sm:$0xff]  ;;  %108 = vst.msk [vmem:[#allocation2 + $0x101] sm:$0xff] %vm26_vm0, %v91_v45  ;;  %109 = vst.msk [vmem:[#allocation2 + $0x111] sm:$0xff] %vm26_vm0, %v92_v49 }
  0x39   :  { %v337_v14 = vld [vmem:[#allocation2 + $0x10] sm:$0xff]  ;;  %129 = vst.msk [vmem:[#allocation3 + $0x10] sm:$0xff] %vm26_vm0, %v338_v15  ;;  %v3723_v18 = vld [vmem:[#allocation2 + $0x40] sm:$0xff]  ;;  %177 = vrot.lane.b32.xlu0 %v144_v13, %s3491_s21  ;;  %110 = vst.msk [vmem:[#allocation2 + $0x121] sm:$0xff] %vm26_vm0, %v93_v53 }
  0x3a   :  { %v241_v16 = vld [vmem:[#allocation2 + $0x12] sm:$0xff]  ;;  %128 = vst.msk [vmem:[#allocation3 + $0x8] sm:$0xff] %vm26_vm0, %v337_v14  ;;  %131 = vst.msk [vmem:[#allocation3 + $0x20] sm:$0xff] %vm26_vm0, %v3723_v18  ;;  %v3732_v20 = vld [vmem:[#allocation2 + $0x60] sm:$0xff] }
  0x3b   :  { %v339_v17 = vld [vmem:[#allocation2 + $0x30] sm:$0xff]  ;;  %274 = vrot.lane.b32.xlu1 %v241_v16, %s3492_s22  ;;  %133 = vst.msk [vmem:[#allocation3 + $0x30] sm:$0xff] %vm26_vm0, %v3732_v20  ;;  %v145_v24 = vld [vmem:[#allocation2 + $0x21] sm:$0xff]  ;;  %135 = vst.msk [vmem:[#allocation3 + $0x40] sm:$0xff] %vm26_vm0, %v119_v55 }
  0x3c   :  { %130 = vst.msk [vmem:[#allocation3 + $0x18] sm:$0xff] %vm26_vm0, %v339_v17  ;;  %v3730_v19 = vld [vmem:[#allocation2 + $0x50] sm:$0xff]  ;;  %v3747_v25 = vld [vmem:[#allocation2 + $0xc0] sm:$0xff] }
  0x3d   :  { %132 = vst.msk [vmem:[#allocation3 + $0x28] sm:$0xff] %vm26_vm0, %v3730_v19  ;;  %v3738_v21 = vld [vmem:[#allocation2 + $0x70] sm:$0xff]  ;;  %369 = vrot.lane.b32.xlu0 %v337_v14, %s3493_s23  ;;  %137 = vst.msk [vmem:[#allocation3 + $0x50] sm:$0xff] %vm26_vm0, %v3747_v25  ;;  %v242_v28 = vld [vmem:[#allocation2 + $0x22] sm:$0xff] }
  0x3e   :  { %134 = vst.msk [vmem:[#allocation3 + $0x38] sm:$0xff] %vm26_vm0, %v3738_v21  ;;  %v3745_v23 = vld [vmem:[#allocation2 + $0xb0] sm:$0xff]  ;;  %v3783_v35 = vld [vmem:[#allocation2 + $0xe0] sm:$0xff] }
  0x3f   :  { %371 = vrot.lane.b32.xlu1 %v338_v15, %s3493_s23  ;;  %136 = vst.msk [vmem:[#allocation3 + $0x48] sm:$0xff] %vm26_vm0, %v3745_v23  ;;  %v146_v27 = vld [vmem:[#allocation2 + $0x31] sm:$0xff]  ;;  %139 = vst.msk [vmem:[#allocation3 + $0x60] sm:$0xff] %vm26_vm0, %v3783_v35  ;;  %v147_v39 = vld [vmem:[#allocation2 + $0x41] sm:$0xff] }
  0x40   :  { %v243_v29 = vld [vmem:[#allocation2 + $0x32] sm:$0xff]  ;;  %v244_v43 = vld [vmem:[#allocation2 + $0x42] sm:$0xff] }
  0x41   :  { %466 = vrot.lane.b32.xlu0 %v144_v13, %s3494_s26  ;;  %v3769_v31 = vld [vmem:[#allocation2 + $0xd0] sm:$0xff]  ;;  %v3828_v47 = vld [vmem:[#allocation2 + $0x100] sm:$0xff] }
  0x42   :  { %138 = vst.msk [vmem:[#allocation3 + $0x58] sm:$0xff] %vm26_vm0, %v3769_v31  ;;  %v148_v42 = vld [vmem:[#allocation2 + $0x51] sm:$0xff]  ;;  %141 = vst.msk [vmem:[#allocation3 + $0x70] sm:$0xff] %vm26_vm0, %v3828_v47  ;;  %v149_v48 = vld [vmem:[#allocation2 + $0x61] sm:$0xff] }
  0x43   :  { %179 = vrot.lane.b32.xlu1 %v145_v24, %s3491_s21  ;;  %v245_v44 = vld [vmem:[#allocation2 + $0x52] sm:$0xff]  ;;  %v246_v51 = vld [vmem:[#allocation2 + $0x62] sm:$0xff] }
  0x44   :  { %v3818_v46 = vld [vmem:[#allocation2 + $0xf0] sm:$0xff]  ;;  %v344_v56 = vld [vmem:[#allocation2 + $0x80] sm:$0xff] }
  0x45   :  { %468 = vrot.lane.b32.xlu0 %v145_v24, %s3494_s26  ;;  %140 = vst.msk [vmem:[#allocation3 + $0x68] sm:$0xff] %vm26_vm0, %v3818_v46  ;;  %v150_v50 = vld [vmem:[#allocation2 + $0x71] sm:$0xff]  ;;  %v441_v58 = vld [vmem:[#allocation2 + $0x81] sm:$0xff] }
  0x46   :  { %v247_v52 = vld [vmem:[#allocation2 + $0x72] sm:$0xff]  ;;  %v538_v63 = vld [vmem:[#allocation2 + $0x82] sm:$0xff] }
  0x47   :  { %563 = vrot.lane.b32.xlu1 %v241_v16, %s3495_s27  ;;  %v3854_v54 = vld [vmem:[#allocation2 + $0x110] sm:$0xff]  ;;  %v153_v13 = vld [vmem:[#allocation2 + $0xc1] sm:$0xff] }
  0x48   :  { %142 = vst.msk [vmem:[#allocation3 + $0x78] sm:$0xff] %vm26_vm0, %v3854_v54  ;;  %v152_v59 = vld [vmem:[#allocation2 + $0xb1] sm:$0xff]  ;;  %v155_v36 = vld [vmem:[#allocation2 + $0xe1] sm:$0xff] }
  0x49   :  { %181 = vrot.lane.b32.xlu0 %v146_v27, %s3491_s21  ;;  %v249_v2 = vld [vmem:[#allocation2 + $0xb2] sm:$0xff] }
  0x4a   :  { %v251_v26 = vld [vmem:[#allocation2 + $0xd2] sm:$0xff] }
  0x4b   :  { %276 = vrot.lane.b32.xlu1 %v242_v28, %s3492_s22 }
  0x4d   :  { %565 = vrot.lane.b32.xlu0 %v242_v28, %s3495_s27 }
  0x4f   :  { %661 = vrot.lane.b32.xlu1 %v338_v15, %s3496_s28 }
  0x51   :  { %278 = vrot.lane.b32.xlu0 %v243_v29, %s3492_s22 }
  0x53   :  { %373 = vrot.lane.b32.xlu1 %v339_v17, %s3493_s23 }
  0x55   :  { %663 = vrot.lane.b32.xlu0 %v339_v17, %s3496_s28  ;;  %v830_v17 = vld [vmem:[#allocation2 + $0x92] sm:$0xff] }
  0x57   :  { %758 = vrot.lane.b32.xlu1 %v145_v24, %s3497_s12 }
  0x59   :  { %375 = vrot.lane.b32.xlu0 %v3723_v18, %s3493_s23 }
  0x5b   :  { %470 = vrot.lane.b32.xlu1 %v146_v27, %s3494_s26 }
  0x5d   :  { %760 = vrot.lane.b32.xlu0 %v146_v27, %s3497_s12 }
  0x5f   :  { %855 = vrot.lane.b32.xlu1 %v242_v28, %s3498_s17 }
  0x61   :  { %183 = vrot.lane.b32.xlu0 %v147_v39, %s3491_s21 }
  0x63   :  { %472 = vrot.lane.b32.xlu1 %v147_v39, %s3494_s26 }
  0x65   :  { %567 = vrot.lane.b32.xlu0 %v243_v29, %s3495_s27 }
  0x67   :  { %857 = vrot.lane.b32.xlu1 %v243_v29, %s3498_s17 }
  0x69   :  { %185 = vrot.lane.b32.xlu0 %v148_v42, %s3491_s21 }
  0x6b   :  { %280 = vrot.lane.b32.xlu1 %v244_v43, %s3492_s22 }
  0x6d   :  { %569 = vrot.lane.b32.xlu0 %v244_v43, %s3495_s27 }
  0x6f   :  { %665 = vrot.lane.b32.xlu1 %v3723_v18, %s3496_s28 }
  0x71   :  { %282 = vrot.lane.b32.xlu0 %v245_v44, %s3492_s22 }
  0x73   :  { %377 = vrot.lane.b32.xlu1 %v3730_v19, %s3493_s23 }
  0x75   :  { %667 = vrot.lane.b32.xlu0 %v3730_v19, %s3496_s28  ;;  %v154_v19 = vld [vmem:[#allocation2 + $0xd1] sm:$0xff] }
  0x77   :  { %762 = vrot.lane.b32.xlu1 %v147_v39, %s3497_s12 }
  0x79   :  { %379 = vrot.lane.b32.xlu0 %v3732_v20, %s3493_s23 }
  0x7b   :  { %474 = vrot.lane.b32.xlu1 %v148_v42, %s3494_s26 }
  0x7c   :  { %v176_v60 = vpop.permute.xlu0 %175 }
  0x7d   :  { %764 = vrot.lane.b32.xlu0 %v148_v42, %s3497_s12  ;;  %224 = vst.msk [vmem:[#allocation3] sm:$0xff] %vm223_vm4, %v176_v60  ;;  %v156_v42 = vld [vmem:[#allocation2 + $0xf1] sm:$0xff] }
  0x7f   :  { %859 = vrot.lane.b32.xlu1 %v244_v43, %s3498_s17 }
  0x81   :  { %187 = vrot.lane.b32.xlu0 %v149_v48, %s3491_s21 }
  0x83   :  { %476 = vrot.lane.b32.xlu1 %v149_v48, %s3494_s26 }
  0x85   :  { %571 = vrot.lane.b32.xlu0 %v245_v44, %s3495_s27 }
  0x87   :  { %861 = vrot.lane.b32.xlu1 %v245_v44, %s3498_s17  ;;  %v252_v44 = vld [vmem:[#allocation2 + $0xe2] sm:$0xff] }
  0x89   :  { %189 = vrot.lane.b32.xlu0 %v150_v50, %s3491_s21 }
  0x8b   :  { %284 = vrot.lane.b32.xlu1 %v246_v51, %s3492_s22 }
  0x8d   :  { %573 = vrot.lane.b32.xlu0 %v246_v51, %s3495_s27 }
  0x8f   :  { %669 = vrot.lane.b32.xlu1 %v3732_v20, %s3496_s28 }
  0x91   :  { %286 = vrot.lane.b32.xlu0 %v247_v52, %s3492_s22 }
  0x93   :  { %381 = vrot.lane.b32.xlu1 %v3738_v21, %s3493_s23 }
  0x95   :  { %671 = vrot.lane.b32.xlu0 %v3738_v21, %s3496_s28  ;;  %v250_v21 = vld [vmem:[#allocation2 + $0xc2] sm:$0xff] }
  0x97   :  { %766 = vrot.lane.b32.xlu1 %v149_v48, %s3497_s12 }
  0x99   :  { %383 = vrot.lane.b32.xlu0 %v344_v56, %s3493_s23 }
  0x9b   :  { %478 = vrot.lane.b32.xlu1 %v150_v50, %s3494_s26 }
  0x9d   :  { %768 = vrot.lane.b32.xlu0 %v150_v50, %s3497_s12  ;;  %v253_v50 = vld [vmem:[#allocation2 + $0xf2] sm:$0xff] }
  0x9f   :  { %863 = vrot.lane.b32.xlu1 %v246_v51, %s3498_s17 }
  0xa1   :  { %191 = vrot.lane.b32.xlu0 %v151_v57, %s3491_s21 }
  0xa3   :  { %480 = vrot.lane.b32.xlu1 %v441_v58, %s3494_s26  ;;  %v273_v62 = vpop.permute.xlu1 %272 }
  0xa4   :  { %321 = vst.msk [vmem:[#allocation3] sm:$0xff] %vm320_vm5, %v273_v62 }
  0xa5   :  { %575 = vrot.lane.b32.xlu0 %v247_v52, %s3495_s27 }
  0xa7   :  { %865 = vrot.lane.b32.xlu1 %v247_v52, %s3498_s17 }
  0xa9   :  { %193 = vrot.lane.b32.xlu0 %v152_v59, %s3491_s21 }
  0xab   :  { %288 = vrot.lane.b32.xlu1 %v248_v61, %s3492_s22  ;;  %v178_v0 = vpop.permute.xlu0 %177 }
  0xac   :  { %225 = vst.msk [vmem:[#allocation3 + $0x8] sm:$0xff] %vm223_vm4, %v178_v0 }
  0xad   :  { %v275_v1 = vpop.permute.xlu1 %274  ;;  %577 = vrot.lane.b32.xlu0 %v538_v63, %s3495_s27 }
  0xae   :  { %322 = vst.msk [vmem:[#allocation3 + $0x8] sm:$0xff] %vm320_vm5, %v275_v1  ;;  %v158_v1 = vld [vmem:[#allocation2 + $0x111] sm:$0xff] }
  0xaf   :  { %673 = vrot.lane.b32.xlu1 %v344_v56, %s3496_s28  ;;  %v370_v3 = vpop.permute.xlu0 %369 }
  0xb0   :  { %418 = vst.msk [vmem:[#allocation3] sm:$0xff] %vm417_vm6, %v370_v3  ;;  %v254_v3 = vld [vmem:[#allocation2 + $0x102] sm:$0xff] }
  0xb1   :  { %v372_v4 = vpop.permute.xlu1 %371  ;;  %290 = vrot.lane.b32.xlu0 %v249_v2, %s3492_s22 }
  0xb2   :  { %419 = vst.msk [vmem:[#allocation3 + $0x8] sm:$0xff] %vm417_vm6, %v372_v4 }
  0xb3   :  { %385 = vrot.lane.b32.xlu1 %v3745_v23, %s3493_s23  ;;  %v467_v6 = vpop.permute.xlu0 %466 }
  0xb4   :  { %515 = vst.msk [vmem:[#allocation3] sm:$0xff] %vm514_vm7, %v467_v6 }
  0xb5   :  { %v180_v7 = vpop.permute.xlu1 %179  ;;  %675 = vrot.lane.b32.xlu0 %v636_v5, %s3496_s28 }
  0xb6   :  { %226 = vst.msk [vmem:[#allocation3 + $0x10] sm:$0xff] %vm223_vm4, %v180_v7  ;;  %v255_v7 = vld [vmem:[#allocation2 + $0x112] sm:$0xff] }
  0xb7   :  { %770 = vrot.lane.b32.xlu1 %v441_v58, %s3497_s12  ;;  %v469_v8 = vpop.permute.xlu0 %468 }
  0xb8   :  { %516 = vst.msk [vmem:[#allocation3 + $0x8] sm:$0xff] %vm514_vm7, %v469_v8 }
  0xb9   :  { %v564_v9 = vpop.permute.xlu1 %563  ;;  %387 = vrot.lane.b32.xlu0 %v3747_v25, %s3493_s23 }
  0xba   :  { %612 = vst.msk [vmem:[#allocation3] sm:$0xff] %vm611_vm8, %v564_v9 }
  0xbb   :  { %482 = vrot.lane.b32.xlu1 %v152_v59, %s3494_s26  ;;  %v182_v11 = vpop.permute.xlu0 %181  ;;  %v157_v59 = vld [vmem:[#allocation2 + $0x101] sm:$0xff] }
  0xbc   :  { %227 = vst.msk [vmem:[#allocation3 + $0x18] sm:$0xff] %vm223_vm4, %v182_v11 }
  0xbd   :  { %v277_v12 = vpop.permute.xlu1 %276  ;;  %772 = vrot.lane.b32.xlu0 %v733_v10, %s3497_s12 }
  0xbe   :  { %323 = vst.msk [vmem:[#allocation3 + $0x10] sm:$0xff] %vm320_vm5, %v277_v12 }
  0xbf   :  { %867 = vrot.lane.b32.xlu1 %v538_v63, %s3498_s17  ;;  %v566_v14 = vpop.permute.xlu0 %565 }
  0xc0   :  { %613 = vst.msk [vmem:[#allocation3 + $0x8] sm:$0xff] %vm611_vm8, %v566_v14 }
  0xc1   :  { %v662_v15 = vpop.permute.xlu1 %661  ;;  %195 = vrot.lane.b32.xlu0 %v153_v13, %s3491_s21 }
  0xc2   :  { %710 = vst.msk [vmem:[#allocation3] sm:$0xff] %vm709_vm9, %v662_v15 }
  0xc3   :  { %484 = vrot.lane.b32.xlu1 %v153_v13, %s3494_s26  ;;  %v279_v16 = vpop.permute.xlu0 %278 }
  0xc4   :  { %324 = vst.msk [vmem:[#allocation3 + $0x18] sm:$0xff] %vm320_vm5, %v279_v16  ;;  %v449_v16 = vld [vmem:[#allocation2 + $0x121] sm:$0xff] }
  0xc5   :  { %v374_v18 = vpop.permute.xlu1 %373  ;;  %579 = vrot.lane.b32.xlu0 %v249_v2, %s3495_s27 }
  0xc6   :  { %420 = vst.msk [vmem:[#allocation3 + $0x10] sm:$0xff] %vm417_vm6, %v374_v18 }
  0xc7   :  { %869 = vrot.lane.b32.xlu1 %v830_v17, %s3498_s17  ;;  %v664_v20 = vpop.permute.xlu0 %663 }
  0xc8   :  { %711 = vst.msk [vmem:[#allocation3 + $0x8] sm:$0xff] %vm709_vm9, %v664_v20 }
  0xc9   :  { %v759_v22 = vpop.permute.xlu1 %758  ;;  %197 = vrot.lane.b32.xlu0 %v154_v19, %s3491_s21 }
  0xca   :  { %807 = vst.msk [vmem:[#allocation3] sm:$0xff] %vm806_vm10, %v759_v22 }
  0xcb   :  { %292 = vrot.lane.b32.xlu1 %v250_v21, %s3492_s22  ;;  %v376_v23 = vpop.permute.xlu0 %375 }
  0xcc   :  { %421 = vst.msk [vmem:[#allocation3 + $0x18] sm:$0xff] %vm417_vm6, %v376_v23 }
  0xcd   :  { %v471_v24 = vpop.permute.xlu1 %470  ;;  %581 = vrot.lane.b32.xlu0 %v250_v21, %s3495_s27 }
  0xce   :  { %517 = vst.msk [vmem:[#allocation3 + $0x10] sm:$0xff] %vm514_vm7, %v471_v24  ;;  %v644_v24 = vld [vmem:[#allocation2 + $0x130] sm:$0xff] }
  0xcf   :  { %677 = vrot.lane.b32.xlu1 %v3747_v25, %s3496_s28  ;;  %v761_v27 = vpop.permute.xlu0 %760 }
  0xd0   :  { %808 = vst.msk [vmem:[#allocation3 + $0x8] sm:$0xff] %vm806_vm10, %v761_v27 }
  0xd1   :  { %v856_v28 = vpop.permute.xlu1 %855  ;;  %294 = vrot.lane.b32.xlu0 %v251_v26, %s3492_s22 }
  0xd2   :  { %904 = vst.msk [vmem:[#allocation3] sm:$0xff] %vm903_vm11, %v856_v28  ;;  %v741_v28 = vld [vmem:[#allocation2 + $0x131] sm:$0xff] }
  0xd3   :  { %389 = vrot.lane.b32.xlu1 %v3769_v31, %s3493_s23  ;;  %v184_v29 = vpop.permute.xlu0 %183 }
  0xd4   :  { %228 = vst.msk [vmem:[#allocation3 + $0x20] sm:$0xff] %vm223_vm4, %v184_v29 }
  0xd5   :  { %v473_v30 = vpop.permute.xlu1 %472  ;;  %679 = vrot.lane.b32.xlu0 %v3769_v31, %s3496_s28 }
  0xd6   :  { %518 = vst.msk [vmem:[#allocation3 + $0x18] sm:$0xff] %vm514_vm7, %v473_v30 }
  0xd7   :  { %774 = vrot.lane.b32.xlu1 %v153_v13, %s3497_s12  ;;  %v568_v25 = vpop.permute.xlu0 %567 }
  0xd8   :  { %614 = vst.msk [vmem:[#allocation3 + $0x10] sm:$0xff] %vm611_vm8, %v568_v25  ;;  %v838_v25 = vld [vmem:[#allocation2 + $0x132] sm:$0xff] }
  0xd9   :  { %v858_v32 = vpop.permute.xlu1 %857  ;;  %v920_v33 = vld [vmem:[#allocation3] sm:$0xff]  ;;  %391 = vrot.lane.b32.xlu0 %v3783_v35, %s3493_s23 }
  0xda   :  { %905 = vst.msk [vmem:[#allocation3 + $0x8] sm:$0xff] %vm903_vm11, %v858_v32  ;;  %3213 = vmatprep.mubr.msk.f32.mxu0 %vm941_vm12, %v920_v33 }
  0xdb   :  { %486 = vrot.lane.b32.xlu1 %v154_v19, %s3494_s26  ;;  %v186_v34 = vpop.permute.xlu0 %185 }
  0xdc   :  { %229 = vst.msk [vmem:[#allocation3 + $0x28] sm:$0xff] %vm223_vm4, %v186_v34 }
  0xdd   :  { %v281_v31 = vpop.permute.xlu1 %280  ;;  %776 = vrot.lane.b32.xlu0 %v154_v19, %s3497_s12 }
  0xde   :  { %325 = vst.msk [vmem:[#allocation3 + $0x20] sm:$0xff] %vm320_vm5, %v281_v31 }
  0xdf   :  { %871 = vrot.lane.b32.xlu1 %v250_v21, %s3498_s17  ;;  %v570_v37 = vpop.permute.xlu0 %569  ;;  %v546_v21 = vld [vmem:[#allocation2 + $0x122] sm:$0xff] }
  0xe0   :  { %615 = vst.msk [vmem:[#allocation3 + $0x18] sm:$0xff] %vm611_vm8, %v570_v37 }
  0xe1   :  { %v666_v38 = vpop.permute.xlu1 %665  ;;  %v921_v39 = vld [vmem:[#allocation3 + $0x8] sm:$0xff]  ;;  %199 = vrot.lane.b32.xlu0 %v155_v36, %s3491_s21 }
  0xe2   :  { %712 = vst.msk [vmem:[#allocation3 + $0x10] sm:$0xff] %vm709_vm9, %v666_v38  ;;  %3214 = vmatmul.mubr.msk.f32.vlgmr.msra.gmra.mrb[0].mxu0 %vm941_vm12, %v921_v39 }
  0xe3   :  { %488 = vrot.lane.b32.xlu1 %v155_v36, %s3494_s26  ;;  %v283_v40 = vpop.permute.xlu0 %282 }
  0xe4   :  { %326 = vst.msk [vmem:[#allocation3 + $0x28] sm:$0xff] %vm320_vm5, %v283_v40 }
  0xe5   :  { %v378_v41 = vpop.permute.xlu1 %377  ;;  %583 = vrot.lane.b32.xlu0 %v251_v26, %s3495_s27 }
  0xe6   :  { %422 = vst.msk [vmem:[#allocation3 + $0x20] sm:$0xff] %vm417_vm6, %v378_v41 }
  0xe7   :  { %873 = vrot.lane.b32.xlu1 %v251_v26, %s3498_s17  ;;  %v668_v43 = vpop.permute.xlu0 %667 }
  0xe8   :  { %713 = vst.msk [vmem:[#allocation3 + $0x18] sm:$0xff] %vm709_vm9, %v668_v43 }
  0xe9   :  { %v763_v45 = vpop.permute.xlu1 %762  ;;  %201 = vrot.lane.b32.xlu0 %v156_v42, %s3491_s21 }
  0xea   :  { %809 = vst.msk [vmem:[#allocation3 + $0x10] sm:$0xff] %vm806_vm10, %v763_v45 }
  0xeb   :  { %296 = vrot.lane.b32.xlu1 %v252_v44, %s3492_s22  ;;  %v380_v48 = vpop.permute.xlu0 %379 }
  0xec   :  { %423 = vst.msk [vmem:[#allocation3 + $0x28] sm:$0xff] %vm417_vm6, %v380_v48 }
  0xed   :  { %v475_v49 = vpop.permute.xlu1 %474  ;;  %585 = vrot.lane.b32.xlu0 %v252_v44, %s3495_s27 }
  0xee   :  { %519 = vst.msk [vmem:[#allocation3 + $0x20] sm:$0xff] %vm514_vm7, %v475_v49 }
  0xef   :  { %681 = vrot.lane.b32.xlu1 %v3783_v35, %s3496_s28  ;;  %v765_v51 = vpop.permute.xlu0 %764 }
  0xf0   :  { %810 = vst.msk [vmem:[#allocation3 + $0x18] sm:$0xff] %vm806_vm10, %v765_v51 }
  0xf1   :  { %v860_v52 = vpop.permute.xlu1 %859  ;;  %298 = vrot.lane.b32.xlu0 %v253_v50, %s3492_s22 }
  0xf2   :  { %906 = vst.msk [vmem:[#allocation3 + $0x10] sm:$0xff] %vm903_vm11, %v860_v52 }
  0xf3   :  { %393 = vrot.lane.b32.xlu1 %v3818_v46, %s3493_s23  ;;  %v188_v53 = vpop.permute.xlu0 %187 }
  0xf4   :  { %230 = vst.msk [vmem:[#allocation3 + $0x30] sm:$0xff] %vm223_vm4, %v188_v53 }
  0xf5   :  { %v477_v55 = vpop.permute.xlu1 %476  ;;  %683 = vrot.lane.b32.xlu0 %v3818_v46, %s3496_s28 }
  0xf6   :  { %520 = vst.msk [vmem:[#allocation3 + $0x28] sm:$0xff] %vm514_vm7, %v477_v55 }
  0xf7   :  { %778 = vrot.lane.b32.xlu1 %v155_v36, %s3497_s12  ;;  %v572_v35 = vpop.permute.xlu0 %571 }
  0xf8   :  { %616 = vst.msk [vmem:[#allocation3 + $0x20] sm:$0xff] %vm611_vm8, %v572_v35 }
  0xf9   :  { %v862_v56 = vpop.permute.xlu1 %861  ;;  %v922_v57 = vld [vmem:[#allocation3 + $0x10] sm:$0xff]  ;;  %395 = vrot.lane.b32.xlu0 %v3828_v47, %s3493_s23 }
  0xfa   :  { %907 = vst.msk [vmem:[#allocation3 + $0x18] sm:$0xff] %vm903_vm11, %v862_v56  ;;  %3216 = vmatprep.mubr.msk.f32.mxu0 %vm941_vm12, %v922_v57 }
  0xfb   :  { %490 = vrot.lane.b32.xlu1 %v156_v42, %s3494_s26  ;;  %v190_v58 = vpop.permute.xlu0 %189 }
  0xfc   :  { %231 = vst.msk [vmem:[#allocation3 + $0x38] sm:$0xff] %vm223_vm4, %v190_v58 }
  0xfd   :  { %v285_v46 = vpop.permute.xlu1 %284  ;;  %780 = vrot.lane.b32.xlu0 %v156_v42, %s3497_s12 }
  0xfe   :  { %327 = vst.msk [vmem:[#allocation3 + $0x30] sm:$0xff] %vm320_vm5, %v285_v46 }
  0xff   :  { %875 = vrot.lane.b32.xlu1 %v252_v44, %s3498_s17  ;;  %v574_v60 = vpop.permute.xlu0 %573 }
 0x100   :  { %617 = vst.msk [vmem:[#allocation3 + $0x28] sm:$0xff] %vm611_vm8, %v574_v60 }
 0x101   :  { %v670_v61 = vpop.permute.xlu1 %669  ;;  %v923_v62 = vld [vmem:[#allocation3 + $0x18] sm:$0xff]  ;;  %203 = vrot.lane.b32.xlu0 %v157_v59, %s3491_s21 }
 0x102   :  { %714 = vst.msk [vmem:[#allocation3 + $0x20] sm:$0xff] %vm709_vm9, %v670_v61  ;;  %3217 = vmatmul.mubr.msk.f32.gmra.mrb[2].mxu0 %vm941_vm12, %v923_v62 }
 0x103   :  { %492 = vrot.lane.b32.xlu1 %v157_v59, %s3494_s26  ;;  %v287_v63 = vpop.permute.xlu0 %286 }
 0x104   :  { %328 = vst.msk [vmem:[#allocation3 + $0x38] sm:$0xff] %vm320_vm5, %v287_v63 }
 0x105   :  { %v382_v0 = vpop.permute.xlu1 %381  ;;  %587 = vrot.lane.b32.xlu0 %v253_v50, %s3495_s27 }
 0x106   :  { %424 = vst.msk [vmem:[#allocation3 + $0x30] sm:$0xff] %vm417_vm6, %v382_v0 }
 0x107   :  { %877 = vrot.lane.b32.xlu1 %v253_v50, %s3498_s17  ;;  %v672_v2 = vpop.permute.xlu0 %671 }
 0x108   :  { %715 = vst.msk [vmem:[#allocation3 + $0x28] sm:$0xff] %vm709_vm9, %v672_v2 }
 0x109   :  { %v767_v4 = vpop.permute.xlu1 %766  ;;  %205 = vrot.lane.b32.xlu0 %v158_v1, %s3491_s21 }
 0x10a   :  { %811 = vst.msk [vmem:[#allocation3 + $0x20] sm:$0xff] %vm806_vm10, %v767_v4 }
 0x10b   :  { %300 = vrot.lane.b32.xlu1 %v254_v3, %s3492_s22  ;;  %v384_v5 = vpop.permute.xlu0 %383 }
 0x10c   :  { %425 = vst.msk [vmem:[#allocation3 + $0x38] sm:$0xff] %vm417_vm6, %v384_v5 }
 0x10d   :  { %v479_v6 = vpop.permute.xlu1 %478  ;;  %589 = vrot.lane.b32.xlu0 %v254_v3, %s3495_s27 }
 0x10e   :  { %521 = vst.msk [vmem:[#allocation3 + $0x30] sm:$0xff] %vm514_vm7, %v479_v6 }
 0x10f   :  { %685 = vrot.lane.b32.xlu1 %v3828_v47, %s3496_s28  ;;  %v769_v8 = vpop.permute.xlu0 %768  ;;  %v352_v47 = vld [vmem:[#allocation2 + $0x120] sm:$0xff] }
 0x110   :  { %812 = vst.msk [vmem:[#allocation3 + $0x28] sm:$0xff] %vm806_vm10, %v769_v8 }
 0x111   :  { %v864_v9 = vpop.permute.xlu1 %863  ;;  %302 = vrot.lane.b32.xlu0 %v255_v7, %s3492_s22 }
 0x112   :  { %908 = vst.msk [vmem:[#allocation3 + $0x20] sm:$0xff] %vm903_vm11, %v864_v9 }
 0x113   :  { %397 = vrot.lane.b32.xlu1 %v3854_v54, %s3493_s23  ;;  %v192_v10 = vpop.permute.xlu0 %191 }
 0x114   :  { %232 = vst.msk [vmem:[#allocation3 + $0x40] sm:$0xff] %vm223_vm4, %v192_v10 }
 0x115   :  { %v481_v11 = vpop.permute.xlu1 %480  ;;  %687 = vrot.lane.b32.xlu0 %v3854_v54, %s3496_s28 }
 0x116   :  { %522 = vst.msk [vmem:[#allocation3 + $0x38] sm:$0xff] %vm514_vm7, %v481_v11 }
 0x117   :  { %782 = vrot.lane.b32.xlu1 %v157_v59, %s3497_s12  ;;  %v576_v12 = vpop.permute.xlu0 %575 }
 0x118   :  { %618 = vst.msk [vmem:[#allocation3 + $0x30] sm:$0xff] %vm611_vm8, %v576_v12 }
 0x119   :  { %v866_v13 = vpop.permute.xlu1 %865  ;;  %v924_v14 = vld [vmem:[#allocation3 + $0x20] sm:$0xff]  ;;  %399 = vrot.lane.b32.xlu0 %v352_v47, %s3493_s23 }
 0x11a   :  { %909 = vst.msk [vmem:[#allocation3 + $0x28] sm:$0xff] %vm903_vm11, %v866_v13  ;;  %3219 = vmatprep.mubr.msk.f32.mxu0 %vm941_vm12, %v924_v14 }
 0x11b   :  { %494 = vrot.lane.b32.xlu1 %v158_v1, %s3494_s26  ;;  %v194_v15 = vpop.permute.xlu0 %193 }
 0x11c   :  { %233 = vst.msk [vmem:[#allocation3 + $0x48] sm:$0xff] %vm223_vm4, %v194_v15 }
 0x11d   :  { %v289_v54 = vpop.permute.xlu1 %288  ;;  %784 = vrot.lane.b32.xlu0 %v158_v1, %s3497_s12 }
 0x11e   :  { %329 = vst.msk [vmem:[#allocation3 + $0x40] sm:$0xff] %vm320_vm5, %v289_v54 }
 0x11f   :  { %879 = vrot.lane.b32.xlu1 %v254_v3, %s3498_s17  ;;  %v578_v17 = vpop.permute.xlu0 %577 }
 0x120   :  { %619 = vst.msk [vmem:[#allocation3 + $0x38] sm:$0xff] %vm611_vm8, %v578_v17 }
 0x121   :  { %v674_v18 = vpop.permute.xlu1 %673  ;;  %v925_v19 = vld [vmem:[#allocation3 + $0x28] sm:$0xff]  ;;  %496 = vrot.lane.b32.xlu0 %v449_v16, %s3494_s26 }
 0x122   :  { %716 = vst.msk [vmem:[#allocation3 + $0x30] sm:$0xff] %vm709_vm9, %v674_v18  ;;  %3220 = vmatmul.mubr.msk.f32.gmra.mrb[4].mxu0 %vm941_vm12, %v925_v19 }
 0x123   :  { %591 = vrot.lane.b32.xlu1 %v255_v7, %s3495_s27  ;;  %v291_v20 = vpop.permute.xlu0 %290 }
 0x124   :  { %330 = vst.msk [vmem:[#allocation3 + $0x48] sm:$0xff] %vm320_vm5, %v291_v20 }
 0x125   :  { %v386_v22 = vpop.permute.xlu1 %385  ;;  %881 = vrot.lane.b32.xlu0 %v255_v7, %s3498_s17 }
 0x126   :  { %426 = vst.msk [vmem:[#allocation3 + $0x40] sm:$0xff] %vm417_vm6, %v386_v22 }
 0x127   :  { %593 = vrot.lane.b32.xlu1 %v546_v21, %s3495_s27  ;;  %v676_v23 = vpop.permute.xlu0 %675 }
 0x128   :  { %717 = vst.msk [vmem:[#allocation3 + $0x38] sm:$0xff] %vm709_vm9, %v676_v23 }
 0x129   :  { %v771_v26 = vpop.permute.xlu1 %770  ;;  %689 = vrot.lane.b32.xlu0 %v352_v47, %s3496_s28 }
 0x12a   :  { %813 = vst.msk [vmem:[#allocation3 + $0x30] sm:$0xff] %vm806_vm10, %v771_v26 }
 0x12b   :  { %691 = vrot.lane.b32.xlu1 %v644_v24, %s3496_s28  ;;  %v388_v27 = vpop.permute.xlu0 %387 }
 0x12c   :  { %427 = vst.msk [vmem:[#allocation3 + $0x48] sm:$0xff] %vm417_vm6, %v388_v27 }
 0x12d   :  { %v483_v29 = vpop.permute.xlu1 %482  ;;  %786 = vrot.lane.b32.xlu0 %v449_v16, %s3497_s12 }
 0x12e   :  { %523 = vst.msk [vmem:[#allocation3 + $0x40] sm:$0xff] %vm514_vm7, %v483_v29 }
 0x12f   :  { %788 = vrot.lane.b32.xlu1 %v741_v28, %s3497_s12  ;;  %v773_v30 = vpop.permute.xlu0 %772 }
 0x130   :  { %814 = vst.msk [vmem:[#allocation3 + $0x38] sm:$0xff] %vm806_vm10, %v773_v30 }
 0x131   :  { %v868_v32 = vpop.permute.xlu1 %867  ;;  %883 = vrot.lane.b32.xlu0 %v546_v21, %s3498_s17 }
 0x132   :  { %910 = vst.msk [vmem:[#allocation3 + $0x30] sm:$0xff] %vm903_vm11, %v868_v32 }
 0x133   :  { %885 = vrot.lane.b32.xlu1 %v838_v25, %s3498_s17  ;;  %v196_v33 = vpop.permute.xlu0 %195 }
 0x134   :  { %234 = vst.msk [vmem:[#allocation3 + $0x50] sm:$0xff] %vm223_vm4, %v196_v33 }
 0x135   :  { %v485_v34 = vpop.permute.xlu1 %484 }
 0x136   :  { %524 = vst.msk [vmem:[#allocation3 + $0x48] sm:$0xff] %vm514_vm7, %v485_v34 }
 0x137   :  { %v580_v31 = vpop.permute.xlu0 %579 }
 0x138   :  { %620 = vst.msk [vmem:[#allocation3 + $0x40] sm:$0xff] %vm611_vm8, %v580_v31 }
 0x139   :  { %v870_v36 = vpop.permute.xlu1 %869  ;;  %v926_v37 = vld [vmem:[#allocation3 + $0x30] sm:$0xff] }
 0x13a   :  { %911 = vst.msk [vmem:[#allocation3 + $0x38] sm:$0xff] %vm903_vm11, %v870_v36  ;;  %3222 = vmatprep.mubr.msk.f32.mxu0 %vm941_vm12, %v926_v37 }
 0x13b   :  { %v198_v38 = vpop.permute.xlu0 %197 }
 0x13c   :  { %235 = vst.msk [vmem:[#allocation3 + $0x58] sm:$0xff] %vm223_vm4, %v198_v38 }
 0x13d   :  { %v293_v39 = vpop.permute.xlu1 %292 }
 0x13e   :  { %331 = vst.msk [vmem:[#allocation3 + $0x50] sm:$0xff] %vm320_vm5, %v293_v39 }
 0x13f   :  { %v582_v40 = vpop.permute.xlu0 %581 }
 0x140   :  { %621 = vst.msk [vmem:[#allocation3 + $0x48] sm:$0xff] %vm611_vm8, %v582_v40 }
 0x141   :  { %v678_v41 = vpop.permute.xlu1 %677  ;;  %v927_v42 = vld [vmem:[#allocation3 + $0x38] sm:$0xff] }
 0x142   :  { %718 = vst.msk [vmem:[#allocation3 + $0x40] sm:$0xff] %vm709_vm9, %v678_v41  ;;  %3223 = vmatmul.mubr.msk.f32.gmra.mrb[6].mxu0 %vm941_vm12, %v927_v42 }
 0x143   :  { %v295_v43 = vpop.permute.xlu0 %294 }
 0x144   :  { %332 = vst.msk [vmem:[#allocation3 + $0x58] sm:$0xff] %vm320_vm5, %v295_v43 }
 0x145   :  { %v390_v44 = vpop.permute.xlu1 %389 }
 0x146   :  { %428 = vst.msk [vmem:[#allocation3 + $0x50] sm:$0xff] %vm417_vm6, %v390_v44 }
 0x147   :  { %v680_v45 = vpop.permute.xlu0 %679 }
 0x148   :  { %719 = vst.msk [vmem:[#allocation3 + $0x48] sm:$0xff] %vm709_vm9, %v680_v45 }
 0x149   :  { %v775_v48 = vpop.permute.xlu1 %774 }
 0x14a   :  { %815 = vst.msk [vmem:[#allocation3 + $0x40] sm:$0xff] %vm806_vm10, %v775_v48 }
 0x14b   :  { %v392_v49 = vpop.permute.xlu0 %391 }
 0x14c   :  { %429 = vst.msk [vmem:[#allocation3 + $0x58] sm:$0xff] %vm417_vm6, %v392_v49 }
 0x14d   :  { %v487_v50 = vpop.permute.xlu1 %486 }
 0x14e   :  { %525 = vst.msk [vmem:[#allocation3 + $0x50] sm:$0xff] %vm514_vm7, %v487_v50 }
 0x14f   :  { %v777_v51 = vpop.permute.xlu0 %776 }
 0x150   :  { %816 = vst.msk [vmem:[#allocation3 + $0x48] sm:$0xff] %vm806_vm10, %v777_v51 }
 0x151   :  { %v872_v52 = vpop.permute.xlu1 %871 }
 0x152   :  { %912 = vst.msk [vmem:[#allocation3 + $0x40] sm:$0xff] %vm903_vm11, %v872_v52 }
 0x153   :  { %v200_v53 = vpop.permute.xlu0 %199 }
 0x154   :  { %236 = vst.msk [vmem:[#allocation3 + $0x60] sm:$0xff] %vm223_vm4, %v200_v53 }
 0x155   :  { %v489_v55 = vpop.permute.xlu1 %488 }
 0x156   :  { %526 = vst.msk [vmem:[#allocation3 + $0x58] sm:$0xff] %vm514_vm7, %v489_v55 }
 0x157   :  { %v584_v35 = vpop.permute.xlu0 %583 }
 0x158   :  { %622 = vst.msk [vmem:[#allocation3 + $0x50] sm:$0xff] %vm611_vm8, %v584_v35 }
 0x159   :  { %v874_v56 = vpop.permute.xlu1 %873  ;;  %v928_v57 = vld [vmem:[#allocation3 + $0x40] sm:$0xff] }
 0x15a   :  { %913 = vst.msk [vmem:[#allocation3 + $0x48] sm:$0xff] %vm903_vm11, %v874_v56  ;;  %3225 = vmatprep.mubr.msk.f32.mxu0 %vm941_vm12, %v928_v57 }
 0x15b   :  { %v202_v58 = vpop.permute.xlu0 %201 }
 0x15c   :  { %237 = vst.msk [vmem:[#allocation3 + $0x68] sm:$0xff] %vm223_vm4, %v202_v58 }
 0x15d   :  { %v297_v46 = vpop.permute.xlu1 %296 }
 0x15e   :  { %333 = vst.msk [vmem:[#allocation3 + $0x60] sm:$0xff] %vm320_vm5, %v297_v46 }
 0x15f   :  { %v586_v59 = vpop.permute.xlu0 %585 }
 0x160   :  { %623 = vst.msk [vmem:[#allocation3 + $0x58] sm:$0xff] %vm611_vm8, %v586_v59 }
 0x161   :  { %v682_v60 = vpop.permute.xlu1 %681  ;;  %v929_v61 = vld [vmem:[#allocation3 + $0x48] sm:$0xff] }
 0x162   :  { %720 = vst.msk [vmem:[#allocation3 + $0x50] sm:$0xff] %vm709_vm9, %v682_v60  ;;  %3226 = vmatmul.mubr.msk.f32.gmra.mrb[8].mxu0 %vm941_vm12, %v929_v61  ;;  %v1796_v60 = vld [vmem:[%s5129_s4 + $0x80] sm:$0xff]  ;;  %v1797_v61 = vld [vmem:[%s5129_s4 + $0x88] sm:$0xff] }
 0x163   :  { %v299_v62 = vpop.permute.xlu0 %298 }
 0x164   :  { %334 = vst.msk [vmem:[#allocation3 + $0x68] sm:$0xff] %vm320_vm5, %v299_v62  ;;  %v3301_v62 = vpack.c.bf16 %v1797_v61, %v1796_v60  ;;  %v1790_v61 = vld [vmem:[%s5129_s4 + $0x50] sm:$0xff] }
 0x165   :  { %v394_v63 = vpop.permute.xlu1 %393 }
 0x166   :  { %430 = vst.msk [vmem:[#allocation3 + $0x60] sm:$0xff] %vm417_vm6, %v394_v63  ;;  %v1780_v63 = vld [vmem:[%s5129_s4] sm:$0xff]  ;;  %3302 = vmatprep.subr.bf16.mxu1 %v3301_v62  ;;  %v1791_v62 = vld [vmem:[%s5129_s4 + $0x58] sm:$0xff] }
 0x167   :  { %v684_v0 = vpop.permute.xlu0 %683 }
 0x168   :  { %721 = vst.msk [vmem:[#allocation3 + $0x58] sm:$0xff] %vm709_vm9, %v684_v0  ;;  %v1781_v0 = vld [vmem:[%s5129_s4 + $0x8] sm:$0xff] }
 0x169   :  { %v779_v1 = vpop.permute.xlu1 %778 }
 0x16a   :  { %817 = vst.msk [vmem:[#allocation3 + $0x50] sm:$0xff] %vm806_vm10, %v779_v1  ;;  %v3303_v1 = vpack.c.bf16 %v1781_v0, %v1780_v63  ;;  %v1834_v63 = vld [vmem:[%s5129_s4 + $0x1b0] sm:$0xff]  ;;  %v1835_v0 = vld [vmem:[%s5129_s4 + $0x1b8] sm:$0xff] }
 0x16b   :  { %v396_v2 = vpop.permute.xlu0 %395 }
 0x16c   :  { %431 = vst.msk [vmem:[#allocation3 + $0x68] sm:$0xff] %vm417_vm6, %v396_v2  ;;  %3304 = vmatpush3.bf16.msra.mxu1 %v3303_v1  ;;  %v1798_v2 = vld [vmem:[%s5129_s4 + $0x90] sm:$0xff]  ;;  %v3323_v1 = vpack.c.bf16 %v1791_v62, %v1790_v61  ;;  %v1892_v61 = vld [vmem:[%s5129_s4 + $0x380] sm:$0xff]  ;;  %v1893_v62 = vld [vmem:[%s5129_s4 + $0x388] sm:$0xff] }
 0x16d   :  { %v491_v3 = vpop.permute.xlu1 %490 }
 0x16e   :  { %527 = vst.msk [vmem:[#allocation3 + $0x60] sm:$0xff] %vm514_vm7, %v491_v3  ;;  %v1799_v3 = vld [vmem:[%s5129_s4 + $0x98] sm:$0xff] }
 0x16f   :  { %v781_v4 = vpop.permute.xlu0 %780 }
 0x170   :  { %818 = vst.msk [vmem:[#allocation3 + $0x58] sm:$0xff] %vm806_vm10, %v781_v4  ;;  %v3305_v4 = vpack.c.bf16 %v1799_v3, %v1798_v2  ;;  %v3345_v2 = vpack.c.bf16 %v1835_v0, %v1834_v63  ;;  %v1818_v3 = vld [vmem:[%s5129_s4 + $0x130] sm:$0xff]  ;;  %v3397_v63 = vpack.c.bf16 %v1893_v62, %v1892_v61  ;;  %v1860_v0 = vld [vmem:[%s5129_s4 + $0x280] sm:$0xff]  ;;  %v1875_v62 = vld [vmem:[%s5129_s4 + $0x2f8] sm:$0xff] }
 0x171   :  { %v876_v5 = vpop.permute.xlu1 %875  ;;  %v1874_v61 = vld [vmem:[%s5129_s4 + $0x2f0] sm:$0xff] }
 0x172   :  { %914 = vst.msk [vmem:[#allocation3 + $0x50] sm:$0xff] %vm903_vm11, %v876_v5  ;;  %v1782_v5 = vld [vmem:[%s5129_s4 + $0x10] sm:$0xff]  ;;  %3306 = vmatprep.subr.bf16.mxu1 %v3305_v4  ;;  %v1819_v4 = vld [vmem:[%s5129_s4 + $0x138] sm:$0xff] }
 0x173   :  { %v204_v6 = vpop.permute.xlu0 %203 }
 0x174   :  { %238 = vst.msk [vmem:[#allocation3 + $0x70] sm:$0xff] %vm223_vm4, %v204_v6  ;;  %v1783_v6 = vld [vmem:[%s5129_s4 + $0x18] sm:$0xff] }
 0x175   :  { %v493_v7 = vpop.permute.xlu1 %492 }
 0x176   :  { %528 = vst.msk [vmem:[#allocation3 + $0x68] sm:$0xff] %vm514_vm7, %v493_v7  ;;  %v3307_v7 = vpack.c.bf16 %v1783_v6, %v1782_v5  ;;  %v3347_v5 = vpack.c.bf16 %v1819_v4, %v1818_v3  ;;  %v1808_v6 = vld [vmem:[%s5129_s4 + $0xe0] sm:$0xff]  ;;  %v1845_v3 = vld [vmem:[%s5129_s4 + $0x208] sm:$0xff] }
 0x177   :  { %v588_v8 = vpop.permute.xlu0 %587 }
 0x178   :  { %624 = vst.msk [vmem:[#allocation3 + $0x60] sm:$0xff] %vm611_vm8, %v588_v8  ;;  %3308 = vmatpush3.bf16.msra.mxu1 %v3307_v7  ;;  %v1809_v7 = vld [vmem:[%s5129_s4 + $0xe8] sm:$0xff] }
 0x179   :  { %v878_v9 = vpop.permute.xlu1 %877  ;;  %v930_v10 = vld [vmem:[#allocation3 + $0x50] sm:$0xff] }
 0x17a   :  { %915 = vst.msk [vmem:[#allocation3 + $0x58] sm:$0xff] %vm903_vm11, %v878_v9  ;;  %3228 = vmatprep.mubr.msk.f32.mxu0 %vm941_vm12, %v930_v10  ;;  %v1800_v10 = vld [vmem:[%s5129_s4 + $0xa0] sm:$0xff] }
 0x17b   :  { %v206_v11 = vpop.permute.xlu0 %205 }
 0x17c   :  { %239 = vst.msk [vmem:[#allocation3 + $0x78] sm:$0xff] %vm223_vm4, %v206_v11  ;;  %v1801_v11 = vld [vmem:[%s5129_s4 + $0xa8] sm:$0xff] }
 0x17d   :  { %v301_v47 = vpop.permute.xlu1 %300 }
 0x17e   :  { %335 = vst.msk [vmem:[#allocation3 + $0x70] sm:$0xff] %vm320_vm5, %v301_v47 }
 0x17f   :  { %v590_v12 = vpop.permute.xlu0 %589 }
 0x180   :  { %625 = vst.msk [vmem:[#allocation3 + $0x68] sm:$0xff] %vm611_vm8, %v590_v12 }
 0x181   :  { %v686_v13 = vpop.permute.xlu1 %685  ;;  %v931_v14 = vld [vmem:[#allocation3 + $0x58] sm:$0xff] }
 0x182   :  { %722 = vst.msk [vmem:[#allocation3 + $0x60] sm:$0xff] %vm709_vm9, %v686_v13  ;;  %3229 = vmatmul.mubr.msk.f32.gmra.mrb[10].mxu0 %vm941_vm12, %v931_v14  ;;  %v3309_v13 = vpack.c.bf16 %v1801_v11, %v1800_v10  ;;  %v1784_v14 = vld [vmem:[%s5129_s4 + $0x20] sm:$0xff]  ;;  %v3325_v10 = vpack.c.bf16 %v1809_v7, %v1808_v6  ;;  %v1863_v6 = vld [vmem:[%s5129_s4 + $0x298] sm:$0xff] }
 0x183   :  { %v303_v15 = vpop.permute.xlu0 %302  ;;  %v1792_v11 = vld [vmem:[%s5129_s4 + $0x60] sm:$0xff] }
 0x184   :  { %336 = vst.msk [vmem:[#allocation3 + $0x78] sm:$0xff] %vm320_vm5, %v303_v15  ;;  %v1785_v15 = vld [vmem:[%s5129_s4 + $0x28] sm:$0xff]  ;;  %3310 = vmatprep.subr.bf16.mxu1 %v3309_v13 }
 0x185   :  { %v398_v54 = vpop.permute.xlu1 %397  ;;  %v1837_v13 = vld [vmem:[%s5129_s4 + $0x1c8] sm:$0xff] }
 0x186   :  { %432 = vst.msk [vmem:[#allocation3 + $0x70] sm:$0xff] %vm417_vm6, %v398_v54  ;;  %v1828_v54 = vld [vmem:[%s5129_s4 + $0x180] sm:$0xff] }
 0x187   :  { %v688_v16 = vpop.permute.xlu0 %687 }
 0x188   :  { %723 = vst.msk [vmem:[#allocation3 + $0x68] sm:$0xff] %vm709_vm9, %v688_v16  ;;  %v1829_v16 = vld [vmem:[%s5129_s4 + $0x188] sm:$0xff] }
 0x189   :  { %v783_v17 = vpop.permute.xlu1 %782 }
 0x18a   :  { %819 = vst.msk [vmem:[#allocation3 + $0x60] sm:$0xff] %vm806_vm10, %v783_v17  ;;  %v3311_v17 = vpack.c.bf16 %v1785_v15, %v1784_v14 }
 0x18b   :  { %v400_v18 = vpop.permute.xlu0 %399 }
 0x18c   :  { %433 = vst.msk [vmem:[#allocation3 + $0x78] sm:$0xff] %vm417_vm6, %v400_v18  ;;  %3312 = vmatpush3.bf16.msra.mxu1 %v3311_v17 }
 0x18d   :  { %v495_v19 = vpop.permute.xlu1 %494 }
 0x18e   :  { %529 = vst.msk [vmem:[#allocation3 + $0x70] sm:$0xff] %vm514_vm7, %v495_v19 }
 0x18f   :  { %v785_v20 = vpop.permute.xlu0 %784 }
 0x190   :  { %820 = vst.msk [vmem:[#allocation3 + $0x68] sm:$0xff] %vm806_vm10, %v785_v20 }
 0x191   :  { %v880_v21 = vpop.permute.xlu1 %879 }
 0x192   :  { %916 = vst.msk [vmem:[#allocation3 + $0x60] sm:$0xff] %vm903_vm11, %v880_v21  ;;  %v3333_v21 = vpack.c.bf16 %v1829_v16, %v1828_v54  ;;  %v1820_v54 = vld [vmem:[%s5129_s4 + $0x140] sm:$0xff]  ;;  %v1821_v16 = vld [vmem:[%s5129_s4 + $0x148] sm:$0xff] }
 0x193   :  { %v497_v22 = vpop.permute.xlu0 %496  ;;  %v3351_v17 = vpack.c.bf16 %v1821_v16, %v1820_v54  ;;  %v1849_v54 = vld [vmem:[%s5129_s4 + $0x228] sm:$0xff] }
 0x194   :  { %530 = vst.msk [vmem:[#allocation3 + $0x78] sm:$0xff] %vm514_vm7, %v497_v22  ;;  %v1812_v22 = vld [vmem:[%s5129_s4 + $0x100] sm:$0xff]  ;;  %3334 = vmatprep.subr.bf16.mxu0 %v3333_v21 }
 0x195   :  { %v592_v23 = vpop.permute.xlu1 %591 }
 0x196   :  { %626 = vst.msk [vmem:[#allocation3 + $0x70] sm:$0xff] %vm611_vm8, %v592_v23  ;;  %v1813_v23 = vld [vmem:[%s5129_s4 + $0x108] sm:$0xff] }
 0x197   :  { %v882_v24 = vpop.permute.xlu0 %881 }
 0x198   :  { %917 = vst.msk [vmem:[#allocation3 + $0x68] sm:$0xff] %vm903_vm11, %v882_v24  ;;  %v3335_v24 = vpack.c.bf16 %v1813_v23, %v1812_v22  ;;  %v1794_v22 = vld [vmem:[%s5129_s4 + $0x70] sm:$0xff]  ;;  %v1795_v23 = vld [vmem:[%s5129_s4 + $0x78] sm:$0xff] }
 0x199   :  { %v594_v26 = vpop.permute.xlu1 %593  ;;  %v932_v27 = vld [vmem:[#allocation3 + $0x60] sm:$0xff] }
 0x19a   :  { %627 = vst.msk [vmem:[#allocation3 + $0x78] sm:$0xff] %vm611_vm8, %v594_v26  ;;  %3231 = vmatprep.mubr.msk.f32.mxu0 %vm941_vm12, %v932_v27  ;;  %v1802_v26 = vld [vmem:[%s5129_s4 + $0xb0] sm:$0xff]  ;;  %v1803_v27 = vld [vmem:[%s5129_s4 + $0xb8] sm:$0xff]  ;;  %3336 = vmatpush3.bf16.msra.mxu0 %v3335_v24 }
 0x19b   :  { %v690_v28 = vpop.permute.xlu0 %689  ;;  %v1838_v24 = vld [vmem:[%s5129_s4 + $0x1d0] sm:$0xff] }
 0x19c   :  { %724 = vst.msk [vmem:[#allocation3 + $0x70] sm:$0xff] %vm709_vm9, %v690_v28 }
 0x19d   :  { %v692_v29 = vpop.permute.xlu1 %691 }
 0x19e   :  { %725 = vst.msk [vmem:[#allocation3 + $0x78] sm:$0xff] %vm709_vm9, %v692_v29  ;;  %v3313_v29 = vpack.c.bf16 %v1803_v27, %v1802_v26  ;;  %v1839_v26 = vld [vmem:[%s5129_s4 + $0x1d8] sm:$0xff]  ;;  %v3331_v27 = vpack.c.bf16 %v1795_v23, %v1794_v22  ;;  %v1866_v22 = vld [vmem:[%s5129_s4 + $0x2b0] sm:$0xff] }
 0x19f   :  { %v787_v30 = vpop.permute.xlu0 %786  ;;  %v933_v25 = vld [vmem:[#allocation3 + $0x68] sm:$0xff]  ;;  %v1867_v23 = vld [vmem:[%s5129_s4 + $0x2b8] sm:$0xff] }
 0x1a0   :  { %821 = vst.msk [vmem:[#allocation3 + $0x70] sm:$0xff] %vm806_vm10, %v787_v30  ;;  %3232 = vmatmul.mubr.msk.f32.gmra.mrb[12].mxu0 %vm941_vm12, %v933_v25  ;;  %v1786_v30 = vld [vmem:[%s5129_s4 + $0x30] sm:$0xff]  ;;  %v1787_v25 = vld [vmem:[%s5129_s4 + $0x38] sm:$0xff]  ;;  %3314 = vmatprep.subr.bf16.mxu1 %v3313_v29  ;;  %v3353_v29 = vpack.c.bf16 %v1839_v26, %v1838_v24 }
 0x1a1   :  { %v789_v32 = vpop.permute.xlu1 %788 }
 0x1a2   :  { %822 = vst.msk [vmem:[#allocation3 + $0x78] sm:$0xff] %vm806_vm10, %v789_v32  ;;  %v1830_v32 = vld [vmem:[%s5129_s4 + $0x190] sm:$0xff] }
 0x1a3   :  { %v884_v33 = vpop.permute.xlu0 %883 }
 0x1a4   :  { %918 = vst.msk [vmem:[#allocation3 + $0x70] sm:$0xff] %vm903_vm11, %v884_v33  ;;  %v1831_v33 = vld [vmem:[%s5129_s4 + $0x198] sm:$0xff] }
 0x1a5   :  { %v886_v34 = vpop.permute.xlu1 %885 }
 0x1a6   :  { %919 = vst.msk [vmem:[#allocation3 + $0x78] sm:$0xff] %vm903_vm11, %v886_v34  ;;  %v3315_v34 = vpack.c.bf16 %v1787_v25, %v1786_v30  ;;  %v1822_v30 = vld [vmem:[%s5129_s4 + $0x150] sm:$0xff]  ;;  %v1823_v25 = vld [vmem:[%s5129_s4 + $0x158] sm:$0xff] }
 0x1a8   :  { %3316 = vmatpush3.bf16.msra.mxu1 %v3315_v34  ;;  %v1840_v34 = vld [vmem:[%s5129_s4 + $0x1e0] sm:$0xff] }
 0x1ab   :  { %v934_v31 = vld [vmem:[#allocation3 + $0x70] sm:$0xff] }
 0x1ac   :  { %3234 = vmatprep.mubr.msk.f32.mxu0 %vm941_vm12, %v934_v31  ;;  %v3337_v31 = vpack.c.bf16 %v1831_v33, %v1830_v32  ;;  %v3355_v32 = vpack.c.bf16 %v1823_v25, %v1822_v30  ;;  %v1379_v33 = vld [vmem:[#allocation4 + $0x1] sm:$0xff]  ;;  %v1850_v25 = vld [vmem:[%s5129_s4 + $0x230] sm:$0xff] }
 0x1ad   :  { %v935_v36 = vld [vmem:[#allocation3 + $0x78] sm:$0xff]  ;;  %1988 = vmatprep.mubr.f32.mxu1 %v1379_v33 }
 0x1ae   :  { %3235 = vmatmul.mubr.msk.f32.gmra.mrb[14].mxu0 %vm941_vm12, %v935_v36  ;;  %v1814_v36 = vld [vmem:[%s5129_s4 + $0x110] sm:$0xff]  ;;  %3338 = vmatprep.subr.bf16.mxu0 %v3337_v31  ;;  %v1841_v31 = vld [vmem:[%s5129_s4 + $0x1e8] sm:$0xff] }
 0x1b5   :  { %v4100_v37 = vpop.f32.mrb[0].mxu0 }
 0x1b6   :  { %v1162_v38 = vmul.f32 %v4100_v37, %v4100_v37  ;;  %v4104_v39 = vpop.f32.mrb[1].mxu0 }
 0x1b7   :  { %v1139_v40 = vadd.f32 %v4100_v37, %v4104_v39  ;;  %v1161_v41 = vmul.f32 %v4104_v39, %v4104_v39 }
 0x1b9   :  { %v1177_v42 = vadd.f32 %v1162_v38, %v1161_v41  ;;  %v1815_v38 = vld [vmem:[%s5129_s4 + $0x118] sm:$0xff]  ;;  %v1804_v41 = vld [vmem:[%s5129_s4 + $0xc0] sm:$0xff] }
 0x1d5   :  { %v4110_v43 = vpop.f32.mrb[2].mxu0 }
 0x1d6   :  { %v4112_v44 = vpop.f32.mrb[3].mxu0  ;;  %v1164_v49 = vmul.f32 %v4110_v43, %v4110_v43 }
 0x1d7   :  { %v1140_v45 = vadd.f32 %v1139_v40, %v4112_v44  ;;  %v1163_v48 = vmul.f32 %v4112_v44, %v4112_v44  ;;  %v3339_v40 = vpack.c.bf16 %v1815_v38, %v1814_v36  ;;  %v1347_v36 = vld [vmem:[#allocation4] sm:$0xff]  ;;  %v3357_v38 = vpack.c.bf16 %v1841_v31, %v1840_v34  ;;  %v1869_v31 = vld [vmem:[%s5129_s4 + $0x2c8] sm:$0xff] }
 0x1d8   :  { %v1868_v34 = vld [vmem:[%s5129_s4 + $0x2c0] sm:$0xff] }
 0x1d9   :  { %v1178_v50 = vadd.f32 %v1177_v42, %v1163_v48  ;;  %v1141_v51 = vadd.f32 %v4110_v43, %v1140_v45  ;;  %v1805_v42 = vld [vmem:[%s5129_s4 + $0xc8] sm:$0xff]  ;;  %v1788_v48 = vld [vmem:[%s5129_s4 + $0x40] sm:$0xff]  ;;  %3340 = vmatpush3.bf16.msra.mxu0 %v3339_v40 }
 0x1da   :  { %v3317_v45 = vpack.c.bf16 %v1805_v42, %v1804_v41  ;;  %v1824_v40 = vld [vmem:[%s5129_s4 + $0x160] sm:$0xff]  ;;  %v1825_v41 = vld [vmem:[%s5129_s4 + $0x168] sm:$0xff] }
 0x1db   :  { %v1179_v52 = vadd.f32 %v1178_v50, %v1164_v49  ;;  %v1789_v49 = vld [vmem:[%s5129_s4 + $0x48] sm:$0xff]  ;;  %v1832_v50 = vld [vmem:[%s5129_s4 + $0x1a0] sm:$0xff]  ;;  %v3359_v42 = vpack.c.bf16 %v1825_v41, %v1824_v40 }
 0x1dc   :  { %3318 = vmatprep.subr.bf16.mxu1 %v3317_v45  ;;  %v1842_v45 = vld [vmem:[%s5129_s4 + $0x1f0] sm:$0xff]  ;;  %v1853_v40 = vld [vmem:[%s5129_s4 + $0x248] sm:$0xff] }
 0x1f5   :  { %v4120_v53 = vpop.f32.mrb[4].mxu0 }
 0x1f6   :  { %v4122_v55 = vpop.f32.mrb[5].mxu0  ;;  %v1166_v57 = vmul.f32 %v4120_v53, %v4120_v53 }
 0x1f7   :  { %v1142_v35 = vadd.f32 %v1141_v51, %v4122_v55  ;;  %v1165_v56 = vmul.f32 %v4122_v55, %v4122_v55  ;;  %v1833_v51 = vld [vmem:[%s5129_s4 + $0x1a8] sm:$0xff] }
 0x1f9   :  { %v1180_v58 = vadd.f32 %v1179_v52, %v1165_v56  ;;  %v1143_v46 = vadd.f32 %v4120_v53, %v1142_v35  ;;  %v3319_v52 = vpack.c.bf16 %v1789_v49, %v1788_v48  ;;  %v3341_v35 = vpack.c.bf16 %v1833_v51, %v1832_v50  ;;  %v1816_v56 = vld [vmem:[%s5129_s4 + $0x120] sm:$0xff]  ;;  %v1843_v48 = vld [vmem:[%s5129_s4 + $0x1f8] sm:$0xff]  ;;  %v1826_v49 = vld [vmem:[%s5129_s4 + $0x170] sm:$0xff] }
 0x1fa   :  { %v3361_v50 = vpack.c.bf16 %v1843_v48, %v1842_v45  ;;  %v1827_v51 = vld [vmem:[%s5129_s4 + $0x178] sm:$0xff] }
 0x1fb   :  { %v1181_v59 = vadd.f32 %v1180_v58, %v1166_v57  ;;  %v1817_v57 = vld [vmem:[%s5129_s4 + $0x128] sm:$0xff]  ;;  %3320 = vmatpush3.bf16.msra.mxu1 %v3319_v52  ;;  %3342 = vmatprep.subr.bf16.mxu0 %v3341_v35  ;;  %v3363_v52 = vpack.c.bf16 %v1827_v51, %v1826_v49  ;;  %v1871_v45 = vld [vmem:[%s5129_s4 + $0x2d8] sm:$0xff]  ;;  %v1854_v49 = vld [vmem:[%s5129_s4 + $0x250] sm:$0xff] }
 0x1fc   :  { %v3343_v58 = vpack.c.bf16 %v1817_v57, %v1816_v56 }
 0x1fe   :  { %3344 = vmatpush3.bf16.msra.mxu0 %v3343_v58 }
 0x1ff   :  { %3346 = vmatprep.subr.bf16.mxu0 %v3345_v2  ;;  %v1844_v2 = vld [vmem:[%s5129_s4 + $0x200] sm:$0xff] }
 0x200   :  { %v3367_v4 = vpack.c.bf16 %v1845_v3, %v1844_v2 }
 0x202   :  { %3348 = vmatpush3.bf16.msra.mxu0 %v3347_v5  ;;  %v1862_v5 = vld [vmem:[%s5129_s4 + $0x290] sm:$0xff] }
 0x203   :  { %v3369_v7 = vpack.c.bf16 %v1863_v6, %v1862_v5 }
 0x215   :  { %v4154_v8 = vpop.f32.mrb[6].mxu0 }
 0x216   :  { %v4156_v9 = vpop.f32.mrb[7].mxu0  ;;  %v1168_v18 = vmul.f32 %v4154_v8, %v4154_v8 }
 0x217   :  { %v1144_v47 = vadd.f32 %v1143_v46, %v4156_v9  ;;  %v1167_v12 = vmul.f32 %v4156_v9, %v4156_v9  ;;  %v1806_v46 = vld [vmem:[%s5129_s4 + $0xd0] sm:$0xff] }
 0x219   :  { %v1182_v19 = vadd.f32 %v1181_v59, %v1167_v12  ;;  %v4182_v20 = vadd.f32 %v4154_v8, %v1144_v47  ;;  %v1807_v59 = vld [vmem:[%s5129_s4 + $0xd8] sm:$0xff]  ;;  %v1793_v47 = vld [vmem:[%s5129_s4 + $0x68] sm:$0xff]  ;;  %v1836_v12 = vld [vmem:[%s5129_s4 + $0x1c0] sm:$0xff] }
 0x21a   :  { %v3321_v60 = vpack.c.bf16 %v1807_v59, %v1806_v46  ;;  %v3327_v14 = vpack.c.bf16 %v1793_v47, %v1792_v11  ;;  %v3349_v15 = vpack.c.bf16 %v1837_v13, %v1836_v12  ;;  %v1847_v11 = vld [vmem:[%s5129_s4 + $0x218] sm:$0xff]  ;;  %v1864_v12 = vld [vmem:[%s5129_s4 + $0x2a0] sm:$0xff]  ;;  %v1865_v13 = vld [vmem:[%s5129_s4 + $0x2a8] sm:$0xff] }
 0x21b   :  { %v4196_v28 = vadd.f32 %v1182_v19, %v1168_v18  ;;  %v1810_v18 = vld [vmem:[%s5129_s4 + $0xf0] sm:$0xff]  ;;  %v1811_v19 = vld [vmem:[%s5129_s4 + $0xf8] sm:$0xff] }
 0x21c   :  { %3322 = vmatprep.subr.bf16.mxu1 %v3321_v60  ;;  %3350 = vmatprep.subr.bf16.mxu0 %v3349_v15  ;;  %v3329_v21 = vpack.c.bf16 %v1811_v19, %v1810_v18  ;;  %v1848_v15 = vld [vmem:[%s5129_s4 + $0x220] sm:$0xff] }
 0x21d   :  { %3324 = vmatpush3.bf16.msra.mxu1 %v3323_v1  ;;  %3352 = vmatpush3.bf16.msra.mxu0 %v3351_v17  ;;  %v3375_v16 = vpack.c.bf16 %v1849_v54, %v1848_v15 }
 0x21e   :  { %3326 = vmatprep.subr.bf16.mxu1 %v3325_v10  ;;  %3354 = vmatprep.subr.bf16.mxu0 %v3353_v29  ;;  %v1846_v10 = vld [vmem:[%s5129_s4 + $0x210] sm:$0xff]  ;;  %v3377_v29 = vpack.c.bf16 %v1867_v23, %v1866_v22 }
 0x21f   :  { %v3371_v47 = vpack.c.bf16 %v1847_v11, %v1846_v10  ;;  %v1908_v10 = vld [vmem:[%s5129_s4 + $0x400] sm:$0xff]  ;;  %v1909_v11 = vld [vmem:[%s5129_s4 + $0x408] sm:$0xff] }
 0x221   :  { %3328 = vmatpush3.bf16.msra.mxu1 %v3327_v14  ;;  %3356 = vmatpush3.bf16.msra.mxu0 %v3355_v32  ;;  %v3373_v14 = vpack.c.bf16 %v1865_v13, %v1864_v12  ;;  %v1851_v32 = vld [vmem:[%s5129_s4 + $0x238] sm:$0xff] }
 0x222   :  { %3330 = vmatprep.subr.bf16.mxu1 %v3329_v21  ;;  %3358 = vmatprep.subr.bf16.mxu0 %v3357_v38  ;;  %v3379_v33 = vpack.c.bf16 %v1851_v32, %v1850_v25  ;;  %v1852_v38 = vld [vmem:[%s5129_s4 + $0x240] sm:$0xff] }
 0x223   :  { %v3383_v41 = vpack.c.bf16 %v1853_v40, %v1852_v38 }
 0x225   :  { %3332 = vmatpush3.bf16.msra.mxu1 %v3331_v27  ;;  %3360 = vmatpush3.bf16.msra.mxu0 %v3359_v42  ;;  %v1870_v42 = vld [vmem:[%s5129_s4 + $0x2d0] sm:$0xff] }
 0x226   :  { %3362 = vmatprep.subr.bf16.mxu0 %v3361_v50  ;;  %v3385_v48 = vpack.c.bf16 %v1871_v45, %v1870_v42  ;;  %v1855_v50 = vld [vmem:[%s5129_s4 + $0x258] sm:$0xff] }
 0x227   :  { %v3387_v51 = vpack.c.bf16 %v1855_v50, %v1854_v49 }
 0x228   :  { %1989 = vmatmul.mubr.f32.vlgmr.msra.gmra.mrb[0].mxu1 %v1347_v36  ;;  %v3381_v36 = vpack.c.bf16 %v1869_v31, %v1868_v34 }
 0x229   :  { %3364 = vmatpush3.bf16.msra.mxu0 %v3363_v52  ;;  %v1872_v52 = vld [vmem:[%s5129_s4 + $0x2e0] sm:$0xff] }
 0x22a   :  { %3398 = vmatprep.subr.bf16.mxu0 %v3397_v63  ;;  %v3393_v63 = vpack.c.bf16 %v1875_v62, %v1874_v61 }
 0x235   :  { %v4336_v35 = vpop.f32.mrb[8].mxu0 }
 0x236   :  { %v4338_v56 = vpop.f32.mrb[9].mxu0  ;;  %v1170_v46 = vmul.f32 %v4336_v35, %v4336_v35 }
 0x237   :  { %v1146_v57 = vadd.f32 %v4182_v20, %v4338_v56  ;;  %v1169_v58 = vmul.f32 %v4338_v56, %v4338_v56 }
 0x239   :  { %v1184_v59 = vadd.f32 %v4196_v28, %v1169_v58  ;;  %v1147_v60 = vadd.f32 %v4336_v35, %v1146_v57  ;;  %v1861_v28 = vld [vmem:[%s5129_s4 + $0x288] sm:$0xff] }
 0x23a   :  { %v3365_v1 = vpack.c.bf16 %v1861_v28, %v1860_v0  ;;  %v1873_v57 = vld [vmem:[%s5129_s4 + $0x2e8] sm:$0xff]  ;;  %v1858_v0 = vld [vmem:[%s5129_s4 + $0x270] sm:$0xff]  ;;  %v1859_v28 = vld [vmem:[%s5129_s4 + $0x278] sm:$0xff] }
 0x23b   :  { %v1185_v20 = vadd.f32 %v1184_v59, %v1170_v46  ;;  %v3389_v58 = vpack.c.bf16 %v1873_v57, %v1872_v52  ;;  %v1856_v46 = vld [vmem:[%s5129_s4 + $0x260] sm:$0xff]  ;;  %v1857_v59 = vld [vmem:[%s5129_s4 + $0x268] sm:$0xff]  ;;  %v3395_v2 = vpack.c.bf16 %v1859_v28, %v1858_v0 }
 0x23c   :  { %3366 = vmatprep.subr.bf16.mxu1 %v3365_v1 }
 0x23d   :  { %3368 = vmatpush3.bf16.msra.mxu1 %v3367_v4 }
 0x23e   :  { %3370 = vmatprep.subr.bf16.mxu1 %v3369_v7 }
 0x241   :  { %3372 = vmatpush3.bf16.msra.mxu1 %v3371_v47  ;;  %v4476_v47 = vpack.c.bf16 %v1909_v11, %v1908_v10 }
 0x242   :  { %3374 = vmatprep.subr.bf16.mxu1 %v3373_v14 }
 0x245   :  { %3376 = vmatpush3.bf16.msra.mxu1 %v3375_v16 }
 0x246   :  { %3378 = vmatprep.subr.bf16.mxu1 %v3377_v29 }
 0x249   :  { %3380 = vmatpush3.bf16.msra.mxu1 %v3379_v33 }
 0x24a   :  { %3382 = vmatprep.subr.bf16.mxu1 %v3381_v36 }
 0x24d   :  { %3384 = vmatpush3.bf16.msra.mxu1 %v3383_v41 }
 0x24e   :  { %3386 = vmatprep.subr.bf16.mxu1 %v3385_v48 }
 0x251   :  { %3388 = vmatpush3.bf16.msra.mxu1 %v3387_v51 }
 0x252   :  { %3390 = vmatprep.subr.bf16.mxu1 %v3389_v58 }
 0x255   :  { %v4390_v17 = vpop.f32.mrb[10].mxu0 }
 0x256   :  { %v4392_v18 = vpop.f32.mrb[11].mxu0  ;;  %v1172_v24 = vmul.f32 %v4390_v17, %v4390_v17 }
 0x257   :  { %v1148_v19 = vadd.f32 %v1147_v60, %v4392_v18  ;;  %v1171_v21 = vmul.f32 %v4392_v18, %v4392_v18  ;;  %v3391_v60 = vpack.c.bf16 %v1857_v59, %v1856_v46  ;;  %v1222_v59 = vlaneseq }
 0x259   :  { %v1186_v26 = vadd.f32 %v1185_v20, %v1171_v21  ;;  %v1149_v27 = vadd.f32 %v4390_v17, %v1148_v19  ;;  %3392 = vmatpush3.bf16.msra.mxu1 %v3391_v60 }
 0x25a   :  { %3394 = vmatprep.subr.bf16.mxu1 %v3393_v63 }
 0x25b   :  { %v1187_v30 = vadd.f32 %v1186_v26, %v1172_v24 }
 0x25d   :  { %3396 = vmatpush3.bf16.msra.mxu1 %v3395_v2 }
 0x25e   :  { %3461 = vmatprep.subr.bf16.mxu1 %v4476_v47 }
 0x273   :  { %v4454_v20 = vpop.f32.mrb[12].mxu0 }
 0x274   :  { %v4462_v1 = vpop.f32.mrb[13].mxu0  ;;  %v1174_v5 = vmul.f32 %v4454_v20, %v4454_v20 }
 0x275   :  { %v1150_v3 = vadd.f32 %v1149_v27, %v4462_v1  ;;  %v1173_v4 = vmul.f32 %v4462_v1, %v4462_v1 }
 0x277   :  { %v1188_v6 = vadd.f32 %v1187_v30, %v1173_v4  ;;  %v1151_v7 = vadd.f32 %v4454_v20, %v1150_v3 }
 0x279   :  { %v1189_v12 = vadd.f32 %v1188_v6, %v1174_v5 }
 0x281   :  { %v4479_v13 = vpop.f32.mrb[14].mxu0 }
 0x282   :  { %v1130_v14 = vpop.f32.mrb[15].mxu0  ;;  %v1176_v16 = vmul.f32 %v4479_v13, %v4479_v13 }
 0x283   :  { %v1152_v15 = vadd.f32 %v1151_v7, %v1130_v14  ;;  %v1175_v54 = vmul.f32 %v1130_v14, %v1130_v14 }
 0x285   :  { %v1153_v19 = vadd.f32 %v4479_v13, %v1152_v15  ;;  %v1190_v21 = vadd.f32 %v1189_v12, %v1175_v54 }
 0x287   :  { %v1154_v22 = vrot.slane %v1153_v19, 4  ;;  %v1191_v23 = vadd.f32 %v1190_v21, %v1176_v16 }
 0x289   :  { %v1155_v24 = vadd.f32 %v1154_v22, %v1153_v19  ;;  %v1192_v26 = vrot.slane %v1191_v23, 4 }
 0x28b   :  { %v1156_v27 = vrot.slane %v1155_v24, 2  ;;  %v1193_v29 = vadd.f32 %v1192_v26, %v1191_v23 }
 0x28d   :  { %v1157_v30 = vadd.f32 %v1156_v27, %v1155_v24  ;;  %v1194_v25 = vrot.slane %v1193_v29, 2 }
 0x28f   :  { %v1158_v32 = vrot.slane %v1157_v30, 1  ;;  %v1195_v33 = vadd.f32 %v1194_v25, %v1193_v29 }
 0x291   :  { %v1159_v34 = vadd.f32 %v1158_v32, %v1157_v30  ;;  %v1196_v31 = vrot.slane %v1195_v33, 1 }
 0x293   :  { %v4484_v36 = vmul.f32 0.0078125, %v1159_v34  ;;  %v1197_v38 = vadd.f32 %v1196_v31, %v1195_v33 }
 0x295   :  { %v1198_v40 = vmul.f32 0.0078125, %v1197_v38  ;;  %v1199_v41 = vmul.f32 %v4484_v36, %v4484_v36  ;;  %v1220_v42 = vsub.f32 %v1130_v14, %v4484_v36  ;;  %v1206_v45 = vsub.f32 %v4104_v39, %v4484_v36 }
 0x296   :  { %v1207_v48 = vsub.f32 %v4100_v37, %v4484_v36  ;;  %v1208_v49 = vsub.f32 %v4112_v44, %v4484_v36  ;;  %v1209_v50 = vsub.f32 %v4110_v43, %v4484_v36  ;;  %v1210_v51 = vsub.f32 %v4122_v55, %v4484_v36 }
 0x297   :  { %v1200_v52 = vsub.f32 %v1198_v40, %v1199_v41  ;;  %v1211_v57 = vsub.f32 %v4120_v53, %v4484_v36  ;;  %v1212_v58 = vsub.f32 %v4156_v9, %v4484_v36  ;;  %v1213_v39 = vsub.f32 %v4154_v8, %v4484_v36 }
 0x298   :  { %v1214_v37 = vsub.f32 %v4338_v56, %v4484_v36  ;;  %v1215_v44 = vsub.f32 %v4336_v35, %v4484_v36  ;;  %v1216_v43 = vsub.f32 %v4392_v18, %v4484_v36  ;;  %v1217_v55 = vsub.f32 %v4390_v17, %v4484_v36  ;;  %v1204_v18 = vld [vmem:[%s5130_s2] sm:$0x1] }
 0x299   :  { %v1201_v46 = vmax.f32 %v1200_v52, 0.0  ;;  %v1218_v53 = vsub.f32 %v4462_v1, %v4484_v36  ;;  %v1219_v9 = vsub.f32 %v4454_v20, %v4484_v36  ;;  %v1221_v8 = vsub.f32 %v4479_v13, %v4484_v36  ;;  %v2828_v20 = vld [vmem:[%s5131_s3] ss:$0 sm:$0xff]  ;;  %v1894_v52 = vld [vmem:[%s5129_s4 + $0x390] sm:$0xff] }
 0x29a   :  { %v4519_v35 = vshrl.u32 %v1222_v59, 7 }
 0x29b   :  { %v1202_v56 = vadd.f32 1e-05, %v1201_v46 }
 0x29c   :  { %v1224_v17 = vsub.s32 0, %v4519_v35 }
 0x29d   :  { %3486 = vrsqrt.f32 %v1202_v56 }
 0x2a7   :  { %v3487_v60 = vpop.eup %3486 }
 0x2a8   :  { %v1205_v61 = vmul.f32 %v3487_v60, %v1204_v18  ;;  %v1878_v18 = vld [vmem:[%s5129_s4 + $0x310] sm:$0xff]  ;;  %v1879_v60 = vld [vmem:[%s5129_s4 + $0x318] sm:$0xff] }
 0x2aa   :  { %v1225_v62 = vrot.slane %v1205_v61, %v1224_v17  ;;  %v1896_v61 = vld [vmem:[%s5129_s4 + $0x3a0] sm:$0xff] }
 0x2ac   :  { %v1240_v63 = vmul.f32 %v1225_v62, %v1220_v42  ;;  %v1226_v0 = vmul.f32 %v1225_v62, %v1206_v45  ;;  %v1227_v28 = vmul.f32 %v1225_v62, %v1207_v48  ;;  %v1228_v1 = vmul.f32 %v1225_v62, %v1208_v49  ;;  %v1876_v42 = vld [vmem:[%s5129_s4 + $0x300] sm:$0xff]  ;;  %v1877_v45 = vld [vmem:[%s5129_s4 + $0x308] sm:$0xff] }
 0x2ad   :  { %v1229_v2 = vmul.f32 %v1225_v62, %v1209_v50  ;;  %v1230_v3 = vmul.f32 %v1225_v62, %v1210_v51  ;;  %v1231_v4 = vmul.f32 %v1225_v62, %v1211_v57  ;;  %v1232_v5 = vmul.f32 %v1225_v62, %v1212_v58  ;;  %v1895_v57 = vld [vmem:[%s5129_s4 + $0x398] sm:$0xff] }
 0x2ae   :  { %v4530_v6 = vadd.f32 %v2828_v20, %v1240_v63  ;;  %v1249_v7 = vadd.f32 %v2828_v20, %v1226_v0  ;;  %v1250_v10 = vadd.f32 %v2828_v20, %v1227_v28  ;;  %v1251_v11 = vadd.f32 %v2828_v20, %v1228_v1  ;;  %v1880_v28 = vld [vmem:[%s5129_s4 + $0x320] sm:$0xff]  ;;  %v1881_v1 = vld [vmem:[%s5129_s4 + $0x328] sm:$0xff] }
 0x2af   :  { %v1252_v12 = vadd.f32 %v2828_v20, %v1229_v2  ;;  %v1253_v13 = vadd.f32 %v2828_v20, %v1230_v3  ;;  %v1254_v14 = vadd.f32 %v2828_v20, %v1231_v4  ;;  %v1255_v15 = vadd.f32 %v2828_v20, %v1232_v5  ;;  %v1898_v3 = vld [vmem:[%s5129_s4 + $0x3b0] sm:$0xff]  ;;  %v1899_v4 = vld [vmem:[%s5129_s4 + $0x3b8] sm:$0xff] }
 0x2b0   :  { %v1279_v54 = vmax.f32 %v4530_v6, 0.0  ;;  %v4533_v16 = vmax.f32 %v1249_v7, 0.0  ;;  %v4535_v19 = vmax.f32 %v1250_v10, 0.0  ;;  %v4537_v21 = vmax.f32 %v1251_v11, 0.0  ;;  %v1882_v11 = vld [vmem:[%s5129_s4 + $0x330] sm:$0xff] }
 0x2b1   :  { %v4539_v22 = vmax.f32 %v1252_v12, 0.0  ;;  %v4541_v23 = vmax.f32 %v1253_v13, 0.0  ;;  %v4543_v24 = vmax.f32 %v1254_v14, 0.0  ;;  %v4545_v26 = vmax.f32 %v1255_v15, 0.0  ;;  %v1883_v12 = vld [vmem:[%s5129_s4 + $0x338] sm:$0xff]  ;;  %v1900_v14 = vld [vmem:[%s5129_s4 + $0x3c0] sm:$0xff] }
 0x2b2   :  { %1345 = vst [vmem:[#allocation4 + $0x111] sm:$0xff] %v1279_v54  ;;  %1331 = vst [vmem:[#allocation4 + $0x11] sm:$0xff] %v4533_v16  ;;  %1993 = vmatprep.mubr.f32.mxu1 %v4533_v16  ;;  %v1233_v27 = vmul.f32 %v1225_v62, %v1213_v39  ;;  %v1234_v29 = vmul.f32 %v1225_v62, %v1214_v37  ;;  %v1235_v30 = vmul.f32 %v1225_v62, %v1215_v44  ;;  %v1901_v15 = vld [vmem:[%s5129_s4 + $0x3c8] sm:$0xff] }
 0x2b3   :  { %1332 = vst [vmem:[#allocation4 + $0x21] sm:$0xff] %v4535_v19  ;;  %1333 = vst [vmem:[#allocation4 + $0x31] sm:$0xff] %v4537_v21  ;;  %v1236_v25 = vmul.f32 %v1225_v62, %v1216_v43  ;;  %v1237_v32 = vmul.f32 %v1225_v62, %v1217_v55  ;;  %v1238_v33 = vmul.f32 %v1225_v62, %v1218_v53 }
 0x2b4   :  { %1334 = vst [vmem:[#allocation4 + $0x41] sm:$0xff] %v4539_v22  ;;  %1335 = vst [vmem:[#allocation4 + $0x51] sm:$0xff] %v4541_v23  ;;  %v1239_v34 = vmul.f32 %v1225_v62, %v1219_v9  ;;  %v1241_v31 = vmul.f32 %v1225_v62, %v1221_v8  ;;  %v1256_v36 = vadd.f32 %v2828_v20, %v1233_v27  ;;  %v1411_v9 = vld [vmem:[#allocation4 + $0x2] sm:$0xff] }
 0x2b5   :  { %1336 = vst [vmem:[#allocation4 + $0x61] sm:$0xff] %v4543_v24  ;;  %1337 = vst [vmem:[#allocation4 + $0x71] sm:$0xff] %v4545_v26  ;;  %v1257_v38 = vadd.f32 %v2828_v20, %v1234_v29  ;;  %v1258_v40 = vadd.f32 %v2828_v20, %v1235_v30  ;;  %v1259_v41 = vadd.f32 %v2828_v20, %v1236_v25  ;;  %v1897_v62 = vld [vmem:[%s5129_s4 + $0x3a8] sm:$0xff]  ;;  %v1884_v25 = vld [vmem:[%s5129_s4 + $0x340] sm:$0xff] }
 0x2b6   :  { %v1260_v48 = vadd.f32 %v2828_v20, %v1237_v32  ;;  %v1261_v49 = vadd.f32 %v2828_v20, %v1238_v33  ;;  %v1262_v50 = vadd.f32 %v2828_v20, %v1239_v34  ;;  %v1264_v51 = vadd.f32 %v2828_v20, %v1241_v31  ;;  %v1885_v32 = vld [vmem:[%s5129_s4 + $0x348] sm:$0xff]  ;;  %v1902_v34 = vld [vmem:[%s5129_s4 + $0x3d0] sm:$0xff]  ;;  %v1903_v31 = vld [vmem:[%s5129_s4 + $0x3d8] sm:$0xff] }
 0x2b7   :  { %v4569_v58 = vmax.f32 %v1256_v36, 0.0  ;;  %v4571_v39 = vmax.f32 %v1257_v38, 0.0  ;;  %v4573_v37 = vmax.f32 %v1258_v40, 0.0  ;;  %v4575_v44 = vmax.f32 %v1259_v41, 0.0  ;;  %v1886_v41 = vld [vmem:[%s5129_s4 + $0x350] sm:$0xff] }
 0x2b8   :  { %v4577_v43 = vmax.f32 %v1260_v48, 0.0  ;;  %v4579_v55 = vmax.f32 %v1261_v49, 0.0  ;;  %v4581_v46 = vmax.f32 %v1262_v50, 0.0  ;;  %v4583_v53 = vmax.f32 %v1264_v51, 0.0  ;;  %v1904_v48 = vld [vmem:[%s5129_s4 + $0x3e0] sm:$0xff]  ;;  %v1905_v49 = vld [vmem:[%s5129_s4 + $0x3e8] sm:$0xff] }
 0x2b9   :  { %v3399_v8 = vpack.c.bf16 %v1877_v45, %v1876_v42  ;;  %1338 = vst [vmem:[#allocation4 + $0x81] sm:$0xff] %v4569_v58  ;;  %1339 = vst [vmem:[#allocation4 + $0xb1] sm:$0xff] %v4571_v39  ;;  %v1443_v56 = vld [vmem:[#allocation4 + $0x10] sm:$0xff]  ;;  %v3401_v59 = vpack.c.bf16 %v1895_v57, %v1894_v52  ;;  %v3403_v63 = vpack.c.bf16 %v1879_v60, %v1878_v18  ;;  %v1887_v42 = vld [vmem:[%s5129_s4 + $0x358] sm:$0xff] }
 0x2ba   :  { %1340 = vst [vmem:[#allocation4 + $0xc1] sm:$0xff] %v4573_v37  ;;  %1341 = vst [vmem:[#allocation4 + $0xd1] sm:$0xff] %v4575_v44  ;;  %2133 = vmatprep.mubr.f32.mxu0 %v1443_v56  ;;  %1994 = vmatmul.mubr.f32.gmra.mrb[2].mxu1 %v1443_v56  ;;  %v4606_v20 = vld [vmem:[#allocation4 + $0x20] sm:$0xff]  ;;  %v3405_v0 = vpack.c.bf16 %v1897_v62, %v1896_v61  ;;  %v4616_v2 = vld [vmem:[#allocation4 + $0x12] sm:$0xff]  ;;  %v3407_v7 = vpack.c.bf16 %v1881_v1, %v1880_v28 }
 0x2bb   :  { %1342 = vst [vmem:[#allocation4 + $0xe1] sm:$0xff] %v4577_v43  ;;  %1343 = vst [vmem:[#allocation4 + $0xf1] sm:$0xff] %v4579_v55  ;;  %2134 = vmatmul.mubr.f32.vlgmr.msra.gmra.mrb[16].mxu0 %v1411_v9  ;;  %1998 = vmatprep.mubr.f32.mxu1 %v4535_v19  ;;  %v4626_v5 = vld [vmem:[#allocation4 + $0x30] sm:$0xff]  ;;  %v3409_v10 = vpack.c.bf16 %v1899_v4, %v1898_v3  ;;  %v4636_v13 = vld [vmem:[#allocation4 + $0x22] sm:$0xff]  ;;  %v3411_v29 = vpack.c.bf16 %v1883_v12, %v1882_v11 }
 0x2bc   :  { %1344 = vst [vmem:[#allocation4 + $0x101] sm:$0xff] %v4581_v46  ;;  %1346 = vst [vmem:[#allocation4 + $0x121] sm:$0xff] %v4583_v53  ;;  %3400 = vmatpush3.bf16.msra.mxu0 %v3399_v8  ;;  %2138 = vmatprep.mubr.f32.mxu0 %v4606_v20  ;;  %v4646_v27 = vld [vmem:[#allocation4 + $0x40] sm:$0xff]  ;;  %v3413_v30 = vpack.c.bf16 %v1901_v15, %v1900_v14  ;;  %v4656_v33 = vld [vmem:[#allocation4 + $0x32] sm:$0xff]  ;;  %v3415_v38 = vpack.c.bf16 %v1885_v32, %v1884_v25 }
 0x2bd   :  { %3402 = vmatprep.subr.bf16.mxu0 %v3401_v59  ;;  %v4666_v36 = vld [vmem:[#allocation4 + $0x50] sm:$0xff]  ;;  %v3417_v40 = vpack.c.bf16 %v1903_v31, %v1902_v34  ;;  %v4676_v45 = vld [vmem:[#allocation4 + $0x42] sm:$0xff]  ;;  %v3419_v51 = vpack.c.bf16 %v1887_v42, %v1886_v41  ;;  %v3421_v52 = vpack.c.bf16 %v1905_v49, %v1904_v48  ;;  %v1907_v59 = vld [vmem:[%s5129_s4 + $0x3f8] sm:$0xff] }
 0x2be   :  { %1999 = vmatmul.mubr.f32.gmra.mrb[4].mxu1 %v4606_v20  ;;  %v4686_v50 = vld [vmem:[#allocation4 + $0x60] sm:$0xff]  ;;  %v1889_v9 = vld [vmem:[%s5129_s4 + $0x368] sm:$0xff]  ;;  %v4696_v8 = vld [vmem:[#allocation4 + $0x52] sm:$0xff] }
 0x2bf   :  { %2139 = vmatmul.mubr.f32.gmra.mrb[18].mxu0 %v4616_v2  ;;  %2003 = vmatprep.mubr.f32.mxu1 %v4537_v21  ;;  %v1888_v57 = vld [vmem:[%s5129_s4 + $0x360] sm:$0xff]  ;;  %v1906_v56 = vld [vmem:[%s5129_s4 + $0x3f0] sm:$0xff]  ;;  %v1911_v48 = vld [vmem:[%s5129_s4 + $0x418] sm:$0xff] }
 0x2c0   :  { %2143 = vmatprep.mubr.f32.mxu0 %v4626_v5  ;;  %3404 = vmatpush3.bf16.msra.mxu0 %v3403_v63  ;;  %v4706_v18 = vld [vmem:[#allocation4 + $0x70] sm:$0xff]  ;;  %v1387_v60 = vld [vmem:[#allocation4 + $0xa1] sm:$0xff]  ;;  %v3423_v61 = vpack.c.bf16 %v1889_v9, %v1888_v57  ;;  %v3425_v62 = vpack.c.bf16 %v1907_v59, %v1906_v56  ;;  %v1915_v57 = vld [vmem:[%s5129_s4 + $0x438] sm:$0xff] }
 0x2c1   :  { %3406 = vmatprep.subr.bf16.mxu0 %v3405_v0  ;;  %v1890_v63 = vld [vmem:[%s5129_s4 + $0x370] sm:$0xff]  ;;  %v1891_v0 = vld [vmem:[%s5129_s4 + $0x378] sm:$0xff]  ;;  %v4716_v28 = vld [vmem:[#allocation4 + $0x62] sm:$0xff] }
 0x2c2   :  { %2004 = vmatmul.mubr.f32.gmra.mrb[6].mxu1 %v4626_v5  ;;  %v4719_v1 = vld [vmem:[#allocation4 + $0x80] sm:$0xff]  ;;  %v3427_v4 = vpack.c.bf16 %v1891_v0, %v1890_v63  ;;  %v4732_v14 = vld [vmem:[#allocation4 + $0xb2] sm:$0xff] }
 0x2c3   :  { %2144 = vmatmul.mubr.f32.gmra.mrb[20].mxu0 %v4636_v13  ;;  %2008 = vmatprep.mubr.f32.mxu1 %v4539_v22  ;;  %v1355_v3 = vld [vmem:[#allocation4 + $0xa0] sm:$0xff]  ;;  %v4736_v15 = vld [vmem:[#allocation4 + $0xd0] sm:$0xff]  ;;  %v1919_v9 = vld [vmem:[%s5129_s4 + $0x458] sm:$0xff] }
 0x2c4   :  { %2148 = vmatprep.mubr.f32.mxu0 %v4646_v27  ;;  %3408 = vmatpush3.bf16.msra.mxu0 %v3407_v7  ;;  %v4722_v7 = vld [vmem:[#allocation4 + $0x72] sm:$0xff]  ;;  %v1419_v11 = vld [vmem:[#allocation4 + $0xa2] sm:$0xff] }
 0x2c5   :  { %3410 = vmatprep.subr.bf16.mxu0 %v3409_v10  ;;  %v1451_v10 = vld [vmem:[#allocation4 + $0xb0] sm:$0xff]  ;;  %v4728_v12 = vld [vmem:[#allocation4 + $0xc0] sm:$0xff] }
 0x2c6   :  { %2009 = vmatmul.mubr.f32.gmra.mrb[8].mxu1 %v4646_v27  ;;  %v4748_v25 = vld [vmem:[#allocation4 + $0xd2] sm:$0xff]  ;;  %v4756_v34 = vld [vmem:[#allocation4 + $0xe2] sm:$0xff] }
 0x2c7   :  { %2149 = vmatmul.mubr.f32.gmra.mrb[22].mxu0 %v4656_v33  ;;  %2013 = vmatprep.mubr.f32.mxu1 %v4541_v23  ;;  %v4752_v32 = vld [vmem:[#allocation4 + $0xf0] sm:$0xff]  ;;  %v4760_v31 = vld [vmem:[#allocation4 + $0x100] sm:$0xff] }
 0x2c8   :  { %2153 = vmatprep.mubr.f32.mxu0 %v4666_v36  ;;  %3412 = vmatpush3.bf16.msra.mxu0 %v3411_v29  ;;  %v4740_v29 = vld [vmem:[#allocation4 + $0xc2] sm:$0xff]  ;;  %v1910_v42 = vld [vmem:[%s5129_s4 + $0x410] sm:$0xff] }
 0x2c9   :  { %3414 = vmatprep.subr.bf16.mxu0 %v3413_v30  ;;  %v4744_v30 = vld [vmem:[#allocation4 + $0xe0] sm:$0xff]  ;;  %v4786_v49 = vld [vmem:[#allocation4 + $0x112] sm:$0xff] }
 0x2ca   :  { %2014 = vmatmul.mubr.f32.gmra.mrb[10].mxu1 %v4666_v36  ;;  %v4773_v41 = vld [vmem:[#allocation4 + $0x102] sm:$0xff]  ;;  %v1579_v63 = vld [vmem:[#allocation4 + $0x91] sm:$0xff] }
 0x2cb   :  { %2154 = vmatmul.mubr.f32.gmra.mrb[24].mxu0 %v4676_v45  ;;  %2018 = vmatprep.mubr.f32.mxu1 %v4543_v24  ;;  %v4782_v6 = vld [vmem:[#allocation4 + $0x120] sm:$0xff] }
 0x2cc   :  { %2158 = vmatprep.mubr.f32.mxu0 %v4686_v50  ;;  %3416 = vmatpush3.bf16.msra.mxu0 %v3415_v38  ;;  %v4764_v38 = vld [vmem:[#allocation4 + $0xf2] sm:$0xff] }
 0x2cd   :  { %3418 = vmatprep.subr.bf16.mxu0 %v3417_v40  ;;  %v4769_v40 = vld [vmem:[#allocation4 + $0x110] sm:$0xff] }
 0x2ce   :  { %2019 = vmatmul.mubr.f32.gmra.mrb[12].mxu1 %v4686_v50 }
 0x2cf   :  { %2159 = vmatmul.mubr.f32.gmra.mrb[26].mxu0 %v4696_v8  ;;  %2023 = vmatprep.mubr.f32.mxu1 %v4545_v26 }
 0x2d0   :  { %2163 = vmatprep.mubr.f32.mxu0 %v4706_v18  ;;  %3420 = vmatpush3.bf16.msra.mxu0 %v3419_v51  ;;  %v1912_v51 = vld [vmem:[%s5129_s4 + $0x420] sm:$0xff] }
 0x2d1   :  { %3422 = vmatprep.subr.bf16.mxu0 %v3421_v52  ;;  %v1913_v52 = vld [vmem:[%s5129_s4 + $0x428] sm:$0xff] }
 0x2d2   :  { %2024 = vmatmul.mubr.f32.gmra.mrb[14].mxu1 %v4706_v18 }
 0x2d3   :  { %2164 = vmatmul.mubr.f32.gmra.mrb[28].mxu0 %v4716_v28  ;;  %2028 = vmatprep.mubr.f32.mxu1 %v1387_v60  ;;  %v1920_v60 = vld [vmem:[%s5129_s4 + $0x460] sm:$0xff] }
 0x2d4   :  { %2168 = vmatprep.mubr.f32.mxu0 %v4719_v1  ;;  %3424 = vmatpush3.bf16.msra.mxu0 %v3423_v61  ;;  %v1921_v61 = vld [vmem:[%s5129_s4 + $0x468] sm:$0xff] }
 0x2d5   :  { %3426 = vmatprep.subr.bf16.mxu0 %v3425_v62  ;;  %v1923_v62 = vld [vmem:[%s5129_s4 + $0x478] sm:$0xff] }
 0x2d6   :  { %2029 = vmatmul.mubr.f32.gmra.mrb[16].mxu1 %v1355_v3 }
 0x2d7   :  { %2169 = vmatmul.mubr.f32.gmra.mrb[30].mxu0 %v4722_v7  ;;  %2033 = vmatprep.mubr.f32.mxu1 %v4571_v39 }
 0x2d8   :  { %2173 = vmatprep.mubr.f32.mxu0 %v1451_v10  ;;  %3428 = vmatpush3.bf16.msra.mxu0 %v3427_v4 }
 0x2d9   :  { %3430 = vmatprep.subr.bf16.mxu0 %v4476_v47 }
 0x2da   :  { %2034 = vmatmul.mubr.f32.gmra.mrb[18].mxu1 %v1451_v10 }
 0x2db   :  { %2174 = vmatmul.mubr.f32.gmra.mrb[32].mxu0 %v1419_v11  ;;  %2038 = vmatprep.mubr.f32.mxu1 %v4573_v37 }
 0x2dc   :  { %2178 = vmatprep.mubr.f32.mxu0 %v4728_v12 }
 0x2de   :  { %2039 = vmatmul.mubr.f32.gmra.mrb[20].mxu1 %v4728_v12 }
 0x2df   :  { %2179 = vmatmul.mubr.f32.gmra.mrb[34].mxu0 %v4732_v14  ;;  %2043 = vmatprep.mubr.f32.mxu1 %v4575_v44 }
 0x2e0   :  { %2183 = vmatprep.mubr.f32.mxu0 %v4736_v15 }
 0x2e2   :  { %2044 = vmatmul.mubr.f32.gmra.mrb[22].mxu1 %v4736_v15 }
 0x2e3   :  { %2184 = vmatmul.mubr.f32.gmra.mrb[36].mxu0 %v4740_v29  ;;  %2048 = vmatprep.mubr.f32.mxu1 %v4577_v43 }
 0x2e4   :  { %2188 = vmatprep.mubr.f32.mxu0 %v4744_v30 }
 0x2e6   :  { %2049 = vmatmul.mubr.f32.gmra.mrb[24].mxu1 %v4744_v30 }
 0x2e7   :  { %2189 = vmatmul.mubr.f32.gmra.mrb[38].mxu0 %v4748_v25  ;;  %2053 = vmatprep.mubr.f32.mxu1 %v4579_v55 }
 0x2e8   :  { %2193 = vmatprep.mubr.f32.mxu0 %v4752_v32 }
 0x2ea   :  { %2054 = vmatmul.mubr.f32.gmra.mrb[26].mxu1 %v4752_v32 }
 0x2eb   :  { %2194 = vmatmul.mubr.f32.gmra.mrb[40].mxu0 %v4756_v34  ;;  %2058 = vmatprep.mubr.f32.mxu1 %v4581_v46 }
 0x2ec   :  { %2198 = vmatprep.mubr.f32.mxu0 %v4760_v31 }
 0x2ee   :  { %2059 = vmatmul.mubr.f32.gmra.mrb[28].mxu1 %v4760_v31 }
 0x2ef   :  { %2199 = vmatmul.mubr.f32.gmra.mrb[42].mxu0 %v4764_v38  ;;  %2063 = vmatprep.mubr.f32.mxu1 %v1279_v54  ;;  %v3433_v54 = vpack.c.bf16 %v1911_v48, %v1910_v42 }
 0x2f0   :  { %2203 = vmatprep.mubr.f32.mxu0 %v4769_v40 }
 0x2f2   :  { %2064 = vmatmul.mubr.f32.gmra.mrb[30].mxu1 %v4769_v40 }
 0x2f3   :  { %2204 = vmatmul.mubr.f32.gmra.mrb[44].mxu0 %v4773_v41  ;;  %2278 = vmatprep.mubr.f32.mxu1 %v4616_v2  ;;  %v1914_v2 = vld [vmem:[%s5129_s4 + $0x430] sm:$0xff] }
 0x2f4   :  { %2208 = vmatprep.mubr.f32.mxu0 %v4782_v6 }
 0x2f6   :  { %2279 = vmatmul.mubr.f32.vlgmr.msra.gmra.mrb[32].mxu1 %v4533_v16  ;;  %v3437_v16 = vpack.c.bf16 %v1913_v52, %v1912_v51 }
 0x2f7   :  { %2209 = vmatmul.mubr.f32.gmra.mrb[46].mxu0 %v4786_v49  ;;  %2283 = vmatprep.mubr.f32.mxu1 %v4636_v13 }
 0x2f8   :  { %2423 = vmatprep.mubr.f32.mxu0 %v4535_v19  ;;  %3469 = vmatpush3.bf16.msra.mxu1 %v4476_v47 }
 0x2f9   :  { %3462 = vmatprep.subr.bf16.mxu1 %v3433_v54 }
 0x2fa   :  { %2284 = vmatmul.mubr.f32.gmra.mrb[34].mxu1 %v4535_v19  ;;  %v3441_v19 = vpack.c.bf16 %v1915_v57, %v1914_v2 }
 0x2fb   :  { %2424 = vmatmul.mubr.f32.vlgmr.msra.gmra.mrb[48].mxu0 %v4606_v20  ;;  %2288 = vmatprep.mubr.f32.mxu1 %v4656_v33  ;;  %v1916_v20 = vld [vmem:[%s5129_s4 + $0x440] sm:$0xff]  ;;  %v2883_v56 = vpop.f32.mrb[0].mxu1 }
 0x2fc   :  { %3432 = vmatpush3.bf16.msra.mxu0 %v4476_v47  ;;  %2428 = vmatprep.mubr.f32.mxu0 %v4537_v21  ;;  %v1917_v47 = vld [vmem:[%s5129_s4 + $0x448] sm:$0xff] }
 0x2fd   :  { %3434 = vmatprep.subr.bf16.mxu0 %v3433_v54  ;;  %3470 = vmatpush3.bf16.msra.mxu1 %v3433_v54 }
 0x2fe   :  { %2289 = vmatmul.mubr.f32.gmra.mrb[36].mxu1 %v4537_v21  ;;  %3463 = vmatprep.subr.bf16.mxu1 %v3437_v16  ;;  %v3445_v21 = vpack.c.bf16 %v1917_v47, %v1916_v20 }
 0x2ff   :  { %2429 = vmatmul.mubr.f32.gmra.mrb[50].mxu0 %v4626_v5  ;;  %2293 = vmatprep.mubr.f32.mxu1 %v4676_v45  ;;  %v1918_v5 = vld [vmem:[%s5129_s4 + $0x450] sm:$0xff] }
 0x300   :  { %2433 = vmatprep.mubr.f32.mxu0 %v4539_v22  ;;  %3436 = vmatpush3.bf16.msra.mxu0 %v3433_v54 }
 0x301   :  { %3438 = vmatprep.subr.bf16.mxu0 %v3437_v16  ;;  %3471 = vmatpush3.bf16.msra.mxu1 %v3437_v16 }
 0x302   :  { %2294 = vmatmul.mubr.f32.gmra.mrb[38].mxu1 %v4539_v22  ;;  %3464 = vmatprep.subr.bf16.mxu1 %v3441_v19  ;;  %v2884_v22 = vpop.f32.mrb[1].mxu1 }
 0x303   :  { %2434 = vmatmul.mubr.f32.gmra.mrb[52].mxu0 %v4646_v27  ;;  %2298 = vmatprep.mubr.f32.mxu1 %v4696_v8  ;;  %v3449_v27 = vpack.c.bf16 %v1919_v9, %v1918_v5  ;;  %v4831_v59 = vadd.f32 %v2884_v22, %v2883_v56 }
 0x304   :  { %2438 = vmatprep.mubr.f32.mxu0 %v4541_v23  ;;  %3440 = vmatpush3.bf16.msra.mxu0 %v3437_v16 }
 0x305   :  { %3442 = vmatprep.subr.bf16.mxu0 %v3441_v19  ;;  %3472 = vmatpush3.bf16.msra.mxu1 %v3441_v19 }
 0x306   :  { %2299 = vmatmul.mubr.f32.gmra.mrb[40].mxu1 %v4541_v23  ;;  %3465 = vmatprep.subr.bf16.mxu1 %v3445_v21  ;;  %v3453_v23 = vpack.c.bf16 %v1921_v61, %v1920_v60 }
 0x307   :  { %2439 = vmatmul.mubr.f32.gmra.mrb[54].mxu0 %v4666_v36  ;;  %2303 = vmatprep.mubr.f32.mxu1 %v4716_v28  ;;  %v1922_v36 = vld [vmem:[%s5129_s4 + $0x470] sm:$0xff] }
 0x308   :  { %2443 = vmatprep.mubr.f32.mxu0 %v4543_v24  ;;  %3444 = vmatpush3.bf16.msra.mxu0 %v3441_v19 }
 0x309   :  { %3446 = vmatprep.subr.bf16.mxu0 %v3445_v21  ;;  %3473 = vmatpush3.bf16.msra.mxu1 %v3445_v21 }
 0x30a   :  { %2304 = vmatmul.mubr.f32.gmra.mrb[42].mxu1 %v4543_v24  ;;  %3466 = vmatprep.subr.bf16.mxu1 %v3449_v27  ;;  %v1514_v24 = vld [vmem:[#allocation4 + $0x82] sm:$0xff] }
 0x30b   :  { %2444 = vmatmul.mubr.f32.gmra.mrb[56].mxu0 %v4686_v50  ;;  %2308 = vmatprep.mubr.f32.mxu1 %v4722_v7  ;;  %v3457_v50 = vpack.c.bf16 %v1923_v62, %v1922_v36 }
 0x30c   :  { %2448 = vmatprep.mubr.f32.mxu0 %v4545_v26  ;;  %3448 = vmatpush3.bf16.msra.mxu0 %v3445_v21 }
 0x30d   :  { %3450 = vmatprep.subr.bf16.mxu0 %v3449_v27  ;;  %3474 = vmatpush3.bf16.msra.mxu1 %v3449_v27 }
 0x30e   :  { %2309 = vmatmul.mubr.f32.gmra.mrb[44].mxu1 %v4545_v26  ;;  %3467 = vmatprep.subr.bf16.mxu1 %v3453_v23  ;;  %v1547_v26 = vld [vmem:[#allocation4 + $0x90] sm:$0xff] }
 0x30f   :  { %2449 = vmatmul.mubr.f32.gmra.mrb[58].mxu0 %v4706_v18  ;;  %2313 = vmatprep.mubr.f32.mxu1 %v1514_v24 }
 0x310   :  { %2453 = vmatprep.mubr.f32.mxu0 %v4569_v58  ;;  %3452 = vmatpush3.bf16.msra.mxu0 %v3449_v27 }
 0x311   :  { %3454 = vmatprep.subr.bf16.mxu0 %v3453_v23  ;;  %3475 = vmatpush3.bf16.msra.mxu1 %v3453_v23 }
 0x312   :  { %2314 = vmatmul.mubr.f32.gmra.mrb[46].mxu1 %v4569_v58  ;;  %3468 = vmatprep.subr.bf16.mxu1 %v3457_v50  ;;  %v1585_v58 = vld [vmem:[#allocation4 + $0x111] sm:$0xff] }
 0x313   :  { %2454 = vmatmul.mubr.f32.gmra.mrb[60].mxu0 %v4719_v1  ;;  %2318 = vmatprep.mubr.f32.mxu1 %v4732_v14 }
 0x314   :  { %2458 = vmatprep.mubr.f32.mxu0 %v1579_v63  ;;  %3456 = vmatpush3.bf16.msra.mxu0 %v3453_v23 }
 0x315   :  { %3458 = vmatprep.subr.bf16.mxu0 %v3457_v50  ;;  %3476 = vmatpush3.bf16.msra.mxu1 %v3457_v50 }
 0x316   :  { %2319 = vmatmul.mubr.f32.gmra.mrb[48].mxu1 %v4571_v39  ;;  %v1522_v39 = vld [vmem:[#allocation4 + $0x122] sm:$0xff] }
 0x317   :  { %2459 = vmatmul.mubr.f32.gmra.mrb[62].mxu0 %v1547_v26  ;;  %2323 = vmatprep.mubr.f32.mxu1 %v4740_v29 }
 0x318   :  { %2463 = vmatprep.mubr.f32.mxu0 %v4573_v37  ;;  %3460 = vmatpush3.bf16.msra.mxu0 %v3457_v50 }
 0x31a   :  { %2324 = vmatmul.mubr.f32.gmra.mrb[50].mxu1 %v4573_v37  ;;  %v1587_v37 = vld [vmem:[#allocation4 + $0x131] sm:$0xff] }
 0x31b   :  { %2464 = vmatmul.mubr.f32.gmra.mrb[64].mxu0 %v4728_v12  ;;  %2328 = vmatprep.mubr.f32.mxu1 %v4748_v25 }
 0x31c   :  { %2468 = vmatprep.mubr.f32.mxu0 %v4575_v44 }
 0x31e   :  { %2329 = vmatmul.mubr.f32.gmra.mrb[52].mxu1 %v4575_v44  ;;  %v1555_v44 = vld [vmem:[#allocation4 + $0x130] sm:$0xff] }
 0x31f   :  { %2469 = vmatmul.mubr.f32.gmra.mrb[66].mxu0 %v4736_v15  ;;  %2333 = vmatprep.mubr.f32.mxu1 %v4756_v34 }
 0x320   :  { %2473 = vmatprep.mubr.f32.mxu0 %v4577_v43 }
 0x322   :  { %2334 = vmatmul.mubr.f32.gmra.mrb[54].mxu1 %v4577_v43  ;;  %v1611_v43 = vld [vmem:[#allocation4 + $0x92] sm:$0xff] }
 0x323   :  { %2474 = vmatmul.mubr.f32.gmra.mrb[68].mxu0 %v4744_v30  ;;  %2338 = vmatprep.mubr.f32.mxu1 %v4764_v38 }
 0x324   :  { %2478 = vmatprep.mubr.f32.mxu0 %v4579_v55 }
 0x326   :  { %2339 = vmatmul.mubr.f32.gmra.mrb[56].mxu1 %v4579_v55  ;;  %v1619_v55 = vld [vmem:[#allocation4 + $0x132] sm:$0xff] }
 0x327   :  { %2479 = vmatmul.mubr.f32.gmra.mrb[70].mxu0 %v4752_v32  ;;  %2343 = vmatprep.mubr.f32.mxu1 %v4773_v41 }
 0x328   :  { %2483 = vmatprep.mubr.f32.mxu0 %v4581_v46 }
 0x32a   :  { %2344 = vmatmul.mubr.f32.gmra.mrb[58].mxu1 %v4581_v46 }
 0x32b   :  { %2484 = vmatmul.mubr.f32.gmra.mrb[72].mxu0 %v4760_v31  ;;  %2348 = vmatprep.mubr.f32.mxu1 %v4786_v49 }
 0x32c   :  { %2488 = vmatprep.mubr.f32.mxu0 %v1585_v58 }
 0x32e   :  { %2349 = vmatmul.mubr.f32.gmra.mrb[60].mxu1 %v1585_v58 }
 0x32f   :  { %2489 = vmatmul.mubr.f32.gmra.mrb[74].mxu0 %v4769_v40  ;;  %2353 = vmatprep.mubr.f32.mxu1 %v1522_v39 }
 0x330   :  { %2493 = vmatprep.mubr.f32.mxu0 %v4583_v53 }
 0x332   :  { %2354 = vmatmul.mubr.f32.gmra.mrb[62].mxu1 %v4583_v53 }
 0x333   :  { %2494 = vmatmul.mubr.f32.gmra.mrb[76].mxu0 %v4782_v6  ;;  %3275 = vmatprep.mubr.f32.mxu1 %v4716_v28 }
 0x334   :  { %2498 = vmatprep.mubr.f32.mxu0 %v1587_v37 }
 0x336   :  { %3276 = vmatmul.mubr.f32.vlgmr.msra.gmra.mrb[64].mxu1 %v4722_v7 }
 0x337   :  { %2499 = vmatmul.mubr.f32.gmra.mrb[78].mxu0 %v1555_v44  ;;  %3278 = vmatprep.mubr.f32.mxu1 %v1514_v24 }
 0x338   :  { %3269 = vmatprep.mubr.f32.mxu0 %v4636_v13 }
 0x33a   :  { %3279 = vmatmul.mubr.f32.gmra.mrb[66].mxu1 %v1611_v43 }
 0x33b   :  { %3270 = vmatmul.mubr.f32.vlgmr.msra.gmra.mrb[80].mxu0 %v4656_v33  ;;  %3281 = vmatprep.mubr.f32.mxu1 %v4740_v29 }
 0x33c   :  { %3272 = vmatprep.mubr.f32.mxu0 %v4676_v45 }
 0x33e   :  { %3282 = vmatmul.mubr.f32.gmra.mrb[68].mxu1 %v4748_v25 }
 0x33f   :  { %3273 = vmatmul.mubr.f32.gmra.mrb[82].mxu0 %v4696_v8  ;;  %3284 = vmatprep.mubr.f32.mxu1 %v4756_v34 }
 0x342   :  { %3285 = vmatmul.mubr.f32.gmra.mrb[70].mxu1 %v4764_v38 }
 0x343   :  { %3287 = vmatprep.mubr.f32.mxu1 %v4773_v41 }
 0x346   :  { %3288 = vmatmul.mubr.f32.gmra.mrb[72].mxu1 %v4786_v49 }
 0x347   :  { %3290 = vmatprep.mubr.f32.mxu1 %v1522_v39 }
 0x34a   :  { %3291 = vmatmul.mubr.f32.gmra.mrb[74].mxu1 %v1619_v55 }
 0x38d   :  { %v2886_v46 = vpop.f32.mrb[2].mxu1 }
 0x38e   :  { %v2963_v53 = vpop.f32.mrb[16].mxu0  ;;  %v2887_v13 = vpop.f32.mrb[3].mxu1 }
 0x38f   :  { %v2888_v33 = vadd.f32 %v2887_v13, %v2886_v46  ;;  %v2964_v45 = vpop.f32.mrb[17].mxu0 }
 0x390   :  { %v2965_v18 = vadd.f32 %v2964_v45, %v2963_v53 }
 0x391   :  { %v2889_v0 = vpop.f32.mrb[4].mxu1 }
 0x392   :  { %v4897_v8 = vadd.f32 %v2965_v18, %v4831_v59  ;;  %v2966_v28 = vpop.f32.mrb[18].mxu0  ;;  %v2890_v1 = vpop.f32.mrb[5].mxu1 }
 0x393   :  { %v2891_v3 = vadd.f32 %v2890_v1, %v2889_v0  ;;  %v2967_v4 = vpop.f32.mrb[19].mxu0 }
 0x394   :  { %v2968_v7 = vadd.f32 %v2967_v4, %v2966_v28 }
 0x395   :  { %v2892_v10 = vpop.f32.mrb[6].mxu1 }
 0x396   :  { %v4899_v11 = vadd.f32 %v2968_v7, %v2888_v33  ;;  %v2969_v12 = vpop.f32.mrb[20].mxu0  ;;  %v2893_v14 = vpop.f32.mrb[7].mxu1 }
 0x397   :  { %v2894_v15 = vadd.f32 %v2893_v14, %v2892_v10  ;;  %v2970_v29 = vpop.f32.mrb[21].mxu0 }
 0x398   :  { %v2971_v30 = vadd.f32 %v2970_v29, %v2969_v12 }
 0x399   :  { %v2895_v25 = vpop.f32.mrb[8].mxu1 }
 0x39a   :  { %v4901_v32 = vadd.f32 %v2971_v30, %v2891_v3  ;;  %v2972_v34 = vpop.f32.mrb[22].mxu0  ;;  %v2896_v31 = vpop.f32.mrb[9].mxu1 }
 0x39b   :  { %v2897_v38 = vadd.f32 %v2896_v31, %v2895_v25  ;;  %v2973_v40 = vpop.f32.mrb[23].mxu0 }
 0x39c   :  { %v2974_v41 = vadd.f32 %v2973_v40, %v2972_v34 }
 0x39d   :  { %v2898_v42 = vpop.f32.mrb[10].mxu1 }
 0x39e   :  { %v4903_v48 = vadd.f32 %v2974_v41, %v2894_v15  ;;  %v2975_v6 = vpop.f32.mrb[24].mxu0  ;;  %v2899_v54 = vpop.f32.mrb[11].mxu1 }
 0x39f   :  { %v2900_v49 = vadd.f32 %v2899_v54, %v2898_v42  ;;  %v2976_v51 = vpop.f32.mrb[25].mxu0 }
 0x3a0   :  { %v2977_v52 = vadd.f32 %v2976_v51, %v2975_v6 }
 0x3a1   :  { %v2901_v16 = vpop.f32.mrb[12].mxu1 }
 0x3a2   :  { %v4905_v2 = vadd.f32 %v2977_v52, %v2897_v38  ;;  %v2978_v57 = vpop.f32.mrb[26].mxu0  ;;  %v2902_v19 = vpop.f32.mrb[13].mxu1 }
 0x3a3   :  { %v2903_v20 = vadd.f32 %v2902_v19, %v2901_v16  ;;  %v2979_v47 = vpop.f32.mrb[27].mxu0 }
 0x3a4   :  { %v2980_v21 = vadd.f32 %v2979_v47, %v2978_v57 }
 0x3a5   :  { %v2904_v5 = vpop.f32.mrb[14].mxu1 }
 0x3a6   :  { %v4907_v9 = vadd.f32 %v2980_v21, %v2900_v49  ;;  %v2981_v56 = vpop.f32.mrb[28].mxu0  ;;  %v2905_v22 = vpop.f32.mrb[15].mxu1 }
 0x3a7   :  { %v2906_v27 = vadd.f32 %v2905_v22, %v2904_v5  ;;  %v2982_v59 = vpop.f32.mrb[29].mxu0 }
 0x3a8   :  { %v2983_v60 = vadd.f32 %v2982_v59, %v2981_v56 }
 0x3a9   :  { %v2907_v61 = vpop.f32.mrb[16].mxu1 }
 0x3aa   :  { %v4909_v23 = vadd.f32 %v2983_v60, %v2903_v20  ;;  %v2984_v36 = vpop.f32.mrb[30].mxu0  ;;  %v2908_v62 = vpop.f32.mrb[17].mxu1 }
 0x3ab   :  { %v2985_v24 = vpop.f32.mrb[31].mxu0  ;;  %v2909_v50 = vadd.f32 %v2908_v62, %v2907_v61 }
 0x3ac   :  { %v2986_v63 = vadd.f32 %v2985_v24, %v2984_v36 }
 0x3ad   :  { %v2910_v26 = vpop.f32.mrb[18].mxu1 }
 0x3ae   :  { %v4911_v58 = vadd.f32 %v2986_v63, %v2906_v27  ;;  %v2987_v39 = vpop.f32.mrb[32].mxu0  ;;  %v2911_v37 = vpop.f32.mrb[19].mxu1 }
 0x3af   :  { %v2912_v44 = vadd.f32 %v2911_v37, %v2910_v26  ;;  %v2988_v43 = vpop.f32.mrb[33].mxu0 }
 0x3b0   :  { %v2989_v55 = vadd.f32 %v2988_v43, %v2987_v39 }
 0x3b1   :  { %v2913_v46 = vpop.f32.mrb[20].mxu1 }
 0x3b2   :  { %v4913_v53 = vadd.f32 %v2989_v55, %v2909_v50  ;;  %v2990_v13 = vpop.f32.mrb[34].mxu0  ;;  %v2914_v33 = vpop.f32.mrb[21].mxu1 }
 0x3b3   :  { %v2915_v45 = vadd.f32 %v2914_v33, %v2913_v46  ;;  %v2991_v18 = vpop.f32.mrb[35].mxu0 }
 0x3b4   :  { %v2992_v0 = vadd.f32 %v2991_v18, %v2990_v13 }
 0x3b5   :  { %v2916_v28 = vpop.f32.mrb[22].mxu1 }
 0x3b6   :  { %v4915_v1 = vadd.f32 %v2992_v0, %v2912_v44  ;;  %v2993_v3 = vpop.f32.mrb[36].mxu0  ;;  %v2917_v4 = vpop.f32.mrb[23].mxu1 }
 0x3b7   :  { %v2918_v7 = vadd.f32 %v2917_v4, %v2916_v28  ;;  %v2994_v10 = vpop.f32.mrb[37].mxu0 }
 0x3b8   :  { %v2995_v12 = vadd.f32 %v2994_v10, %v2993_v3 }
 0x3b9   :  { %v2919_v14 = vpop.f32.mrb[24].mxu1 }
 0x3ba   :  { %v4917_v15 = vadd.f32 %v2995_v12, %v2915_v45  ;;  %v2996_v29 = vpop.f32.mrb[38].mxu0  ;;  %v2920_v30 = vpop.f32.mrb[25].mxu1 }
 0x3bb   :  { %v2921_v25 = vadd.f32 %v2920_v30, %v2919_v14  ;;  %v2997_v34 = vpop.f32.mrb[39].mxu0 }
 0x3bc   :  { %v2998_v31 = vadd.f32 %v2997_v34, %v2996_v29 }
 0x3bd   :  { %v2922_v38 = vpop.f32.mrb[26].mxu1 }
 0x3be   :  { %v4919_v40 = vadd.f32 %v2998_v31, %v2918_v7  ;;  %v2999_v41 = vpop.f32.mrb[40].mxu0  ;;  %v2923_v42 = vpop.f32.mrb[27].mxu1 }
 0x3bf   :  { %v2924_v6 = vadd.f32 %v2923_v42, %v2922_v38  ;;  %v3000_v54 = vpop.f32.mrb[41].mxu0 }
 0x3c0   :  { %v3001_v49 = vadd.f32 %v3000_v54, %v2999_v41 }
 0x3c1   :  { %v2925_v51 = vpop.f32.mrb[28].mxu1 }
 0x3c2   :  { %v4921_v52 = vadd.f32 %v3001_v49, %v2921_v25  ;;  %v3002_v16 = vpop.f32.mrb[42].mxu0  ;;  %v2926_v57 = vpop.f32.mrb[29].mxu1 }
 0x3c3   :  { %v2927_v19 = vadd.f32 %v2926_v57, %v2925_v51  ;;  %v3003_v20 = vpop.f32.mrb[43].mxu0 }
 0x3c4   :  { %v3004_v47 = vadd.f32 %v3003_v20, %v3002_v16 }
 0x3c5   :  { %v2928_v21 = vpop.f32.mrb[30].mxu1 }
 0x3c6   :  { %v4923_v5 = vadd.f32 %v3004_v47, %v2924_v6  ;;  %v3005_v56 = vpop.f32.mrb[44].mxu0  ;;  %v2929_v22 = vpop.f32.mrb[31].mxu1 }
 0x3c7   :  { %v2930_v27 = vadd.f32 %v2929_v22, %v2928_v21  ;;  %v3006_v59 = vpop.f32.mrb[45].mxu0 }
 0x3c8   :  { %v3007_v60 = vadd.f32 %v3006_v59, %v3005_v56 }
 0x3c9   :  { %v3043_v61 = vpop.f32.mrb[32].mxu1 }
 0x3ca   :  { %v4925_v36 = vadd.f32 %v3007_v60, %v2927_v19  ;;  %v3008_v62 = vpop.f32.mrb[46].mxu0  ;;  %v3044_v24 = vpop.f32.mrb[33].mxu1 }
 0x3cb   :  { %v3009_v50 = vpop.f32.mrb[47].mxu0  ;;  %v3045_v63 = vadd.f32 %v3044_v24, %v3043_v61 }
 0x3cc   :  { %v3010_v26 = vadd.f32 %v3009_v50, %v3008_v62 }
 0x3cd   :  { %v2281_v39 = vadd.f32 %v3045_v63, %v4897_v8  ;;  %v3046_v37 = vpop.f32.mrb[34].mxu1 }
 0x3ce   :  { %v4928_v44 = vadd.f32 %v3010_v26, %v2930_v27  ;;  %v3123_v43 = vpop.f32.mrb[48].mxu0  ;;  %v3047_v55 = vpop.f32.mrb[35].mxu1 }
 0x3cf   :  { %v3048_v46 = vadd.f32 %v3047_v55, %v3046_v37  ;;  %v3124_v13 = vpop.f32.mrb[49].mxu0 }
 0x3d0   :  { %v3125_v33 = vadd.f32 %v3124_v13, %v3123_v43 }
 0x3d1   :  { %v2286_v45 = vadd.f32 %v3048_v46, %v4899_v11  ;;  %v3049_v18 = vpop.f32.mrb[36].mxu1 }
 0x3d2   :  { %v3126_v0 = vpop.f32.mrb[50].mxu0  ;;  %v3050_v28 = vpop.f32.mrb[37].mxu1  ;;  %v4931_v3 = vadd.f32 %v3125_v33, %v2281_v39 }
 0x3d3   :  { %v3051_v4 = vadd.f32 %v3050_v28, %v3049_v18  ;;  %v3127_v7 = vpop.f32.mrb[51].mxu0 }
 0x3d4   :  { %v3128_v10 = vadd.f32 %v3127_v7, %v3126_v0 }
 0x3d5   :  { %v2291_v8 = vadd.f32 %v3051_v4, %v4901_v32  ;;  %v3052_v12 = vpop.f32.mrb[38].mxu1 }
 0x3d6   :  { %v3129_v14 = vpop.f32.mrb[52].mxu0  ;;  %v3053_v29 = vpop.f32.mrb[39].mxu1  ;;  %v4934_v30 = vadd.f32 %v3128_v10, %v2286_v45 }
 0x3d7   :  { %v3054_v25 = vadd.f32 %v3053_v29, %v3052_v12  ;;  %v3130_v34 = vpop.f32.mrb[53].mxu0 }
 0x3d8   :  { %v3131_v31 = vadd.f32 %v3130_v34, %v3129_v14 }
 0x3d9   :  { %v2296_v11 = vadd.f32 %v3054_v25, %v4903_v48  ;;  %v3055_v38 = vpop.f32.mrb[40].mxu1 }
 0x3da   :  { %v3132_v41 = vpop.f32.mrb[54].mxu0  ;;  %v3056_v42 = vpop.f32.mrb[41].mxu1  ;;  %v4937_v6 = vadd.f32 %v3131_v31, %v2291_v8 }
 0x3db   :  { %v3057_v54 = vadd.f32 %v3056_v42, %v3055_v38  ;;  %v3133_v49 = vpop.f32.mrb[55].mxu0 }
 0x3dc   :  { %v3134_v51 = vadd.f32 %v3133_v49, %v3132_v41 }
 0x3dd   :  { %v2301_v32 = vadd.f32 %v3057_v54, %v4905_v2  ;;  %v3058_v16 = vpop.f32.mrb[42].mxu1 }
 0x3de   :  { %v3135_v57 = vpop.f32.mrb[56].mxu0  ;;  %v3059_v19 = vpop.f32.mrb[43].mxu1  ;;  %v4940_v20 = vadd.f32 %v3134_v51, %v2296_v11 }
 0x3df   :  { %v3060_v47 = vadd.f32 %v3059_v19, %v3058_v16  ;;  %v3136_v21 = vpop.f32.mrb[57].mxu0 }
 0x3e0   :  { %v3137_v56 = vadd.f32 %v3136_v21, %v3135_v57 }
 0x3e1   :  { %v2306_v48 = vadd.f32 %v3060_v47, %v4907_v9  ;;  %v3061_v22 = vpop.f32.mrb[44].mxu1 }
 0x3e2   :  { %v3138_v27 = vpop.f32.mrb[58].mxu0  ;;  %v3062_v59 = vpop.f32.mrb[45].mxu1  ;;  %v4943_v60 = vadd.f32 %v3137_v56, %v2301_v32 }
 0x3e3   :  { %v3063_v61 = vadd.f32 %v3062_v59, %v3061_v22  ;;  %v3139_v62 = vpop.f32.mrb[59].mxu0 }
 0x3e4   :  { %v3140_v24 = vadd.f32 %v3139_v62, %v3138_v27 }
 0x3e5   :  { %v2311_v2 = vadd.f32 %v3063_v61, %v4909_v23  ;;  %v3064_v50 = vpop.f32.mrb[46].mxu1 }
 0x3e6   :  { %v3141_v63 = vpop.f32.mrb[60].mxu0  ;;  %v3065_v26 = vpop.f32.mrb[47].mxu1  ;;  %v4946_v39 = vadd.f32 %v3140_v24, %v2306_v48 }
 0x3e7   :  { %v3066_v37 = vadd.f32 %v3065_v26, %v3064_v50  ;;  %v3142_v43 = vpop.f32.mrb[61].mxu0 }
 0x3e8   :  { %v3143_v55 = vadd.f32 %v3142_v43, %v3141_v63 }
 0x3e9   :  { %v2316_v9 = vadd.f32 %v3066_v37, %v4911_v58  ;;  %v3067_v46 = vpop.f32.mrb[48].mxu1 }
 0x3ea   :  { %v3144_v13 = vpop.f32.mrb[62].mxu0  ;;  %v3068_v33 = vpop.f32.mrb[49].mxu1  ;;  %v4949_v45 = vadd.f32 %v3143_v55, %v2311_v2 }
 0x3eb   :  { %v3069_v18 = vadd.f32 %v3068_v33, %v3067_v46  ;;  %v3145_v0 = vpop.f32.mrb[63].mxu0 }
 0x3ec   :  { %v3146_v28 = vadd.f32 %v3145_v0, %v3144_v13 }
 0x3ed   :  { %v2321_v23 = vadd.f32 %v3069_v18, %v4913_v53  ;;  %v3070_v4 = vpop.f32.mrb[50].mxu1 }
 0x3ee   :  { %v3147_v7 = vpop.f32.mrb[64].mxu0  ;;  %v3071_v10 = vpop.f32.mrb[51].mxu1  ;;  %v4952_v8 = vadd.f32 %v3146_v28, %v2316_v9 }
 0x3ef   :  { %v3072_v12 = vadd.f32 %v3071_v10, %v3070_v4  ;;  %v3148_v14 = vpop.f32.mrb[65].mxu0 }
 0x3f0   :  { %v3149_v29 = vadd.f32 %v3148_v14, %v3147_v7 }
 0x3f1   :  { %v2326_v58 = vadd.f32 %v3072_v12, %v4915_v1  ;;  %v3073_v25 = vpop.f32.mrb[52].mxu1 }
 0x3f2   :  { %v3150_v34 = vpop.f32.mrb[66].mxu0  ;;  %v3074_v31 = vpop.f32.mrb[53].mxu1  ;;  %v4955_v11 = vadd.f32 %v3149_v29, %v2321_v23 }
 0x3f3   :  { %v3075_v38 = vadd.f32 %v3074_v31, %v3073_v25  ;;  %v3151_v41 = vpop.f32.mrb[67].mxu0 }
 0x3f4   :  { %v3152_v42 = vadd.f32 %v3151_v41, %v3150_v34 }
 0x3f5   :  { %v2331_v53 = vadd.f32 %v3075_v38, %v4917_v15  ;;  %v3076_v54 = vpop.f32.mrb[54].mxu1 }
 0x3f6   :  { %v3153_v49 = vpop.f32.mrb[68].mxu0  ;;  %v3077_v51 = vpop.f32.mrb[55].mxu1  ;;  %v2471_v32 = vadd.f32 %v3152_v42, %v2326_v58 }
 0x3f7   :  { %v3078_v16 = vadd.f32 %v3077_v51, %v3076_v54  ;;  %v3154_v57 = vpop.f32.mrb[69].mxu0 }
 0x3f8   :  { %v3155_v19 = vadd.f32 %v3154_v57, %v3153_v49 }
 0x3f9   :  { %v2336_v47 = vadd.f32 %v3078_v16, %v4919_v40  ;;  %v3079_v1 = vpop.f32.mrb[56].mxu1 }
 0x3fa   :  { %v3156_v21 = vpop.f32.mrb[70].mxu0  ;;  %v3080_v56 = vpop.f32.mrb[57].mxu1  ;;  %v4959_v48 = vadd.f32 %v3155_v19, %v2331_v53 }
 0x3fb   :  { %v3081_v22 = vadd.f32 %v3080_v56, %v3079_v1  ;;  %v3157_v27 = vpop.f32.mrb[71].mxu0 }
 0x3fc   :  { %v3158_v59 = vadd.f32 %v3157_v27, %v3156_v21 }
 0x3fd   :  { %v2341_v61 = vadd.f32 %v3081_v22, %v4921_v52  ;;  %v3082_v15 = vpop.f32.mrb[58].mxu1 }
 0x3fe   :  { %v3159_v62 = vpop.f32.mrb[72].mxu0  ;;  %v3083_v24 = vpop.f32.mrb[59].mxu1  ;;  %v2481_v2 = vadd.f32 %v3158_v59, %v2336_v47 }
 0x3ff   :  { %v3084_v50 = vadd.f32 %v3083_v24, %v3082_v15  ;;  %v3160_v63 = vpop.f32.mrb[73].mxu0 }
 0x400   :  { %v3161_v26 = vadd.f32 %v3160_v63, %v3159_v62 }
 0x401   :  { %v2346_v37 = vadd.f32 %v3084_v50, %v4923_v5  ;;  %v3085_v40 = vpop.f32.mrb[60].mxu1 }
 0x402   :  { %v3162_v43 = vpop.f32.mrb[74].mxu0  ;;  %v3086_v55 = vpop.f32.mrb[61].mxu1  ;;  %v2486_v9 = vadd.f32 %v3161_v26, %v2341_v61 }
 0x403   :  { %v3087_v46 = vadd.f32 %v3086_v55, %v3085_v40  ;;  %v3163_v13 = vpop.f32.mrb[75].mxu0 }
 0x404   :  { %v3164_v33 = vadd.f32 %v3163_v13, %v3162_v43 }
 0x405   :  { %v2351_v18 = vadd.f32 %v3087_v46, %v4925_v36  ;;  %v3088_v0 = vpop.f32.mrb[62].mxu1 }
 0x406   :  { %v3165_v52 = vpop.f32.mrb[76].mxu0  ;;  %v3089_v28 = vpop.f32.mrb[63].mxu1  ;;  %v2491_v23 = vadd.f32 %v3164_v33, %v2346_v37 }
 0x407   :  { %v3090_v4 = vadd.f32 %v3089_v28, %v3088_v0  ;;  %v3166_v7 = vpop.f32.mrb[77].mxu0 }
 0x408   :  { %v3167_v10 = vadd.f32 %v3166_v7, %v3165_v52 }
 0x409   :  { %v2356_v12 = vadd.f32 %v3090_v4, %v4928_v44  ;;  %v3277_v14 = vpop.f32.mrb[64].mxu1 }
 0x40a   :  { %v3168_v5 = vpop.f32.mrb[78].mxu0  ;;  %v4966_v29 = vadd.f32 %v3277_v14, %v4946_v39  ;;  %v2590_v58 = vpop.f32.mrb[65].mxu1  ;;  %v2496_v25 = vadd.f32 %v3167_v10, %v2351_v18 }
 0x40b   :  { %v3169_v34 = vpop.f32.mrb[79].mxu0  ;;  %v4969_v31 = vadd.f32 %v2590_v58, %v4943_v60 }
 0x40c   :  { %v3170_v36 = vadd.f32 %v3169_v34, %v3168_v5 }
 0x40d   :  { %v3280_v38 = vpop.f32.mrb[66].mxu1  ;;  %v2675_v24 = vmul.f32 %v4969_v31, %v4969_v31 }
 0x40e   :  { %v3271_v41 = vpop.f32.mrb[80].mxu0  ;;  %v4972_v42 = vadd.f32 %v3280_v38, %v4952_v8  ;;  %v2600_v53 = vpop.f32.mrb[67].mxu1  ;;  %v2501_v54 = vadd.f32 %v3170_v36, %v2356_v12 }
 0x40f   :  { %v4975_v44 = vadd.f32 %v3271_v41, %v4934_v30  ;;  %v2570_v49 = vpop.f32.mrb[81].mxu0  ;;  %v4978_v39 = vadd.f32 %v2600_v53, %v4949_v45 }
 0x410   :  { %v4981_v51 = vadd.f32 %v2570_v49, %v4931_v3 }
 0x411   :  { %v2672_v60 = vmul.f32 %v4975_v44, %v4975_v44  ;;  %v3283_v16 = vpop.f32.mrb[68].mxu1  ;;  %v2677_v46 = vmul.f32 %v4978_v39, %v4978_v39 }
 0x412   :  { %v2649_v8 = vadd.f32 %v4975_v44, %v4981_v51  ;;  %v2671_v57 = vmul.f32 %v4981_v51, %v4981_v51  ;;  %v3274_v19 = vpop.f32.mrb[82].mxu0  ;;  %v4989_v30 = vadd.f32 %v3283_v16, %v2471_v32  ;;  %v2610_v47 = vpop.f32.mrb[69].mxu1 }
 0x413   :  { %v4992_v45 = vadd.f32 %v3274_v19, %v4940_v20  ;;  %v2580_v1 = vpop.f32.mrb[83].mxu0  ;;  %v4995_v3 = vadd.f32 %v2610_v47, %v4955_v11 }
 0x414   :  { %v2687_v21 = vadd.f32 %v2672_v60, %v2671_v57  ;;  %v4998_v56 = vadd.f32 %v2580_v1, %v4937_v6  ;;  %v2680_v12 = vmul.f32 %v4989_v30, %v4989_v30 }
 0x415   :  { %v3286_v22 = vpop.f32.mrb[70].mxu1  ;;  %v2674_v11 = vmul.f32 %v4992_v45, %v4992_v45  ;;  %v2679_v7 = vmul.f32 %v4995_v3, %v4995_v3 }
 0x416   :  { %v2650_v27 = vadd.f32 %v2649_v8, %v4998_v56  ;;  %v2673_v59 = vmul.f32 %v4998_v56, %v4998_v56  ;;  %v5003_v32 = vadd.f32 %v3286_v22, %v2481_v2  ;;  %v2620_v61 = vpop.f32.mrb[71].mxu1 }
 0x417   :  { %v5006_v20 = vadd.f32 %v2620_v61, %v4959_v48  ;;  %v2676_v48 = vmul.f32 %v4966_v29, %v4966_v29 }
 0x418   :  { %v2651_v15 = vadd.f32 %v2650_v27, %v4992_v45  ;;  %v2688_v62 = vadd.f32 %v2687_v21, %v2673_v59  ;;  %v2682_v36 = vmul.f32 %v5003_v32, %v5003_v32 }
 0x419   :  { %v3289_v6 = vpop.f32.mrb[72].mxu1 }
 0x41a   :  { %v2652_v50 = vadd.f32 %v2651_v15, %v4969_v31  ;;  %v2689_v63 = vadd.f32 %v2688_v62, %v2674_v11  ;;  %v5014_v26 = vadd.f32 %v3289_v6, %v2491_v23  ;;  %v2630_v2 = vpop.f32.mrb[73].mxu1 }
 0x41b   :  { %v5016_v37 = vadd.f32 %v2630_v2, %v2486_v9  ;;  %v2678_v9 = vmul.f32 %v4972_v42, %v4972_v42 }
 0x41c   :  { %v2690_v40 = vadd.f32 %v2689_v63, %v2675_v24  ;;  %v2653_v43 = vadd.f32 %v2652_v50, %v4966_v29  ;;  %v2684_v60 = vmul.f32 %v5014_v26, %v5014_v26 }
 0x41d   :  { %v3292_v55 = vpop.f32.mrb[74].mxu1 }
 0x41e   :  { %v2654_v13 = vadd.f32 %v2653_v43, %v4978_v39  ;;  %v2691_v33 = vadd.f32 %v2690_v40, %v2676_v48  ;;  %v5024_v18 = vadd.f32 %v3292_v55, %v2501_v54  ;;  %v2640_v0 = vpop.f32.mrb[75].mxu1  ;;  %v2683_v54 = vmul.f32 %v5016_v37, %v5016_v37 }
 0x41f   :  { %v5026_v52 = vadd.f32 %v2640_v0, %v2496_v25  ;;  %v2681_v25 = vmul.f32 %v5006_v20, %v5006_v20 }
 0x420   :  { %v2655_v28 = vadd.f32 %v2654_v13, %v4972_v42  ;;  %v2692_v23 = vadd.f32 %v2691_v33, %v2677_v46  ;;  %v2686_v1 = vmul.f32 %v5024_v18, %v5024_v18 }
 0x421   :  { %v2685_v19 = vmul.f32 %v5026_v52, %v5026_v52 }
 0x422   :  { %v2656_v4 = vadd.f32 %v2655_v28, %v4995_v3  ;;  %v2693_v10 = vadd.f32 %v2692_v23, %v2678_v9 }
 0x424   :  { %v2694_v14 = vadd.f32 %v2693_v10, %v2679_v7  ;;  %v2657_v5 = vadd.f32 %v2656_v4, %v4989_v30 }
 0x426   :  { %v2658_v58 = vadd.f32 %v2657_v5, %v5006_v20  ;;  %v2695_v34 = vadd.f32 %v2694_v14, %v2680_v12 }
 0x428   :  { %v2696_v38 = vadd.f32 %v2695_v34, %v2681_v25  ;;  %v2659_v41 = vadd.f32 %v2658_v58, %v5003_v32 }
 0x42a   :  { %v2660_v53 = vadd.f32 %v2659_v41, %v5016_v37  ;;  %v2697_v49 = vadd.f32 %v2696_v38, %v2682_v36 }
 0x42c   :  { %v2698_v16 = vadd.f32 %v2697_v49, %v2683_v54  ;;  %v2661_v8 = vadd.f32 %v2660_v53, %v5014_v26 }
 0x42e   :  { %v2662_v57 = vadd.f32 %v2661_v8, %v5026_v52  ;;  %v2699_v47 = vadd.f32 %v2698_v16, %v2684_v60 }
 0x430   :  { %v2663_v21 = vadd.f32 %v2662_v57, %v5024_v18  ;;  %v2700_v22 = vadd.f32 %v2699_v47, %v2685_v19 }
 0x432   :  { %v2664_v27 = vrot.slane %v2663_v21, 4  ;;  %v2701_v59 = vadd.f32 %v2700_v22, %v2686_v1 }
 0x434   :  { %v2665_v61 = vadd.f32 %v2664_v27, %v2663_v21  ;;  %v2702_v11 = vrot.slane %v2701_v59, 4 }
 0x436   :  { %v2666_v15 = vrot.slane %v2665_v61, 2  ;;  %v2703_v62 = vadd.f32 %v2702_v11, %v2701_v59 }
 0x438   :  { %v2667_v6 = vadd.f32 %v2666_v15, %v2665_v61  ;;  %v2704_v24 = vrot.slane %v2703_v62, 2 }
 0x43a   :  { %v2668_v50 = vrot.slane %v2667_v6, 1  ;;  %v2705_v63 = vadd.f32 %v2704_v24, %v2703_v62 }
 0x43c   :  { %v2669_v2 = vadd.f32 %v2668_v50, %v2667_v6  ;;  %v2706_v48 = vrot.slane %v2705_v63, 1 }
 0x43e   :  { %v2670_v40 = vmul.f32 0.0078125, %v2669_v2  ;;  %v2707_v43 = vadd.f32 %v2706_v48, %v2705_v63 }
 0x440   :  { %v2708_v55 = vmul.f32 0.0078125, %v2707_v43  ;;  %v2709_v46 = vmul.f32 %v2670_v40, %v2670_v40  ;;  %v2716_v13 = vsub.f32 %v4981_v51, %v2670_v40  ;;  %v2717_v33 = vsub.f32 %v4975_v44, %v2670_v40 }
 0x441   :  { %v2718_v0 = vsub.f32 %v4998_v56, %v2670_v40  ;;  %v2719_v9 = vsub.f32 %v4992_v45, %v2670_v40  ;;  %v2720_v28 = vsub.f32 %v4969_v31, %v2670_v40  ;;  %v2721_v23 = vsub.f32 %v4966_v29, %v2670_v40 }
 0x442   :  { %v2710_v4 = vsub.f32 %v2708_v55, %v2709_v46  ;;  %v2722_v7 = vsub.f32 %v4978_v39, %v2670_v40  ;;  %v2723_v10 = vsub.f32 %v4972_v42, %v2670_v40  ;;  %v2724_v12 = vsub.f32 %v4995_v3, %v2670_v40  ;;  %v2714_v42 = vld [vmem:[%s5132_s5] sm:$0x1] }
 0x443   :  { %v2725_v14 = vsub.f32 %v4989_v30, %v2670_v40  ;;  %v2726_v51 = vsub.f32 %v5006_v20, %v2670_v40  ;;  %v2727_v44 = vsub.f32 %v5003_v32, %v2670_v40  ;;  %v2728_v56 = vsub.f32 %v5016_v37, %v2670_v40 }
 0x444   :  { %v2711_v45 = vmax.f32 %v2710_v4, 0.0  ;;  %v2729_v31 = vsub.f32 %v5014_v26, %v2670_v40  ;;  %v2730_v29 = vsub.f32 %v5026_v52, %v2670_v40  ;;  %v2731_v5 = vsub.f32 %v5024_v18, %v2670_v40  ;;  %v2829_v18 = vld [vmem:[%s5133_s6] ss:$0 sm:$0xff] }
 0x446   :  { %v2712_v39 = vadd.f32 1e-05, %v2711_v45 }
 0x448   :  { %3488 = vrsqrt.f32 %v2712_v39 }
 0x452   :  { %v3489_v30 = vpop.eup %3488 }
 0x453   :  { %v2715_v3 = vmul.f32 %v3489_v30, %v2714_v42 }
 0x455   :  { %v2735_v32 = vrot.slane %v2715_v3, %v1224_v17 }
 0x457   :  { %v2736_v20 = vmul.f32 %v2735_v32, %v2716_v13  ;;  %v2737_v37 = vmul.f32 %v2735_v32, %v2717_v33  ;;  %v2738_v58 = vmul.f32 %v2735_v32, %v2718_v0  ;;  %v2739_v25 = vmul.f32 %v2735_v32, %v2719_v9 }
 0x458   :  { %v2740_v26 = vmul.f32 %v2735_v32, %v2720_v28  ;;  %v2741_v34 = vmul.f32 %v2735_v32, %v2721_v23  ;;  %v2742_v52 = vmul.f32 %v2735_v32, %v2722_v7  ;;  %v2743_v36 = vmul.f32 %v2735_v32, %v2723_v10 }
 0x459   :  { %v2744_v38 = vmul.f32 %v2735_v32, %v2724_v12  ;;  %v2745_v41 = vmul.f32 %v2735_v32, %v2725_v14  ;;  %v2746_v53 = vmul.f32 %v2735_v32, %v2726_v51  ;;  %v2747_v54 = vmul.f32 %v2735_v32, %v2727_v44 }
 0x45a   :  { %v2748_v49 = vmul.f32 %v2735_v32, %v2728_v56  ;;  %v2749_v60 = vmul.f32 %v2735_v32, %v2729_v31  ;;  %v2750_v35 = vmul.f32 %v2735_v32, %v2730_v29  ;;  %v2751_v17 = vmul.f32 %v2735_v32, %v2731_v5 }
 0x45b   :  { %v2759_v16 = vadd.f32 %v2829_v18, %v2736_v20  ;;  %v2760_v8 = vadd.f32 %v2829_v18, %v2737_v37  ;;  %v2761_v57 = vadd.f32 %v2829_v18, %v2738_v58  ;;  %v2762_v19 = vadd.f32 %v2829_v18, %v2739_v25 }
 0x45c   :  { %v2763_v47 = vadd.f32 %v2829_v18, %v2740_v26  ;;  %v2764_v1 = vadd.f32 %v2829_v18, %v2741_v34  ;;  %v2765_v21 = vadd.f32 %v2829_v18, %v2742_v52  ;;  %v2766_v22 = vadd.f32 %v2829_v18, %v2743_v36 }
 0x45d   :  { %v2767_v27 = vadd.f32 %v2829_v18, %v2744_v38  ;;  %v2768_v59 = vadd.f32 %v2829_v18, %v2745_v41  ;;  %v2769_v61 = vadd.f32 %v2829_v18, %v2746_v53  ;;  %v2770_v11 = vadd.f32 %v2829_v18, %v2747_v54 }
 0x45e   :  { %v2771_v15 = vadd.f32 %v2829_v18, %v2748_v49  ;;  %v2772_v62 = vadd.f32 %v2829_v18, %v2749_v60  ;;  %v2773_v6 = vadd.f32 %v2829_v18, %v2750_v35  ;;  %v2774_v24 = vadd.f32 %v2829_v18, %v2751_v17 }
 0x45f   :  { %v2775_v50 = vmax.f32 %v2759_v16, 0.0  ;;  %v2776_v63 = vmax.f32 %v2760_v8, 0.0  ;;  %v2777_v2 = vmax.f32 %v2761_v57, 0.0  ;;  %v2778_v48 = vmax.f32 %v2762_v19, 0.0 }
 0x460   :  { %v2779_v40 = vmax.f32 %v2763_v47, 0.0  ;;  %v2780_v43 = vmax.f32 %v2764_v1, 0.0  ;;  %v2781_v55 = vmax.f32 %v2765_v21, 0.0  ;;  %v2782_v46 = vmax.f32 %v2766_v22, 0.0 }
 0x461   :  { %v2783_v13 = vmax.f32 %v2767_v27, 0.0  ;;  %v2784_v33 = vmax.f32 %v2768_v59, 0.0  ;;  %v2785_v0 = vmax.f32 %v2769_v61, 0.0  ;;  %v2786_v9 = vmax.f32 %v2770_v11, 0.0  ;;  %2791 = vst [vmem:[%s5134_s7] sm:$0xff] %v2775_v50  ;;  %2792 = vst [vmem:[%s5134_s7 + $0x8] sm:$0xff] %v2776_v63 }
 0x462   :  { %2793 = vst [vmem:[%s5134_s7 + $0x10] sm:$0xff] %v2777_v2  ;;  %2794 = vst [vmem:[%s5134_s7 + $0x18] sm:$0xff] %v2778_v48  ;;  %v2787_v28 = vmax.f32 %v2771_v15, 0.0  ;;  %v2788_v23 = vmax.f32 %v2772_v62, 0.0  ;;  %v2789_v4 = vmax.f32 %v2773_v6, 0.0  ;;  %v2790_v7 = vmax.f32 %v2774_v24, 0.0 }
 0x463   :  { %2795 = vst [vmem:[%s5134_s7 + $0x20] sm:$0xff] %v2779_v40  ;;  %2796 = vst [vmem:[%s5134_s7 + $0x28] sm:$0xff] %v2780_v43 }
 0x464   :  { %2797 = vst [vmem:[%s5134_s7 + $0x30] sm:$0xff] %v2781_v55  ;;  %2798 = vst [vmem:[%s5134_s7 + $0x38] sm:$0xff] %v2782_v46 }
 0x465   :  { %2799 = vst [vmem:[%s5134_s7 + $0x40] sm:$0xff] %v2783_v13  ;;  %2800 = vst [vmem:[%s5134_s7 + $0x48] sm:$0xff] %v2784_v33 }
 0x466   :  { %2801 = vst [vmem:[%s5134_s7 + $0x50] sm:$0xff] %v2785_v0  ;;  %2802 = vst [vmem:[%s5134_s7 + $0x58] sm:$0xff] %v2786_v9 }
 0x467   :  { %2803 = vst [vmem:[%s5134_s7 + $0x60] sm:$0xff] %v2787_v28  ;;  %2804 = vst [vmem:[%s5134_s7 + $0x68] sm:$0xff] %v2788_v23 }
 0x468   :  { %2805 = vst [vmem:[%s5134_s7 + $0x70] sm:$0xff] %v2789_v4  ;;  %2806 = vst [vmem:[%s5134_s7 + $0x78] sm:$0xff] %v2790_v7 }

</bundles_post_ra>
